<compile_context>
chip_gen: v5e
topology: v5e:2x2
jax: 0.10.0
libtpu: 0.0.40
codegen_flags: <defaults>
</compile_context>

<pallas_src>
import functools

import jax
import jax.numpy as jnp
import numpy as np
from jax.experimental import pallas as pl
from jax.experimental.pallas import tpu as pltpu


# ---------------- fused Pallas kernel (TB samples per grid step) ----------------

def neuralnet_kernel(x_ref, k1_ref, b1_ref, k2_ref, b2_ref, m1_ref, f1b_ref,
                     w2_ref, f2b_ref, w3_ref, f3b_ref, o_ref, s1, s2, *, tb):
    f32, bf16 = jnp.float32, jnp.bfloat16
    R1 = tb * 32          # conv1 row space: 32-row frame / sample (h = 0..28 valid)
    R2 = tb * 16          # conv2 row space: 16-row frame / sample (w_h = 0..11 valid)

    # ---- conv1 + bias + ReLU + W-half of pool1 (full-batch M = R1 matmuls) ----
    # The kernel-row (dy) shift is folded into offset reads of the zero-padded
    # input block; channel + kernel-col live in the 128-lane contraction.
    acc1 = jnp.zeros((R1, 256), f32)
    for dy in range(3):
        acc1 = acc1 + jnp.dot(x_ref[0, dy:dy + R1, :], k1_ref[dy],
                              preferred_element_type=f32)
    h1 = jnp.maximum(acc1 + b1_ref[...], 0.0)
    # even/odd conv1 output columns live in separate 128-lane halves, so the lane
    # max is the W-direction half of the 2x2 max pool.
    s1[0:R1, :] = jnp.maximum(h1[:, 0:128], h1[:, 128:256])
    s1[R1:R1 + 8, :] = jnp.zeros((8, 128), f32)      # pad rows for offset reads below

    # ---- conv2 + bias + ReLU + W-half of pool2 (full-batch M = R2 matmuls) ----
    # The H-half of pool1 AND the conv2 kernel-row shift are both folded into the
    # stride-2 scratch reads (rows 2*(k+dy) and 2*(k+dy)+1 of s1 for flat row k).
    acc2 = jnp.zeros((R2, 256), f32)
    for dy in range(3):
        even = s1[pl.ds(2 * dy, R2, stride=2), :]
        odd = s1[pl.ds(2 * dy + 1, R2, stride=2), :]
        lhs = jnp.maximum(even, odd).astype(bf16)     # pooled conv1 rows, (R2, 128)
        acc2 = acc2 + jnp.dot(lhs, k2_ref[dy], preferred_element_type=f32)
    h2 = jnp.maximum(acc2 + b2_ref[...], 0.0)
    s2[...] = jnp.maximum(h2[:, 0:128], h2[:, 128:256])

    # ---- fc1: H-half of pool2 folded into stride-16 reads; the torch NCHW
    # channel-major flatten is folded into the per-row weight matrices m1_ref.
    f1 = jnp.zeros((tb, 128), f32)
    for p2 in range(6):
        even = s2[pl.ds(2 * p2, tb, stride=16), :]
        odd = s2[pl.ds(2 * p2 + 1, tb, stride=16), :]
        row = jnp.maximum(even, odd).astype(bf16)     # (tb, 128): one pooled row/sample
        f1 = f1 + jnp.dot(row, m1_ref[p2], preferred_element_type=f32)
    f1 = jnp.maximum(f1 + f1b_ref[...], 0.0)

    # ---- fc2 / fc3 (zero-padded to 128 lanes -> lane-dense stores) ----
    f2 = jnp.maximum(jnp.dot(f1.astype(bf16), w2_ref[...],
                             preferred_element_type=f32) + f2b_ref[...], 0.0)
    o_ref[...] = jnp.dot(f2.astype(bf16), w3_ref[...],
                         preferred_element_type=f32) + f3b_ref[...]


# ---------------- one-time weight repacking (host side) ----------------

def prepare_params(params):
    """Fold conv Toeplitz structure, W-direction pooling, and the NCHW flatten into
    zero-padded, lane-dense weight matrices (all matmul operands end up bf16)."""
    W1 = np.asarray(params["conv1_w"], np.float32)   # (6, 3, 3, 3)  OIHW
    b1 = np.asarray(params["conv1_b"], np.float32)
    W2 = np.asarray(params["conv2_w"], np.float32)   # (16, 6, 3, 3)
    b2 = np.asarray(params["conv2_b"], np.float32)
    F1 = np.asarray(params["fc1_w"], np.float32)     # (64, 576)
    g1 = np.asarray(params["fc1_b"], np.float32)
    F2 = np.asarray(params["fc2_w"], np.float32)     # (8, 64)
    g2 = np.asarray(params["fc2_b"], np.float32)
    F3 = np.asarray(params["fc3_w"], np.float32)     # (out, 8)
    g3 = np.asarray(params["fc3_b"], np.float32)
    out_size = F3.shape[0]
    assert out_size <= 128

    # conv1: one (128, 256) matrix per kernel row dy.  Contraction lane = c*31 + w_in
    # (wrapper lays the input out that way); output column 128*(w%2) + o*16 + w//2
    # holds conv1[o, :, w] (only w <= 27 kept: floor 2x2 pool), so the even/odd
    # 128-lane halves implement the W half of pool1.
    K1 = np.zeros((3, 128, 256), np.float32)
    B1 = np.zeros((1, 256), np.float32)
    for o in range(6):
        for w in range(28):
            col = 128 * (w % 2) + o * 16 + w // 2
            B1[0, col] = b1[o]
            for c in range(3):
                for dy in range(3):
                    K1[dy, c * 31 + w: c * 31 + w + 3, col] = W1[o, c, dy, :]

    # conv2: contraction lane = c*16 + j (pooled conv1 layout); output column
    # 128*(w%2) + o*8 + w//2 holds conv2[o, :, w] (even/odd halves = pool2 W half).
    K2 = np.zeros((3, 128, 256), np.float32)
    B2 = np.zeros((1, 256), np.float32)
    for o in range(16):
        for w in range(12):
            col = 128 * (w % 2) + o * 8 + w // 2
            B2[0, col] = b2[o]
            for c in range(6):
                for dy in range(3):
                    K2[dy, c * 16 + w: c * 16 + w + 3, col] = W2[o, c, dy, :]

    # fc1: one (128, 128) matrix per pooled row p2 over the (o*8 + j2) lane layout,
    # folding the torch channel-major flatten index o*36 + p2*6 + j2.  fc1/fc2/fc3
    # are zero-padded to 128 lanes so every activation/store is lane-dense.
    M1 = np.zeros((6, 128, 128), np.float32)
    for p2 in range(6):
        for o in range(16):
            M1[p2, o * 8:o * 8 + 6, 0:64] = F1[:, o * 36 + p2 * 6: o * 36 + p2 * 6 + 6].T
    B_f1 = np.zeros((1, 128), np.float32); B_f1[0, :64] = g1

    W2p = np.zeros((128, 128), np.float32); W2p[:64, :8] = F2.T
    B_f2 = np.zeros((1, 128), np.float32); B_f2[0, :8] = g2
    W3p = np.zeros((128, 128), np.float32); W3p[:8, :out_size] = F3.T
    B_f3 = np.zeros((1, 128), np.float32); B_f3[0, :out_size] = g3

    return dict(
        k1=jnp.asarray(K1, jnp.bfloat16), b1=jnp.asarray(B1),
        k2=jnp.asarray(K2, jnp.bfloat16), b2=jnp.asarray(B2),
        m1=jnp.asarray(M1, jnp.bfloat16), f1b=jnp.asarray(B_f1),
        w2=jnp.asarray(W2p, jnp.bfloat16), f2b=jnp.asarray(B_f2),
        w3=jnp.asarray(W3p, jnp.bfloat16), f3b=jnp.asarray(B_f3),
    )


# ---------------- wrapper ----------------

def neuralnet_forward(x, prep, *, out_size, tb=8):
    """x: (N, 2883) float32  ->  (N, out_size) float32."""
    assert tb % 8 == 0, "tb must be a multiple of 8 (output-block sublane tiling)"
    N = x.shape[0]
    assert x.shape[1] == 3 * 31 * 31
    G = pl.cdiv(N, tb)
    n_pad = G * tb
    R1 = tb * 32

    # Layout: per sample 32 rows (h = 0..30 data, row 31 zero), 128 lanes = c*31 + w
    # (93 data lanes, rest zero), bf16.  Each chunk of `tb` samples gets 8 extra zero
    # rows so the in-kernel dy-offset reads stay in bounds.
    xr = x.reshape(N, 3, 31, 31).transpose(0, 2, 1, 3).reshape(N, 31, 93)
    xr = jnp.pad(xr, ((0, n_pad - N), (0, 1), (0, 35))).astype(jnp.bfloat16)
    xr = jnp.pad(xr.reshape(G, R1, 128), ((0, 0), (0, 8), (0, 0)))

    out = pl.pallas_call(
        functools.partial(neuralnet_kernel, tb=tb),
        out_shape=jax.ShapeDtypeStruct((n_pad, 128), jnp.float32),
        grid=(G,),
        in_specs=[
            pl.BlockSpec((1, R1 + 8, 128), lambda n: (n, 0, 0)),   # per-block input
            pl.BlockSpec((3, 128, 256), lambda n: (0, 0, 0)),      # conv1 (resident)
            pl.BlockSpec((1, 256), lambda n: (0, 0)),
            pl.BlockSpec((3, 128, 256), lambda n: (0, 0, 0)),      # conv2 (resident)
            pl.BlockSpec((1, 256), lambda n: (0, 0)),
            pl.BlockSpec((6, 128, 128), lambda n: (0, 0, 0)),      # fc1 (resident)
            pl.BlockSpec((1, 128), lambda n: (0, 0)),
            pl.BlockSpec((128, 128), lambda n: (0, 0)),            # fc2
            pl.BlockSpec((1, 128), lambda n: (0, 0)),
            pl.BlockSpec((128, 128), lambda n: (0, 0)),            # fc3
            pl.BlockSpec((1, 128), lambda n: (0, 0)),
        ],
        out_specs=pl.BlockSpec((tb, 128), lambda n: (n, 0)),
        scratch_shapes=[
            pltpu.VMEM((R1 + 8, 128), jnp.float32),   # W-pooled conv1 activation
            pltpu.VMEM((tb * 16, 128), jnp.float32),  # W-pooled conv2 activation
        ],
        compiler_params=pltpu.CompilerParams(dimension_semantics=("parallel",)),
    )(xr, prep["k1"], prep["b1"], prep["k2"], prep["b2"], prep["m1"], prep["f1b"],
      prep["w2"], prep["f2b"], prep["w3"], prep["f3b"])
    return out[:N, :out_size]


# ---------------- pure-JAX reference (for correctness check) ----------------

def reference_forward(x, params):
    N = x.shape[0]
    y = x.reshape(N, 3, 31, 31)
    y = jax.lax.conv_general_dilated(y, params["conv1_w"], (1, 1), "VALID",
                                     dimension_numbers=("NCHW", "OIHW", "NCHW"))
    y = jnp.maximum(y + params["conv1_b"].reshape(1, 6, 1, 1), 0.0)
    y = jax.lax.reduce_window(y, -jnp.inf, jax.lax.max,
                              (1, 1, 2, 2), (1, 1, 2, 2), "VALID")
    y = jax.lax.conv_general_dilated(y, params["conv2_w"], (1, 1), "VALID",
                                     dimension_numbers=("NCHW", "OIHW", "NCHW"))
    y = jnp.maximum(y + params["conv2_b"].reshape(1, 16, 1, 1), 0.0)
    y = jax.lax.reduce_window(y, -jnp.inf, jax.lax.max,
                              (1, 1, 2, 2), (1, 1, 2, 2), "VALID")
    f = y.reshape(N, 576)
    f = jnp.maximum(f @ params["fc1_w"].T + params["fc1_b"], 0.0)
    f = jnp.maximum(f @ params["fc2_w"].T + params["fc2_b"], 0.0)
    return f @ params["fc3_w"].T + params["fc3_b"]


# ---------------- deterministic parameter init ----------------

def init_params(key, out_size):
    ks = jax.random.split(key, 10)

    def u(k, shape, scale):
        return (jax.random.uniform(k, shape, jnp.float32) * 2.0 - 1.0) * scale

    return dict(
        conv1_w=u(ks[0], (6, 3, 3, 3), 0.10),    # torch Conv2d weight layout
        conv1_b=u(ks[1], (6,), 0.10),
        conv2_w=u(ks[2], (16, 6, 3, 3), 0.10),
        conv2_b=u(ks[3], (16,), 0.10),
        fc1_w=u(ks[4], (64, 576), 0.04),         # torch Linear weight (out, in)
        fc1_b=u(ks[5], (64,), 0.04),
        fc2_w=u(ks[6], (8, 64), 0.12),
        fc2_b=u(ks[7], (8,), 0.12),
        fc3_w=u(ks[8], (out_size, 8), 0.30),
        fc3_b=u(ks[9], (out_size,), 0.30),
    )


if __name__ == "__main__":
    key = jax.random.PRNGKey(0)
    kx, kp = jax.random.split(key)

    out_size, N, TB = 4, 12, 8                   # grid = cdiv(12, 8) = 2 blocks
    in_size = 3 * 31 * 31                        # 2883, implied by view(N, 3, 31, 31)

    x = jax.random.normal(kx, (N, in_size), jnp.float32)
    params = init_params(kp, out_size)

    prep = prepare_params(params)                # one-time weight repacking
    fwd = jax.jit(functools.partial(neuralnet_forward, out_size=out_size, tb=TB))
    y = jax.block_until_ready(fwd(x, prep))
    assert y.shape == (N, out_size) and y.dtype == jnp.float32

    # correctness check vs pure-JAX reference (loose tol: bf16 matmul operands)
    y_ref = jax.block_until_ready(reference_forward(x, params))
    np.testing.assert_allclose(np.asarray(y), np.asarray(y_ref), rtol=0.1, atol=0.05)

    # TODO(synk): training-side step()/SGD/momentum/weight-decay is not implemented
    # (forward pass only, matching the requested module forward semantics).
    print("KERNEL_OK")
</pallas_src>

<mosaic_0001>
module attributes {stable_mosaic.version = 11 : i64} {
  func.func @neuralnet_kernel(%arg0: i32, %arg1: memref<1x264x128xbf16, #tpu.memory_space<vmem>>, %arg2: memref<3x128x256xbf16, #tpu.memory_space<vmem>>, %arg3: memref<1x256xf32, #tpu.memory_space<vmem>>, %arg4: memref<3x128x256xbf16, #tpu.memory_space<vmem>>, %arg5: memref<1x256xf32, #tpu.memory_space<vmem>>, %arg6: memref<6x128x128xbf16, #tpu.memory_space<vmem>>, %arg7: memref<1x128xf32, #tpu.memory_space<vmem>>, %arg8: memref<128x128xbf16, #tpu.memory_space<vmem>>, %arg9: memref<1x128xf32, #tpu.memory_space<vmem>>, %arg10: memref<128x128xbf16, #tpu.memory_space<vmem>>, %arg11: memref<1x128xf32, #tpu.memory_space<vmem>>, %arg12: memref<8x128xf32, #tpu.memory_space<vmem>>, %arg13: memref<264x128xf32, #tpu.memory_space<vmem>>, %arg14: memref<128x128xf32, #tpu.memory_space<vmem>>) attributes {dimension_semantics = [#tpu.dimension_semantics<parallel>], iteration_bounds = array<i64: 2>, scalar_prefetch = 0 : i64, scratch_operands = 2 : i64, tpu.core_type = #tpu.core_type<tc>, window_params = [{transform_indices = @transform_0, window_bounds = array<i64: 1, 264, 128>}, {pipeline_mode = #tpu.pipeline_mode<synchronous>, transform_indices = @transform_1, window_bounds = array<i64: 3, 128, 256>}, {pipeline_mode = #tpu.pipeline_mode<synchronous>, transform_indices = @transform_2, window_bounds = array<i64: 1, 256>}, {pipeline_mode = #tpu.pipeline_mode<synchronous>, transform_indices = @transform_3, window_bounds = array<i64: 3, 128, 256>}, {pipeline_mode = #tpu.pipeline_mode<synchronous>, transform_indices = @transform_4, window_bounds = array<i64: 1, 256>}, {pipeline_mode = #tpu.pipeline_mode<synchronous>, transform_indices = @transform_5, window_bounds = array<i64: 6, 128, 128>}, {pipeline_mode = #tpu.pipeline_mode<synchronous>, transform_indices = @transform_6, window_bounds = array<i64: 1, 128>}, {pipeline_mode = #tpu.pipeline_mode<synchronous>, transform_indices = @transform_7, window_bounds = array<i64: 128, 128>}, {pipeline_mode = #tpu.pipeline_mode<synchronous>, transform_indices = @transform_8, window_bounds = array<i64: 1, 128>}, {pipeline_mode = #tpu.pipeline_mode<synchronous>, transform_indices = @transform_9, window_bounds = array<i64: 128, 128>}, {pipeline_mode = #tpu.pipeline_mode<synchronous>, transform_indices = @transform_10, window_bounds = array<i64: 1, 128>}, {transform_indices = @transform_11, window_bounds = array<i64: 8, 128>}]} {
    %cst = arith.constant 0.000000e+00 : f32
    %0 = vector.broadcast %cst : f32 to vector<256x256xf32>
    %c0 = arith.constant 0 : index
    %c0_0 = arith.constant 0 : index
    %c0_1 = arith.constant 0 : index
    %1 = vector.load %arg1[%c0, %c0_0, %c0_1] : memref<1x264x128xbf16, #tpu.memory_space<vmem>>, vector<1x256x128xbf16>
    %2 = vector.shape_cast %1 : vector<1x256x128xbf16> to vector<256x128xbf16>
    %c0_2 = arith.constant 0 : index
    %c0_3 = arith.constant 0 : index
    %c0_4 = arith.constant 0 : index
    %3 = vector.load %arg2[%c0_2, %c0_3, %c0_4] : memref<3x128x256xbf16, #tpu.memory_space<vmem>>, vector<1x128x256xbf16>
    %4 = vector.shape_cast %3 : vector<1x128x256xbf16> to vector<128x256xbf16>
    %cst_5 = arith.constant dense<0.000000e+00> : vector<256x256xf32>
    %5 = tpu.matmul %2, %4, %cst_5 {dimension_numbers = #tpu.dot_dimension_numbers<[1], [0], [0], [1], [0, 0, 1, 1], [], []>} : vector<256x128xbf16>, vector<128x256xbf16>, vector<256x256xf32> -> vector<256x256xf32>
    %6 = arith.addf %0, %5 : vector<256x256xf32>
    %c0_6 = arith.constant 0 : index
    %c1 = arith.constant 1 : index
    %c0_7 = arith.constant 0 : index
    %7 = vector.load %arg1[%c0_6, %c1, %c0_7] : memref<1x264x128xbf16, #tpu.memory_space<vmem>>, vector<1x256x128xbf16>
    %8 = vector.shape_cast %7 : vector<1x256x128xbf16> to vector<256x128xbf16>
    %c1_8 = arith.constant 1 : index
    %c0_9 = arith.constant 0 : index
    %c0_10 = arith.constant 0 : index
    %9 = vector.load %arg2[%c1_8, %c0_9, %c0_10] : memref<3x128x256xbf16, #tpu.memory_space<vmem>>, vector<1x128x256xbf16>
    %10 = vector.shape_cast %9 : vector<1x128x256xbf16> to vector<128x256xbf16>
    %cst_11 = arith.constant dense<0.000000e+00> : vector<256x256xf32>
    %11 = tpu.matmul %8, %10, %cst_11 {dimension_numbers = #tpu.dot_dimension_numbers<[1], [0], [0], [1], [0, 0, 1, 1], [], []>} : vector<256x128xbf16>, vector<128x256xbf16>, vector<256x256xf32> -> vector<256x256xf32>
    %12 = arith.addf %6, %11 : vector<256x256xf32>
    %c0_12 = arith.constant 0 : index
    %c2 = arith.constant 2 : index
    %c0_13 = arith.constant 0 : index
    %13 = vector.load %arg1[%c0_12, %c2, %c0_13] : memref<1x264x128xbf16, #tpu.memory_space<vmem>>, vector<1x256x128xbf16>
    %14 = vector.shape_cast %13 : vector<1x256x128xbf16> to vector<256x128xbf16>
    %c2_14 = arith.constant 2 : index
    %c0_15 = arith.constant 0 : index
    %c0_16 = arith.constant 0 : index
    %15 = vector.load %arg2[%c2_14, %c0_15, %c0_16] : memref<3x128x256xbf16, #tpu.memory_space<vmem>>, vector<1x128x256xbf16>
    %16 = vector.shape_cast %15 : vector<1x128x256xbf16> to vector<128x256xbf16>
    %cst_17 = arith.constant dense<0.000000e+00> : vector<256x256xf32>
    %17 = tpu.matmul %14, %16, %cst_17 {dimension_numbers = #tpu.dot_dimension_numbers<[1], [0], [0], [1], [0, 0, 1, 1], [], []>} : vector<256x128xbf16>, vector<128x256xbf16>, vector<256x256xf32> -> vector<256x256xf32>
    %18 = arith.addf %12, %17 : vector<256x256xf32>
    %c0_18 = arith.constant 0 : index
    %c0_19 = arith.constant 0 : index
    %19 = vector.load %arg3[%c0_18, %c0_19] : memref<1x256xf32, #tpu.memory_space<vmem>>, vector<1x256xf32>
    %20 = vector.broadcast %19 : vector<1x256xf32> to vector<256x256xf32>
    %21 = arith.addf %18, %20 : vector<256x256xf32>
    %cst_20 = arith.constant 0.000000e+00 : f32
    %22 = vector.broadcast %cst_20 : f32 to vector<256x256xf32>
    %23 = arith.maximumf %21, %22 : vector<256x256xf32>
    %24 = vector.extract_strided_slice %23 {offsets = [0, 0], sizes = [256, 128], strides = [1, 1]} : vector<256x256xf32> to vector<256x128xf32>
    %25 = vector.extract_strided_slice %23 {offsets = [0, 128], sizes = [256, 128], strides = [1, 1]} : vector<256x256xf32> to vector<256x128xf32>
    %26 = arith.maximumf %24, %25 : vector<256x128xf32>
    %c0_21 = arith.constant 0 : index
    %c0_22 = arith.constant 0 : index
    %27 = vector.load %arg13[%c0_21, %c0_22] : memref<264x128xf32, #tpu.memory_space<vmem>>, vector<256x128xf32>
    tpu.vector_store %arg13[%c0_21, %c0_22], %26 {strides = array<i32>} : memref<264x128xf32, #tpu.memory_space<vmem>>, vector<256x128xf32>,
    %cst_23 = arith.constant 0.000000e+00 : f32
    %28 = vector.broadcast %cst_23 : f32 to vector<8x128xf32>
    %c256 = arith.constant 256 : index
    %c0_24 = arith.constant 0 : index
    %29 = vector.load %arg13[%c256, %c0_24] : memref<264x128xf32, #tpu.memory_space<vmem>>, vector<8x128xf32>
    tpu.vector_store %arg13[%c256, %c0_24], %28 {strides = array<i32>} : memref<264x128xf32, #tpu.memory_space<vmem>>, vector<8x128xf32>,
    %cst_25 = arith.constant 0.000000e+00 : f32
    %30 = vector.broadcast %cst_25 : f32 to vector<128x256xf32>
    %c0_26 = arith.constant 0 : index
    %c0_27 = arith.constant 0 : index
    %31 = tpu.strided_load %arg13[%c0_26, %c0_27] {strides = array<i32: 2, 1>} : memref<264x128xf32, #tpu.memory_space<vmem>>, vector<128x128xf32>
    %c1_28 = arith.constant 1 : index
    %c0_29 = arith.constant 0 : index
    %32 = tpu.strided_load %arg13[%c1_28, %c0_29] {strides = array<i32: 2, 1>} : memref<264x128xf32, #tpu.memory_space<vmem>>, vector<128x128xf32>
    %33 = arith.maximumf %31, %32 : vector<128x128xf32>
    %34 = arith.truncf %33 : vector<128x128xf32> to vector<128x128xbf16>
    %c0_30 = arith.constant 0 : index
    %c0_31 = arith.constant 0 : index
    %c0_32 = arith.constant 0 : index
    %35 = vector.load %arg4[%c0_30, %c0_31, %c0_32] : memref<3x128x256xbf16, #tpu.memory_space<vmem>>, vector<1x128x256xbf16>
    %36 = vector.shape_cast %35 : vector<1x128x256xbf16> to vector<128x256xbf16>
    %cst_33 = arith.constant dense<0.000000e+00> : vector<128x256xf32>
    %37 = tpu.matmul %34, %36, %cst_33 {dimension_numbers = #tpu.dot_dimension_numbers<[1], [0], [0], [1], [0, 0, 1, 1], [], []>} : vector<128x128xbf16>, vector<128x256xbf16>, vector<128x256xf32> -> vector<128x256xf32>
    %38 = arith.addf %30, %37 : vector<128x256xf32>
    %c2_34 = arith.constant 2 : index
    %c0_35 = arith.constant 0 : index
    %39 = tpu.strided_load %arg13[%c2_34, %c0_35] {strides = array<i32: 2, 1>} : memref<264x128xf32, #tpu.memory_space<vmem>>, vector<128x128xf32>
    %c3 = arith.constant 3 : index
    %c0_36 = arith.constant 0 : index
    %40 = tpu.strided_load %arg13[%c3, %c0_36] {strides = array<i32: 2, 1>} : memref<264x128xf32, #tpu.memory_space<vmem>>, vector<128x128xf32>
    %41 = arith.maximumf %39, %40 : vector<128x128xf32>
    %42 = arith.truncf %41 : vector<128x128xf32> to vector<128x128xbf16>
    %c1_37 = arith.constant 1 : index
    %c0_38 = arith.constant 0 : index
    %c0_39 = arith.constant 0 : index
    %43 = vector.load %arg4[%c1_37, %c0_38, %c0_39] : memref<3x128x256xbf16, #tpu.memory_space<vmem>>, vector<1x128x256xbf16>
    %44 = vector.shape_cast %43 : vector<1x128x256xbf16> to vector<128x256xbf16>
    %cst_40 = arith.constant dense<0.000000e+00> : vector<128x256xf32>
    %45 = tpu.matmul %42, %44, %cst_40 {dimension_numbers = #tpu.dot_dimension_numbers<[1], [0], [0], [1], [0, 0, 1, 1], [], []>} : vector<128x128xbf16>, vector<128x256xbf16>, vector<128x256xf32> -> vector<128x256xf32>
    %46 = arith.addf %38, %45 : vector<128x256xf32>
    %c4 = arith.constant 4 : index
    %c0_41 = arith.constant 0 : index
    %47 = tpu.strided_load %arg13[%c4, %c0_41] {strides = array<i32: 2, 1>} : memref<264x128xf32, #tpu.memory_space<vmem>>, vector<128x128xf32>
    %c5 = arith.constant 5 : index
    %c0_42 = arith.constant 0 : index
    %48 = tpu.strided_load %arg13[%c5, %c0_42] {strides = array<i32: 2, 1>} : memref<264x128xf32, #tpu.memory_space<vmem>>, vector<128x128xf32>
    %49 = arith.maximumf %47, %48 : vector<128x128xf32>
    %50 = arith.truncf %49 : vector<128x128xf32> to vector<128x128xbf16>
    %c2_43 = arith.constant 2 : index
    %c0_44 = arith.constant 0 : index
    %c0_45 = arith.constant 0 : index
    %51 = vector.load %arg4[%c2_43, %c0_44, %c0_45] : memref<3x128x256xbf16, #tpu.memory_space<vmem>>, vector<1x128x256xbf16>
    %52 = vector.shape_cast %51 : vector<1x128x256xbf16> to vector<128x256xbf16>
    %cst_46 = arith.constant dense<0.000000e+00> : vector<128x256xf32>
    %53 = tpu.matmul %50, %52, %cst_46 {dimension_numbers = #tpu.dot_dimension_numbers<[1], [0], [0], [1], [0, 0, 1, 1], [], []>} : vector<128x128xbf16>, vector<128x256xbf16>, vector<128x256xf32> -> vector<128x256xf32>
    %54 = arith.addf %46, %53 : vector<128x256xf32>
    %c0_47 = arith.constant 0 : index
    %c0_48 = arith.constant 0 : index
    %55 = vector.load %arg5[%c0_47, %c0_48] : memref<1x256xf32, #tpu.memory_space<vmem>>, vector<1x256xf32>
    %56 = vector.broadcast %55 : vector<1x256xf32> to vector<128x256xf32>
    %57 = arith.addf %54, %56 : vector<128x256xf32>
    %cst_49 = arith.constant 0.000000e+00 : f32
    %58 = vector.broadcast %cst_49 : f32 to vector<128x256xf32>
    %59 = arith.maximumf %57, %58 : vector<128x256xf32>
    %60 = vector.extract_strided_slice %59 {offsets = [0, 0], sizes = [128, 128], strides = [1, 1]} : vector<128x256xf32> to vector<128x128xf32>
    %61 = vector.extract_strided_slice %59 {offsets = [0, 128], sizes = [128, 128], strides = [1, 1]} : vector<128x256xf32> to vector<128x128xf32>
    %62 = arith.maximumf %60, %61 : vector<128x128xf32>
    %c0_50 = arith.constant 0 : index
    %c0_51 = arith.constant 0 : index
    %63 = vector.load %arg14[%c0_50, %c0_51] : memref<128x128xf32, #tpu.memory_space<vmem>>, vector<128x128xf32>
    tpu.vector_store %arg14[%c0_50, %c0_51], %62 {strides = array<i32>} : memref<128x128xf32, #tpu.memory_space<vmem>>, vector<128x128xf32>,
    %cst_52 = arith.constant 0.000000e+00 : f32
    %64 = vector.broadcast %cst_52 : f32 to vector<8x128xf32>
    %c0_53 = arith.constant 0 : index
    %c0_54 = arith.constant 0 : index
    %65 = tpu.strided_load %arg14[%c0_53, %c0_54] {strides = array<i32: 16, 1>} : memref<128x128xf32, #tpu.memory_space<vmem>>, vector<8x128xf32>
    %c1_55 = arith.constant 1 : index
    %c0_56 = arith.constant 0 : index
    %66 = tpu.strided_load %arg14[%c1_55, %c0_56] {strides = array<i32: 16, 1>} : memref<128x128xf32, #tpu.memory_space<vmem>>, vector<8x128xf32>
    %67 = arith.maximumf %65, %66 : vector<8x128xf32>
    %68 = arith.truncf %67 : vector<8x128xf32> to vector<8x128xbf16>
    %c0_57 = arith.constant 0 : index
    %c0_58 = arith.constant 0 : index
    %c0_59 = arith.constant 0 : index
    %69 = vector.load %arg6[%c0_57, %c0_58, %c0_59] : memref<6x128x128xbf16, #tpu.memory_space<vmem>>, vector<1x128x128xbf16>
    %70 = vector.shape_cast %69 : vector<1x128x128xbf16> to vector<128x128xbf16>
    %cst_60 = arith.constant dense<0.000000e+00> : vector<8x128xf32>
    %71 = tpu.matmul %68, %70, %cst_60 {dimension_numbers = #tpu.dot_dimension_numbers<[1], [0], [0], [1], [0, 0, 1, 1], [], []>} : vector<8x128xbf16>, vector<128x128xbf16>, vector<8x128xf32> -> vector<8x128xf32>
    %72 = arith.addf %64, %71 : vector<8x128xf32>
    %c2_61 = arith.constant 2 : index
    %c0_62 = arith.constant 0 : index
    %73 = tpu.strided_load %arg14[%c2_61, %c0_62] {strides = array<i32: 16, 1>} : memref<128x128xf32, #tpu.memory_space<vmem>>, vector<8x128xf32>
    %c3_63 = arith.constant 3 : index
    %c0_64 = arith.constant 0 : index
    %74 = tpu.strided_load %arg14[%c3_63, %c0_64] {strides = array<i32: 16, 1>} : memref<128x128xf32, #tpu.memory_space<vmem>>, vector<8x128xf32>
    %75 = arith.maximumf %73, %74 : vector<8x128xf32>
    %76 = arith.truncf %75 : vector<8x128xf32> to vector<8x128xbf16>
    %c1_65 = arith.constant 1 : index
    %c0_66 = arith.constant 0 : index
    %c0_67 = arith.constant 0 : index
    %77 = vector.load %arg6[%c1_65, %c0_66, %c0_67] : memref<6x128x128xbf16, #tpu.memory_space<vmem>>, vector<1x128x128xbf16>
    %78 = vector.shape_cast %77 : vector<1x128x128xbf16> to vector<128x128xbf16>
    %cst_68 = arith.constant dense<0.000000e+00> : vector<8x128xf32>
    %79 = tpu.matmul %76, %78, %cst_68 {dimension_numbers = #tpu.dot_dimension_numbers<[1], [0], [0], [1], [0, 0, 1, 1], [], []>} : vector<8x128xbf16>, vector<128x128xbf16>, vector<8x128xf32> -> vector<8x128xf32>
    %80 = arith.addf %72, %79 : vector<8x128xf32>
    %c4_69 = arith.constant 4 : index
    %c0_70 = arith.constant 0 : index
    %81 = tpu.strided_load %arg14[%c4_69, %c0_70] {strides = array<i32: 16, 1>} : memref<128x128xf32, #tpu.memory_space<vmem>>, vector<8x128xf32>
    %c5_71 = arith.constant 5 : index
    %c0_72 = arith.constant 0 : index
    %82 = tpu.strided_load %arg14[%c5_71, %c0_72] {strides = array<i32: 16, 1>} : memref<128x128xf32, #tpu.memory_space<vmem>>, vector<8x128xf32>
    %83 = arith.maximumf %81, %82 : vector<8x128xf32>
    %84 = arith.truncf %83 : vector<8x128xf32> to vector<8x128xbf16>
    %c2_73 = arith.constant 2 : index
    %c0_74 = arith.constant 0 : index
    %c0_75 = arith.constant 0 : index
    %85 = vector.load %arg6[%c2_73, %c0_74, %c0_75] : memref<6x128x128xbf16, #tpu.memory_space<vmem>>, vector<1x128x128xbf16>
    %86 = vector.shape_cast %85 : vector<1x128x128xbf16> to vector<128x128xbf16>
    %cst_76 = arith.constant dense<0.000000e+00> : vector<8x128xf32>
    %87 = tpu.matmul %84, %86, %cst_76 {dimension_numbers = #tpu.dot_dimension_numbers<[1], [0], [0], [1], [0, 0, 1, 1], [], []>} : vector<8x128xbf16>, vector<128x128xbf16>, vector<8x128xf32> -> vector<8x128xf32>
    %88 = arith.addf %80, %87 : vector<8x128xf32>
    %c6 = arith.constant 6 : index
    %c0_77 = arith.constant 0 : index
    %89 = tpu.strided_load %arg14[%c6, %c0_77] {strides = array<i32: 16, 1>} : memref<128x128xf32, #tpu.memory_space<vmem>>, vector<8x128xf32>
    %c7 = arith.constant 7 : index
    %c0_78 = arith.constant 0 : index
    %90 = tpu.strided_load %arg14[%c7, %c0_78] {strides = array<i32: 16, 1>} : memref<128x128xf32, #tpu.memory_space<vmem>>, vector<8x128xf32>
    %91 = arith.maximumf %89, %90 : vector<8x128xf32>
    %92 = arith.truncf %91 : vector<8x128xf32> to vector<8x128xbf16>
    %c3_79 = arith.constant 3 : index
    %c0_80 = arith.constant 0 : index
    %c0_81 = arith.constant 0 : index
    %93 = vector.load %arg6[%c3_79, %c0_80, %c0_81] : memref<6x128x128xbf16, #tpu.memory_space<vmem>>, vector<1x128x128xbf16>
    %94 = vector.shape_cast %93 : vector<1x128x128xbf16> to vector<128x128xbf16>
    %cst_82 = arith.constant dense<0.000000e+00> : vector<8x128xf32>
    %95 = tpu.matmul %92, %94, %cst_82 {dimension_numbers = #tpu.dot_dimension_numbers<[1], [0], [0], [1], [0, 0, 1, 1], [], []>} : vector<8x128xbf16>, vector<128x128xbf16>, vector<8x128xf32> -> vector<8x128xf32>
    %96 = arith.addf %88, %95 : vector<8x128xf32>
    %c8 = arith.constant 8 : index
    %c0_83 = arith.constant 0 : index
    %97 = tpu.strided_load %arg14[%c8, %c0_83] {strides = array<i32: 16, 1>} : memref<128x128xf32, #tpu.memory_space<vmem>>, vector<8x128xf32>
    %c9 = arith.constant 9 : index
    %c0_84 = arith.constant 0 : index
    %98 = tpu.strided_load %arg14[%c9, %c0_84] {strides = array<i32: 16, 1>} : memref<128x128xf32, #tpu.memory_space<vmem>>, vector<8x128xf32>
    %99 = arith.maximumf %97, %98 : vector<8x128xf32>
    %100 = arith.truncf %99 : vector<8x128xf32> to vector<8x128xbf16>
    %c4_85 = arith.constant 4 : index
    %c0_86 = arith.constant 0 : index
    %c0_87 = arith.constant 0 : index
    %101 = vector.load %arg6[%c4_85, %c0_86, %c0_87] : memref<6x128x128xbf16, #tpu.memory_space<vmem>>, vector<1x128x128xbf16>
    %102 = vector.shape_cast %101 : vector<1x128x128xbf16> to vector<128x128xbf16>
    %cst_88 = arith.constant dense<0.000000e+00> : vector<8x128xf32>
    %103 = tpu.matmul %100, %102, %cst_88 {dimension_numbers = #tpu.dot_dimension_numbers<[1], [0], [0], [1], [0, 0, 1, 1], [], []>} : vector<8x128xbf16>, vector<128x128xbf16>, vector<8x128xf32> -> vector<8x128xf32>
    %104 = arith.addf %96, %103 : vector<8x128xf32>
    %c10 = arith.constant 10 : index
    %c0_89 = arith.constant 0 : index
    %105 = tpu.strided_load %arg14[%c10, %c0_89] {strides = array<i32: 16, 1>} : memref<128x128xf32, #tpu.memory_space<vmem>>, vector<8x128xf32>
    %c11 = arith.constant 11 : index
    %c0_90 = arith.constant 0 : index
    %106 = tpu.strided_load %arg14[%c11, %c0_90] {strides = array<i32: 16, 1>} : memref<128x128xf32, #tpu.memory_space<vmem>>, vector<8x128xf32>
    %107 = arith.maximumf %105, %106 : vector<8x128xf32>
    %108 = arith.truncf %107 : vector<8x128xf32> to vector<8x128xbf16>
    %c5_91 = arith.constant 5 : index
    %c0_92 = arith.constant 0 : index
    %c0_93 = arith.constant 0 : index
    %109 = vector.load %arg6[%c5_91, %c0_92, %c0_93] : memref<6x128x128xbf16, #tpu.memory_space<vmem>>, vector<1x128x128xbf16>
    %110 = vector.shape_cast %109 : vector<1x128x128xbf16> to vector<128x128xbf16>
    %cst_94 = arith.constant dense<0.000000e+00> : vector<8x128xf32>
    %111 = tpu.matmul %108, %110, %cst_94 {dimension_numbers = #tpu.dot_dimension_numbers<[1], [0], [0], [1], [0, 0, 1, 1], [], []>} : vector<8x128xbf16>, vector<128x128xbf16>, vector<8x128xf32> -> vector<8x128xf32>
    %112 = arith.addf %104, %111 : vector<8x128xf32>
    %c0_95 = arith.constant 0 : index
    %c0_96 = arith.constant 0 : index
    %113 = vector.load %arg7[%c0_95, %c0_96] : memref<1x128xf32, #tpu.memory_space<vmem>>, vector<1x128xf32>
    %114 = vector.broadcast %113 : vector<1x128xf32> to vector<8x128xf32>
    %115 = arith.addf %112, %114 : vector<8x128xf32>
    %cst_97 = arith.constant 0.000000e+00 : f32
    %116 = vector.broadcast %cst_97 : f32 to vector<8x128xf32>
    %117 = arith.maximumf %115, %116 : vector<8x128xf32>
    %118 = arith.truncf %117 : vector<8x128xf32> to vector<8x128xbf16>
    %c0_98 = arith.constant 0 : index
    %c0_99 = arith.constant 0 : index
    %119 = vector.load %arg8[%c0_98, %c0_99] : memref<128x128xbf16, #tpu.memory_space<vmem>>, vector<128x128xbf16>
    %cst_100 = arith.constant dense<0.000000e+00> : vector<8x128xf32>
    %120 = tpu.matmul %118, %119, %cst_100 {dimension_numbers = #tpu.dot_dimension_numbers<[1], [0], [0], [1], [0, 0, 1, 1], [], []>} : vector<8x128xbf16>, vector<128x128xbf16>, vector<8x128xf32> -> vector<8x128xf32>
    %c0_101 = arith.constant 0 : index
    %c0_102 = arith.constant 0 : index
    %121 = vector.load %arg9[%c0_101, %c0_102] : memref<1x128xf32, #tpu.memory_space<vmem>>, vector<1x128xf32>
    %122 = vector.broadcast %121 : vector<1x128xf32> to vector<8x128xf32>
    %123 = arith.addf %120, %122 : vector<8x128xf32>
    %cst_103 = arith.constant 0.000000e+00 : f32
    %124 = vector.broadcast %cst_103 : f32 to vector<8x128xf32>
    %125 = arith.maximumf %123, %124 : vector<8x128xf32>
    %126 = arith.truncf %125 : vector<8x128xf32> to vector<8x128xbf16>
    %c0_104 = arith.constant 0 : index
    %c0_105 = arith.constant 0 : index
    %127 = vector.load %arg10[%c0_104, %c0_105] : memref<128x128xbf16, #tpu.memory_space<vmem>>, vector<128x128xbf16>
    %cst_106 = arith.constant dense<0.000000e+00> : vector<8x128xf32>
    %128 = tpu.matmul %126, %127, %cst_106 {dimension_numbers = #tpu.dot_dimension_numbers<[1], [0], [0], [1], [0, 0, 1, 1], [], []>} : vector<8x128xbf16>, vector<128x128xbf16>, vector<8x128xf32> -> vector<8x128xf32>
    %c0_107 = arith.constant 0 : index
    %c0_108 = arith.constant 0 : index
    %129 = vector.load %arg11[%c0_107, %c0_108] : memref<1x128xf32, #tpu.memory_space<vmem>>, vector<1x128xf32>
    %130 = vector.broadcast %129 : vector<1x128xf32> to vector<8x128xf32>
    %131 = arith.addf %128, %130 : vector<8x128xf32>
    %c0_109 = arith.constant 0 : index
    %c0_110 = arith.constant 0 : index
    %132 = vector.load %arg12[%c0_109, %c0_110] : memref<8x128xf32, #tpu.memory_space<vmem>>, vector<8x128xf32>
    tpu.vector_store %arg12[%c0_109, %c0_110], %131 {strides = array<i32>} : memref<8x128xf32, #tpu.memory_space<vmem>>, vector<8x128xf32>,
    return
  }
  func.func @transform_0(%arg0: i32) -> (i32, i32, i32) {
    %c0_i32 = arith.constant 0 : i32
    %c0_i32_0 = arith.constant 0 : i32
    %c0_i32_1 = arith.constant 0 : i32
    return %arg0, %c0_i32, %c0_i32_0 : i32, i32, i32
  }
  func.func @transform_1(%arg0: i32) -> (i32, i32, i32) {
    %c0_i32 = arith.constant 0 : i32
    %c0_i32_0 = arith.constant 0 : i32
    %c0_i32_1 = arith.constant 0 : i32
    %c0_i32_2 = arith.constant 0 : i32
    return %c0_i32, %c0_i32_0, %c0_i32_1 : i32, i32, i32
  }
  func.func @transform_2(%arg0: i32) -> (i32, i32) {
    %c0_i32 = arith.constant 0 : i32
    %c0_i32_0 = arith.constant 0 : i32
    %c0_i32_1 = arith.constant 0 : i32
    return %c0_i32, %c0_i32_0 : i32, i32
  }
  func.func @transform_3(%arg0: i32) -> (i32, i32, i32) {
    %c0_i32 = arith.constant 0 : i32
    %c0_i32_0 = arith.constant 0 : i32
    %c0_i32_1 = arith.constant 0 : i32
    %c0_i32_2 = arith.constant 0 : i32
    return %c0_i32, %c0_i32_0, %c0_i32_1 : i32, i32, i32
  }
  func.func @transform_4(%arg0: i32) -> (i32, i32) {
    %c0_i32 = arith.constant 0 : i32
    %c0_i32_0 = arith.constant 0 : i32
    %c0_i32_1 = arith.constant 0 : i32
    return %c0_i32, %c0_i32_0 : i32, i32
  }
  func.func @transform_5(%arg0: i32) -> (i32, i32, i32) {
    %c0_i32 = arith.constant 0 : i32
    %c0_i32_0 = arith.constant 0 : i32
    %c0_i32_1 = arith.constant 0 : i32
    %c0_i32_2 = arith.constant 0 : i32
    return %c0_i32, %c0_i32_0, %c0_i32_1 : i32, i32, i32
  }
  func.func @transform_6(%arg0: i32) -> (i32, i32) {
    %c0_i32 = arith.constant 0 : i32
    %c0_i32_0 = arith.constant 0 : i32
    %c0_i32_1 = arith.constant 0 : i32
    return %c0_i32, %c0_i32_0 : i32, i32
  }
  func.func @transform_7(%arg0: i32) -> (i32, i32) {
    %c0_i32 = arith.constant 0 : i32
    %c0_i32_0 = arith.constant 0 : i32
    %c0_i32_1 = arith.constant 0 : i32
    return %c0_i32, %c0_i32_0 : i32, i32
  }
  func.func @transform_8(%arg0: i32) -> (i32, i32) {
    %c0_i32 = arith.constant 0 : i32
    %c0_i32_0 = arith.constant 0 : i32
    %c0_i32_1 = arith.constant 0 : i32
    return %c0_i32, %c0_i32_0 : i32, i32
  }
  func.func @transform_9(%arg0: i32) -> (i32, i32) {
    %c0_i32 = arith.constant 0 : i32
    %c0_i32_0 = arith.constant 0 : i32
    %c0_i32_1 = arith.constant 0 : i32
    return %c0_i32, %c0_i32_0 : i32, i32
  }
  func.func @transform_10(%arg0: i32) -> (i32, i32) {
    %c0_i32 = arith.constant 0 : i32
    %c0_i32_0 = arith.constant 0 : i32
    %c0_i32_1 = arith.constant 0 : i32
    return %c0_i32, %c0_i32_0 : i32, i32
  }
  func.func @transform_11(%arg0: i32) -> (i32, i32) {
    %c0_i32 = arith.constant 0 : i32
    %c0_i32_0 = arith.constant 0 : i32
    return %arg0, %c0_i32 : i32, i32
  }
}

</mosaic_0001>

<bundles_post_ra>
// kernel: neuralnet_forward.1
= control target key start
LH: loop header
LB: loop body
LE: loop exit
PB: predicated region body
PF: predicated region fallthrough
CT: control target
= control target key end

     0   :  { %s4900_s17 = smov 0   ;;  %s6346_s0 = inlined_call_operand.vmem [shape: bf16[2,264,128], index: 0, kind: input, shape index: {}]   ;;  %s6347_s1 = inlined_call_operand.vmem [shape: bf16[3,128,256], index: 1, kind: input, shape index: {}]   ;;  %s6348_s2 = inlined_call_operand.vmem [shape: f32[1,256], index: 2, kind: input, shape index: {}]   ;;  %s6349_s3 = inlined_call_operand.vmem [shape: bf16[3,128,256], index: 3, kind: input, shape index: {}]   ;;  %s6350_s4 = inlined_call_operand.vmem [shape: f32[1,256], index: 4, kind: input, shape index: {}]   ;;  %s6351_s5 = inlined_call_operand.vmem [shape: bf16[6,128,128], index: 5, kind: input, shape index: {}]   ;;  %s6352_s6 = inlined_call_operand.vmem [shape: f32[1,128], index: 6, kind: input, shape index: {}]   ;;  %s6353_s7 = inlined_call_operand.vmem [shape: bf16[128,128], index: 7, kind: input, shape index: {}]   ;;  %s6354_s8 = inlined_call_operand.vmem [shape: f32[1,128], index: 8, kind: input, shape index: {}]   ;;  %s6355_s9 = inlined_call_operand.vmem [shape: bf16[128,128], index: 9, kind: input, shape index: {}]   ;;  %s6356_s10 = inlined_call_operand.vmem [shape: f32[1,128], index: 10, kind: input, shape index: {}]   ;;  %s6357_s11 = inlined_call_operand.vmem [shape: f32[16,128], index: 11, kind: output, shape index: {}]  }
   0x1 LB: > { %s3703_s18 = sadd.s32 4294967295, %s4837_s17   ;;  %p3707_p0 = scmp.ge.s32.totalorder %s4837_s17, 1  ;;  %s4837_s17 = sphi %s4900_s17, %s21_s17  }
   0x2   : > { %p337_p1 = scmp.lt.s32.totalorder %s4837_s17, 3 }
   0x4   : > { %p338_p2 = pnand %p3707_p0, %p337_p1 }
   0x6   : > { %341 = sbr.rel (%p338_p2) target bundleno = 1434 (0x59a), region = 64 }
   0xb   : > { %v3844_v0 = vld [vmem:[%s6347_s1 + $0xf0] sm:$0xf]  ;;  %v4682_v1 = vld [vmem:[%s6347_s1 + $0xf4] sm:$0xf0]  ;;  %v4681_v2 = vld [vmem:[%s6347_s1 + $0xf4] sm:$0xf] }
   0xc   : > { %v3845_v3 = vor.u32 %v4682_v1, %v3844_v0  ;;  %v3846_v4 = vld [vmem:[%s6347_s1 + $0xf8] sm:$0xf0]  ;;  %v3972_v5 = vld [vmem:[%s6347_s1 + $0x70] sm:$0xf]  ;;  %v4651_v6 = vld [vmem:[%s6347_s1 + $0x74] sm:$0xf0] }
   0xd   : > { %v3849_v7 = vor.u32 %v4681_v2, %v3846_v4  ;;  %v3973_v8 = vor.u32 %v4651_v6, %v3972_v5  ;;  %v4650_v9 = vld [vmem:[%s6347_s1 + $0x74] sm:$0xf]  ;;  %v3974_v10 = vld [vmem:[%s6347_s1 + $0x78] sm:$0xf0]  ;;  %v3836_v11 = vld [vmem:[%s6347_s1 + $0xe0] sm:$0xf] }
   0xe   : > { %795 = vmatpush.bf16.msra.mxu0 %v3845_v3  ;;  %v3977_v12 = vor.u32 %v4650_v9, %v3974_v10  ;;  %v4680_v13 = vld [vmem:[%s6347_s1 + $0xe4] sm:$0xf0]  ;;  %v4679_v14 = vld [vmem:[%s6347_s1 + $0xe4] sm:$0xf]  ;;  %v3838_v15 = vld [vmem:[%s6347_s1 + $0xe8] sm:$0xf0] }
   0xf   : > { %884 = vmatpush.bf16.msra.mxu1 %v3849_v7  ;;  %1149 = vmatpush.bf16.msra.mxu2 %v3973_v8  ;;  %v3837_v16 = vor.u32 %v4680_v13, %v3836_v11  ;;  %v3841_v17 = vor.u32 %v4679_v14, %v3838_v15  ;;  %v3964_v18 = vld [vmem:[%s6347_s1 + $0x60] sm:$0xf]  ;;  %v4649_v19 = vld [vmem:[%s6347_s1 + $0x64] sm:$0xf0]  ;;  %v4648_v20 = vld [vmem:[%s6347_s1 + $0x64] sm:$0xf] }
  0x10   : > { %1238 = vmatpush.bf16.msra.mxu3 %v3977_v12  ;;  %v3965_v21 = vor.u32 %v4649_v19, %v3964_v18  ;;  %v3966_v22 = vld [vmem:[%s6347_s1 + $0x68] sm:$0xf0]  ;;  %v3828_v23 = vld [vmem:[%s6347_s1 + $0xd0] sm:$0xf]  ;;  %v4678_v24 = vld [vmem:[%s6347_s1 + $0xd4] sm:$0xf0] }
  0x11   : > { %v3969_v25 = vor.u32 %v4648_v20, %v3966_v22  ;;  %v4677_v26 = vld [vmem:[%s6347_s1 + $0xd4] sm:$0xf]  ;;  %v3830_v27 = vld [vmem:[%s6347_s1 + $0xd8] sm:$0xf0]  ;;  %v3956_v28 = vld [vmem:[%s6347_s1 + $0x50] sm:$0xf]  ;;  %v3829_v29 = vor.u32 %v4678_v24, %v3828_v23 }
  0x12   : > { %796 = vmatpush.bf16.msra.mxu0 %v3837_v16  ;;  %v4647_v30 = vld [vmem:[%s6347_s1 + $0x54] sm:$0xf0]  ;;  %v4646_v31 = vld [vmem:[%s6347_s1 + $0x54] sm:$0xf]  ;;  %v3958_v32 = vld [vmem:[%s6347_s1 + $0x58] sm:$0xf0]  ;;  %v3833_v33 = vor.u32 %v4677_v26, %v3830_v27 }
  0x13   : > { %885 = vmatpush.bf16.msra.mxu1 %v3841_v17  ;;  %1150 = vmatpush.bf16.msra.mxu2 %v3965_v21  ;;  %v3957_v34 = vor.u32 %v4647_v30, %v3956_v28  ;;  %v3820_v35 = vld [vmem:[%s6347_s1 + $0xc0] sm:$0xf]  ;;  %v4676_v36 = vld [vmem:[%s6347_s1 + $0xc4] sm:$0xf0]  ;;  %v4675_v37 = vld [vmem:[%s6347_s1 + $0xc4] sm:$0xf]  ;;  %v3961_v38 = vor.u32 %v4646_v31, %v3958_v32 }
  0x14   : > { %1239 = vmatpush.bf16.msra.mxu3 %v3969_v25  ;;  %v3822_v39 = vld [vmem:[%s6347_s1 + $0xc8] sm:$0xf0]  ;;  %v3948_v40 = vld [vmem:[%s6347_s1 + $0x40] sm:$0xf]  ;;  %v4645_v41 = vld [vmem:[%s6347_s1 + $0x44] sm:$0xf0]  ;;  %v3821_v44 = vor.u32 %v4676_v36, %v3820_v35 }
  0x15   : > { %v4644_v42 = vld [vmem:[%s6347_s1 + $0x44] sm:$0xf]  ;;  %v3950_v43 = vld [vmem:[%s6347_s1 + $0x48] sm:$0xf0]  ;;  %v3825_v45 = vor.u32 %v4675_v37, %v3822_v39  ;;  %v3949_v46 = vor.u32 %v4645_v41, %v3948_v40  ;;  %v3812_v47 = vld [vmem:[%s6347_s1 + $0xb0] sm:$0xf] }
  0x16   : > { %797 = vmatpush.bf16.msra.mxu0 %v3829_v29  ;;  %v4674_v48 = vld [vmem:[%s6347_s1 + $0xb4] sm:$0xf0]  ;;  %v4673_v49 = vld [vmem:[%s6347_s1 + $0xb4] sm:$0xf]  ;;  %v3953_v50 = vor.u32 %v4644_v42, %v3950_v43  ;;  %v3814_v51 = vld [vmem:[%s6347_s1 + $0xb8] sm:$0xf0] }
  0x17   : > { %886 = vmatpush.bf16.msra.mxu1 %v3833_v33  ;;  %1151 = vmatpush.bf16.msra.mxu2 %v3957_v34  ;;  %v3940_v52 = vld [vmem:[%s6347_s1 + $0x30] sm:$0xf]  ;;  %v4643_v53 = vld [vmem:[%s6347_s1 + $0x34] sm:$0xf0]  ;;  %v4642_v54 = vld [vmem:[%s6347_s1 + $0x34] sm:$0xf]  ;;  %v3813_v56 = vor.u32 %v4674_v48, %v3812_v47  ;;  %v3817_v57 = vor.u32 %v4673_v49, %v3814_v51 }
  0x18   : > { %1240 = vmatpush.bf16.msra.mxu3 %v3961_v38  ;;  %v3942_v55 = vld [vmem:[%s6347_s1 + $0x38] sm:$0xf0]  ;;  %v3941_v58 = vor.u32 %v4643_v53, %v3940_v52  ;;  %v3804_v59 = vld [vmem:[%s6347_s1 + $0xa0] sm:$0xf]  ;;  %v4672_v60 = vld [vmem:[%s6347_s1 + $0xa4] sm:$0xf0] }
  0x19   : > { %v4671_v61 = vld [vmem:[%s6347_s1 + $0xa4] sm:$0xf]  ;;  %v3945_v62 = vor.u32 %v4642_v54, %v3942_v55  ;;  %v3806_v63 = vld [vmem:[%s6347_s1 + $0xa8] sm:$0xf0]  ;;  %v3932_v0 = vld [vmem:[%s6347_s1 + $0x20] sm:$0xf]  ;;  %v3805_v4 = vor.u32 %v4672_v60, %v3804_v59 }
  0x1a   : > { %798 = vmatpush.bf16.msra.mxu0 %v3821_v44  ;;  %v4641_v1 = vld [vmem:[%s6347_s1 + $0x24] sm:$0xf0]  ;;  %v4640_v2 = vld [vmem:[%s6347_s1 + $0x24] sm:$0xf]  ;;  %v3934_v3 = vld [vmem:[%s6347_s1 + $0x28] sm:$0xf0]  ;;  %v3809_v7 = vor.u32 %v4671_v61, %v3806_v63 }
  0x1b   : > { %887 = vmatpush.bf16.msra.mxu1 %v3825_v45  ;;  %1152 = vmatpush.bf16.msra.mxu2 %v3949_v46  ;;  %v3796_v5 = vld [vmem:[%s6347_s1 + $0x90] sm:$0xf]  ;;  %v4670_v6 = vld [vmem:[%s6347_s1 + $0x94] sm:$0xf0]  ;;  %v3933_v8 = vor.u32 %v4641_v1, %v3932_v0  ;;  %v4669_v9 = vld [vmem:[%s6347_s1 + $0x94] sm:$0xf]  ;;  %v3937_v12 = vor.u32 %v4640_v2, %v3934_v3 }
  0x1c   : > { %1241 = vmatpush.bf16.msra.mxu3 %v3953_v50  ;;  %v3798_v10 = vld [vmem:[%s6347_s1 + $0x98] sm:$0xf0]  ;;  %v3924_v11 = vld [vmem:[%s6347_s1 + $0x10] sm:$0xf]  ;;  %v4639_v13 = vld [vmem:[%s6347_s1 + $0x14] sm:$0xf0]  ;;  %v3797_v18 = vor.u32 %v4670_v6, %v3796_v5 }
  0x1d   : > { %v4638_v14 = vld [vmem:[%s6347_s1 + $0x14] sm:$0xf]  ;;  %p376_p3 = scmp.lt.s32.totalorder %s3703_s18, 1  ;;  %v3926_v15 = vld [vmem:[%s6347_s1 + $0x18] sm:$0xf0]  ;;  %v3801_v21 = vor.u32 %v4669_v9, %v3798_v10  ;;  %v3925_v22 = vor.u32 %v4639_v13, %v3924_v11  ;;  %vm1348_vm1 = vcmask 1046528  }
  0x1e   : > { %799 = vmatpush.bf16.msra.mxu0 %v3813_v56  ;;  %v3788_v16 = vld [vmem:[%s6347_s1 + $0x80] sm:$0xf]  ;;  %v4668_v17 = vld [vmem:[%s6347_s1 + $0x84] sm:$0xf0]  ;;  %v4667_v19 = vld [vmem:[%s6347_s1 + $0x84] sm:$0xf]  ;;  %v3929_v24 = vor.u32 %v4638_v14, %v3926_v15 }
  0x1f   : > { %888 = vmatpush.bf16.msra.mxu1 %v3817_v57  ;;  %1153 = vmatpush.bf16.msra.mxu2 %v3941_v58  ;;  %v3790_v20 = vld [vmem:[%s6347_s1 + $0x88] sm:$0xf0]  ;;  %s6409_s18 = smov (!%p376_p3, %s3703_s18), 1  ;;  %v3916_v23 = vld [vmem:[%s6347_s1] sm:$0xf]  ;;  %v3789_v30 = vor.u32 %v4668_v17, %v3788_v16 }
  0x20   : > { %1242 = vmatpush.bf16.msra.mxu3 %v3945_v62  ;;  %v4637_v25 = vld [vmem:[%s6347_s1 + $0x4] sm:$0xf0]  ;;  %v4636_v26 = vld [vmem:[%s6347_s1 + $0x4] sm:$0xf]  ;;  %s4818_s26 = smul.u32 132, %s6409_s18  ;;  %v3793_v33 = vor.u32 %v4667_v19, %v3790_v20  ;;  %s3709_s20 = sshll.u32 %s6409_s18, 3 }
  0x21   : > { %v3918_v27 = vld [vmem:[%s6347_s1 + $0x8] sm:$0xf0]  ;;  %v4052_v28 = vld [vmem:[%s6347_s1 + $0x170] sm:$0xf]  ;;  %v4698_v29 = vld [vmem:[%s6347_s1 + $0x174] sm:$0xf0]  ;;  %v3917_v34 = vor.u32 %v4637_v25, %v3916_v23  ;;  %s384_s24 = scalar_lea.vmem %s6357_s11, %s3709_s20 }
  0x22   : > { %800 = vmatpush.bf16.msra.mxu0 %v3805_v4  ;;  %s5116_s16 = scalar_lea.vmem %s6346_s0, %s4818_s26  ;;  %v4697_v31 = vld [vmem:[%s6347_s1 + $0x174] sm:$0xf]  ;;  %v4054_v32 = vld [vmem:[%s6347_s1 + $0x178] sm:$0xf0]  ;;  %v3921_v37 = vor.u32 %v4636_v26, %v3918_v27  ;;  %v4053_v40 = vor.u32 %v4698_v29, %v4052_v28  ;;  %vm566_vm0 = vsmask.f32 7424 }
  0x23   : > { %889 = vmatpush.bf16.msra.mxu1 %v3809_v7  ;;  %1154 = vmatpush.bf16.msra.mxu2 %v3933_v8  ;;  %v4812_v35 = vld [vmem:[%s5116_s16] sm:$0xff]   ;;  %v5126_v36 = vld [vmem:[%s5116_s16 + $0x8] sm:$0xff]  ;;  %v4057_v42 = vor.u32 %v4697_v31, %v4054_v32  ;;  %v5132_v48 = vld [vmem:[%s5116_s16 + $0x10] sm:$0xff] }
  0x24   : > { %1243 = vmatpush.bf16.msra.mxu3 %v3937_v12  ;;  %v568_v38 = vshrl.u32 %v4812_v35, 16  ;;  %v570_v39 = vshll.u32 %v4812_v35, 16  ;;  %v575_v41 = vshll.u32 %v5126_v36, 16  ;;  %v4620_v44 = vld [vmem:[%s5116_s16] sm:$0xff]  ;;  %v4696_v50 = vld [vmem:[%s6347_s1 + $0x164] sm:$0xf0] }
  0x25   : > { %v4044_v49 = vld [vmem:[%s6347_s1 + $0x160] sm:$0xf]  ;;  %v4695_v51 = vld [vmem:[%s6347_s1 + $0x164] sm:$0xf]  ;;  %v4046_v53 = vld [vmem:[%s6347_s1 + $0x168] sm:$0xf0] }
  0x26   : > { %801 = vmatpush.bf16.msra.mxu0 %v3797_v18  ;;  %v572_v43 = vrot.slane %v570_v39, 1  ;;  %v577_v45 = vrot.slane %v575_v41, 1  ;;  %v4045_v52 = vor.u32 %v4696_v50, %v4044_v49  ;;  %v4049_v54 = vor.u32 %v4695_v51, %v4046_v53  ;;  %v4621_v59 = vld [vmem:[%s5116_s16 + $0x8] sm:$0xff]  ;;  %v5151_v61 = vld [vmem:[%s5116_s16 + $0x18] sm:$0xff]  ;;  %v4622_v2 = vld [vmem:[%s5116_s16 + $0x10] sm:$0xff] }
  0x27   : > { %890 = vmatpush.bf16.msra.mxu1 %v3801_v21  ;;  %1155 = vmatpush.bf16.msra.mxu2 %v3925_v22  ;;  %v579_v55 = vshrl.u32 %v5126_v36, 16  ;;  %v583_v56 = vshll.u32 %v5132_v48, 16  ;;  %v587_v62 = vshrl.u32 %v5132_v48, 16  ;;  %v591_v63 = vshll.u32 %v5151_v61, 16  ;;  %v5158_v4 = vld [vmem:[%s5116_s16 + $0x20] sm:$0xff]  ;;  %v4623_v15 = vld [vmem:[%s5116_s16 + $0x18] sm:$0xff] }
  0x28   : > { %1244 = vmatpush.bf16.msra.mxu3 %v3929_v24  ;;  %v573_v46 = vor.u32 %v572_v43, %v568_v38  ;;  %v4036_v5 = vld [vmem:[%s6347_s1 + $0x150] sm:$0xf]  ;;  %v4694_v6 = vld [vmem:[%s6347_s1 + $0x154] sm:$0xf0]  ;;  %v4693_v7 = vld [vmem:[%s6347_s1 + $0x154] sm:$0xf] }
  0x29   : > { %v581_v57 = vor.u32 %v579_v55, %v577_v45  ;;  %v585_v58 = vrot.slane %v583_v56, 1  ;;  %v593_v1 = vrot.slane %v591_v63, 1  ;;  %v4037_v8 = vor.u32 %v4694_v6, %v4036_v5  ;;  %v4038_v9 = vld [vmem:[%s6347_s1 + $0x158] sm:$0xf0]  ;;  %v5177_v17 = vld [vmem:[%s5116_s16 + $0x28] sm:$0xff]  ;;  %v4624_v22 = vld [vmem:[%s5116_s16 + $0x20] sm:$0xff] }
  0x2a   : > { %802 = vmatpush.bf16.msra.mxu0 %v3789_v30  ;;  %v578_v47 = vsel %vm566_vm0, %v573_v46, %v577_v45  ;;  %v4041_v10 = vor.u32 %v4693_v7, %v4038_v9  ;;  %v595_v11 = vshrl.u32 %v5151_v61, 16  ;;  %v599_v12 = vshll.u32 %v5158_v4, 16  ;;  %v5184_v24 = vld [vmem:[%s5116_s16 + $0x30] sm:$0xff]  ;;  %v4028_v25 = vld [vmem:[%s6347_s1 + $0x140] sm:$0xf]  ;;  %v4625_v35 = vld [vmem:[%s5116_s16 + $0x28] sm:$0xff] }
  0x2b   : > { %891 = vmatpush.bf16.msra.mxu1 %v3793_v33  ;;  %1156 = vmatpush.bf16.msra.mxu2 %v3917_v34  ;;  %v586_v60 = vsel %vm566_vm0, %v581_v57, %v585_v58  ;;  %v589_v0 = vor.u32 %v587_v62, %v585_v58  ;;  %v603_v18 = vshrl.u32 %v5158_v4, 16  ;;  %v607_v19 = vshll.u32 %v5177_v17, 16  ;;  %v4692_v26 = vld [vmem:[%s6347_s1 + $0x144] sm:$0xf0]  ;;  %v4691_v27 = vld [vmem:[%s6347_s1 + $0x144] sm:$0xf] }
  0x2c   : > { %1245 = vmatpush.bf16.msra.mxu3 %v3921_v37  ;;  %v597_v13 = vor.u32 %v595_v11, %v593_v1  ;;  %v601_v14 = vrot.slane %v599_v12, 1  ;;  %v4029_v28 = vor.u32 %v4692_v26, %v4028_v25  ;;  %v4030_v29 = vld [vmem:[%s6347_s1 + $0x148] sm:$0xf0]  ;;  %v611_v31 = vshrl.u32 %v5177_v17, 16  ;;  %v5203_v38 = vld [vmem:[%s5116_s16 + $0x38] sm:$0xff]  ;;  %v4626_v43 = vld [vmem:[%s5116_s16 + $0x30] sm:$0xff] }
  0x2d   : > { %803 = vmatmul.bf16.vlgmr.msra.gmra.mxu0 %v578_v47  ;;  %v594_v3 = vsel %vm566_vm0, %v589_v0, %v593_v1  ;;  %v609_v21 = vrot.slane %v607_v19, 1  ;;  %v4033_v30 = vor.u32 %v4691_v27, %v4030_v29  ;;  %v615_v32 = vshll.u32 %v5184_v24, 16  ;;  %v5210_v45 = vld [vmem:[%s5116_s16 + $0x40] sm:$0xff]  ;;  %v4020_v46 = vld [vmem:[%s6347_s1 + $0x130] sm:$0xf]  ;;  %v4627_v57 = vld [vmem:[%s5116_s16 + $0x38] sm:$0xff] }
  0x2e   : > { %1478 = vmatpush.bf16.msrb.mxu0 %v4053_v40  ;;  %1157 = vmatmul.bf16.vlgmr.msra.gmra.mxu2 %v4620_v44  ;;  %v602_v16 = vsel %vm566_vm0, %v597_v13, %v601_v14  ;;  %v605_v20 = vor.u32 %v603_v18, %v601_v14  ;;  %v619_v39 = vshrl.u32 %v5184_v24, 16  ;;  %v623_v40 = vshll.u32 %v5203_v38, 16  ;;  %v4689_v49 = vld [vmem:[%s6347_s1 + $0x134] sm:$0xf]  ;;  %v4022_v51 = vld [vmem:[%s6347_s1 + $0x138] sm:$0xf0] }
  0x2f   : > { %1567 = vmatpush.bf16.msrb.mxu1 %v4057_v42  ;;  %1246 = vmatmul.bf16.vlgmr.msra.gmra.mxu3 %v4620_v44  ;;  %v613_v33 = vor.u32 %v611_v31, %v609_v21  ;;  %v617_v34 = vrot.slane %v615_v32, 1  ;;  %v627_v53 = vshrl.u32 %v5203_v38, 16  ;;  %v4628_v1 = vld [vmem:[%s5116_s16 + $0x40] sm:$0xff]  ;;  %v5236_v6 = vld [vmem:[%s5116_s16 + $0x50] sm:$0xff]  ;;  %v4014_v12 = vld [vmem:[%s6347_s1 + $0x128] sm:$0xf0] }
  0x30   : > { %892 = vmatmul.bf16.vlgmr.msra.gmra.mxu1 %v578_v47  ;;  %v610_v23 = vsel %vm566_vm0, %v605_v20, %v609_v21  ;;  %v625_v42 = vrot.slane %v623_v40, 1  ;;  %v4690_v47 = vld [vmem:[%s6347_s1 + $0x134] sm:$0xf0]  ;;  %v4012_v7 = vld [vmem:[%s6347_s1 + $0x120] sm:$0xf]  ;;  %v647_v21 = vshll.u32 %v5236_v6, 16 }
  0x31   : > { %v618_v37 = vsel %vm566_vm0, %v613_v33, %v617_v34  ;;  %v621_v41 = vor.u32 %v619_v39, %v617_v34  ;;  %v4021_v50 = vor.u32 %v4690_v47, %v4020_v46  ;;  %v4687_v9 = vld [vmem:[%s6347_s1 + $0x124] sm:$0xf]  ;;  %v4629_v27 = vld [vmem:[%s5116_s16 + $0x48] sm:$0xff]  ;;  %v5263_v33 = vld [vmem:[%s5116_s16 + $0x58] sm:$0xff] }
  0x32   : > { %1479 = vmatpush.bf16.msrb.mxu0 %v4045_v52  ;;  %v4025_v52 = vor.u32 %v4689_v49, %v4022_v51  ;;  %v629_v55 = vor.u32 %v627_v53, %v625_v42  ;;  %v4017_v14 = vor.u32 %v4687_v9, %v4014_v12  ;;  %v659_v9 = vshrl.u32 %v5263_v33, 16 }
  0x33   : > { %1568 = vmatpush.bf16.msrb.mxu1 %v4049_v54  ;;  %v626_v44 = vsel %vm566_vm0, %v621_v41, %v625_v42  ;;  %v631_v54 = vshll.u32 %v5210_v45, 16  ;;  %v651_v42 = vshrl.u32 %v5236_v6, 16 }
  0x35   : > { %v633_v56 = vrot.slane %v631_v54, 1 }
  0x36   : > { %1480 = vmatpush.bf16.msrb.mxu0 %v4037_v8  ;;  %v4688_v8 = vld [vmem:[%s6347_s1 + $0x124] sm:$0xf0] }
  0x37   : > { %1569 = vmatpush.bf16.msrb.mxu1 %v4041_v10  ;;  %v634_v58 = vsel %vm566_vm0, %v629_v55, %v633_v56  ;;  %v4013_v11 = vor.u32 %v4688_v8, %v4012_v7 }
  0x3a   : > { %1481 = vmatpush.bf16.msrb.mxu0 %v4029_v28 }
  0x3b   : > { %1570 = vmatpush.bf16.msrb.mxu1 %v4033_v30 }
  0x3d   : > { %808 = vmatmul.bf16.gmra.mxu0 %v586_v60 }
  0x3e   : > { %1162 = vmatmul.bf16.gmra.mxu2 %v4621_v59  ;;  %1482 = vmatpush.bf16.msrb.mxu0 %v4021_v50  ;;  %v4630_v50 = vld [vmem:[%s5116_s16 + $0x50] sm:$0xff] }
  0x3f   : > { %1251 = vmatmul.bf16.gmra.mxu3 %v4621_v59  ;;  %1571 = vmatpush.bf16.msrb.mxu1 %v4025_v52  ;;  %v5229_v59 = vld [vmem:[%s5116_s16 + $0x48] sm:$0xff] }
  0x40   : > { %897 = vmatmul.bf16.gmra.mxu1 %v586_v60  ;;  %v635_v60 = vshrl.u32 %v5210_v45, 16  ;;  %v639_v62 = vshll.u32 %v5229_v59, 16  ;;  %v643_v20 = vshrl.u32 %v5229_v59, 16 }
  0x42   : > { %v637_v63 = vor.u32 %v635_v60, %v633_v56  ;;  %v641_v0 = vrot.slane %v639_v62, 1  ;;  %1483 = vmatpush.bf16.msrb.mxu0 %v4013_v11  ;;  %v5278_v56 = vld [vmem:[%s5116_s16 + $0x60] sm:$0xff]  ;;  %v4685_v60 = vld [vmem:[%s6347_s1 + $0x114] sm:$0xf] }
  0x43   : > { %1572 = vmatpush.bf16.msrb.mxu1 %v4017_v14 }
  0x44   : > { %v642_v5 = vsel %vm566_vm0, %v637_v63, %v641_v0 }
  0x4d   : > { %813 = vmatmul.bf16.gmra.mxu0 %v594_v3 }
  0x4e   : > { %1167 = vmatmul.bf16.gmra.mxu2 %v4622_v2 }
  0x4f   : > { %1256 = vmatmul.bf16.gmra.mxu3 %v4622_v2 }
  0x50   : > { %902 = vmatmul.bf16.gmra.mxu1 %v594_v3 }
  0x5d   : > { %818 = vmatmul.bf16.gmra.mxu0 %v602_v16 }
  0x5e   : > { %1172 = vmatmul.bf16.gmra.mxu2 %v4623_v15 }
  0x5f   : > { %1261 = vmatmul.bf16.gmra.mxu3 %v4623_v15 }
  0x60   : > { %907 = vmatmul.bf16.gmra.mxu1 %v602_v16 }
  0x6d   : > { %823 = vmatmul.bf16.gmra.mxu0 %v610_v23 }
  0x6e   : > { %1177 = vmatmul.bf16.gmra.mxu2 %v4624_v22 }
  0x6f   : > { %1266 = vmatmul.bf16.gmra.mxu3 %v4624_v22  ;;  %v645_v22 = vor.u32 %v643_v20, %v641_v0  ;;  %v4006_v0 = vld [vmem:[%s6347_s1 + $0x118] sm:$0xf0] }
  0x70   : > { %912 = vmatmul.bf16.gmra.mxu1 %v610_v23  ;;  %v649_v23 = vrot.slane %v647_v21, 1 }
  0x72   : > { %v650_v32 = vsel %vm566_vm0, %v645_v22, %v649_v23 }
  0x7d   : > { %828 = vmatmul.bf16.gmra.mxu0 %v618_v37 }
  0x7e   : > { %1182 = vmatmul.bf16.gmra.mxu2 %v4625_v35 }
  0x7f   : > { %1271 = vmatmul.bf16.gmra.mxu3 %v4625_v35 }
  0x80   : > { %917 = vmatmul.bf16.gmra.mxu1 %v618_v37 }
  0x8d   : > { %833 = vmatmul.bf16.gmra.mxu0 %v626_v44 }
  0x8e   : > { %1187 = vmatmul.bf16.gmra.mxu2 %v4626_v43 }
  0x8f   : > { %1276 = vmatmul.bf16.gmra.mxu3 %v4626_v43  ;;  %v655_v43 = vshll.u32 %v5263_v33, 16 }
  0x90   : > { %922 = vmatmul.bf16.gmra.mxu1 %v626_v44  ;;  %v653_v44 = vor.u32 %v651_v42, %v649_v23 }
  0x91   : > { %v657_v46 = vrot.slane %v655_v43, 1 }
  0x93   : > { %v658_v55 = vsel %vm566_vm0, %v653_v44, %v657_v46  ;;  %v661_v11 = vor.u32 %v659_v9, %v657_v46  ;;  %v4632_v46 = vld [vmem:[%s5116_s16 + $0x60] sm:$0xff] }
  0x9d   : > { %838 = vmatmul.bf16.gmra.mxu0 %v634_v58 }
  0x9e   : > { %1192 = vmatmul.bf16.gmra.mxu2 %v4627_v57 }
  0x9f   : > { %1281 = vmatmul.bf16.gmra.mxu3 %v4627_v57  ;;  %v4004_v57 = vld [vmem:[%s6347_s1 + $0x110] sm:$0xf] }
  0xa0   : > { %927 = vmatmul.bf16.gmra.mxu1 %v634_v58  ;;  %v4686_v58 = vld [vmem:[%s6347_s1 + $0x114] sm:$0xf0] }
  0xa1   : > { %v4005_v63 = vor.u32 %v4686_v58, %v4004_v57  ;;  %v3996_v57 = vld [vmem:[%s6347_s1 + $0x100] sm:$0xf]  ;;  %v4684_v58 = vld [vmem:[%s6347_s1 + $0x104] sm:$0xf0] }
  0xa3   : > { %1484 = vmatpush.bf16.msrb.mxu0 %v4005_v63  ;;  %v3998_v63 = vld [vmem:[%s6347_s1 + $0x108] sm:$0xf0] }
  0xaa   : > { %v804_v2 = vpop.f32.mrf.mxu0 }
  0xad   : > { %v893_v3 = vpop.f32.mrf.mxu1  ;;  %843 = vmatmul.bf16.gmra.mxu0 %v642_v5 }
  0xae   : > { %1197 = vmatmul.bf16.gmra.mxu2 %v4628_v1 }
  0xaf   : > { %1286 = vmatmul.bf16.gmra.mxu3 %v4628_v1 }
  0xb0   : > { %932 = vmatmul.bf16.gmra.mxu1 %v642_v5 }
  0xb1   : > { %v1158_v10 = vpop.f32.mrf.mxu2 }
  0xb2   : > { %v5250_v13 = vadd.f32 %v1158_v10, %v804_v2  ;;  %v1247_v15 = vpop.f32.mrf.mxu3  ;;  %v806_v18 = vpop.f32.mrf.mxu0  ;;  %v4009_v2 = vor.u32 %v4685_v60, %v4006_v0  ;;  %v663_v10 = vshll.u32 %v5278_v56, 16  ;;  %v4683_v60 = vld [vmem:[%s6347_s1 + $0x104] sm:$0xf] }
  0xb3   : > { %v5252_v16 = vadd.f32 %v1247_v15, %v893_v3  ;;  %v4001_v0 = vor.u32 %v4683_v60, %v3998_v63  ;;  %v4635_v63 = vld [vmem:[%s5116_s16 + $0x78] sm:$0xff] }
  0xb4   : > { %1573 = vmatpush.bf16.msrb.mxu1 %v4009_v2  ;;  %v665_v12 = vrot.slane %v663_v10, 1 }
  0xb5   : > { %v895_v19 = vpop.f32.mrf.mxu1 }
  0xb6   : > { %v666_v23 = vsel %vm566_vm0, %v661_v11, %v665_v12  ;;  %v4633_v11 = vld [vmem:[%s5116_s16 + $0x68] sm:$0xff] }
  0xb8   : > { %1574 = vmatpush.bf16.msrb.mxu1 %v4001_v0 }
  0xb9   : > { %v1160_v25 = vpop.f32.mrf.mxu2 }
  0xba   : > { %v5256_v26 = vadd.f32 %v1160_v25, %v806_v18  ;;  %v1249_v28 = vpop.f32.mrf.mxu3  ;;  %v809_v30 = vpop.f32.mrf.mxu0  ;;  %v4631_v18 = vld [vmem:[%s5116_s16 + $0x58] sm:$0xff]  ;;  %v5305_v25 = vld [vmem:[%s5116_s16 + $0x68] sm:$0xff] }
  0xbb   : > { %v5259_v29 = vadd.f32 %v1249_v28, %v895_v19 }
  0xbd   : > { %v898_v31 = vpop.f32.mrf.mxu1  ;;  %848 = vmatmul.bf16.gmra.mxu0 %v650_v32 }
  0xbe   : > { %1202 = vmatmul.bf16.gmra.mxu2 %v4629_v27 }
  0xbf   : > { %1291 = vmatmul.bf16.gmra.mxu3 %v4629_v27 }
  0xc0   : > { %937 = vmatmul.bf16.gmra.mxu1 %v650_v32 }
  0xc1   : > { %v1163_v34 = vpop.f32.mrf.mxu2 }
  0xc2   : > { %v5265_v35 = vadd.f32 %v1163_v34, %v809_v30  ;;  %v1252_v37 = vpop.f32.mrf.mxu3  ;;  %v811_v40 = vpop.f32.mrf.mxu0 }
  0xc3   : > { %v5267_v39 = vadd.f32 %v1252_v37, %v898_v31  ;;  %v667_v37 = vshrl.u32 %v5278_v56, 16 }
  0xc5   : > { %v900_v41 = vpop.f32.mrf.mxu1 }
  0xc9   : > { %v1165_v47 = vpop.f32.mrf.mxu2 }
  0xca   : > { %v5271_v49 = vadd.f32 %v1165_v47, %v811_v40  ;;  %v1254_v51 = vpop.f32.mrf.mxu3  ;;  %v814_v53 = vpop.f32.mrf.mxu0  ;;  %v671_v40 = vshll.u32 %v5305_v25, 16 }
  0xcb   : > { %v5274_v52 = vadd.f32 %v1254_v51, %v900_v41  ;;  %v669_v41 = vor.u32 %v667_v37, %v665_v12  ;;  %v4634_v37 = vld [vmem:[%s5116_s16 + $0x70] sm:$0xff] }
  0xcc   : > { %v673_v42 = vrot.slane %v671_v40, 1 }
  0xcd   : > { %v903_v54 = vpop.f32.mrf.mxu1  ;;  %853 = vmatmul.bf16.gmra.mxu0 %v658_v55 }
  0xce   : > { %1207 = vmatmul.bf16.gmra.mxu2 %v4630_v50 }
  0xcf   : > { %1296 = vmatmul.bf16.gmra.mxu3 %v4630_v50 }
  0xd0   : > { %942 = vmatmul.bf16.gmra.mxu1 %v658_v55  ;;  %v5324_v55 = vld [vmem:[%s5116_s16 + $0x70] sm:$0xff] }
  0xd1   : > { %v1168_v62 = vpop.f32.mrf.mxu2 }
  0xd2   : > { %v5292_v1 = vadd.f32 %v1168_v62, %v814_v53  ;;  %v1257_v3 = vpop.f32.mrf.mxu3  ;;  %v816_v7 = vpop.f32.mrf.mxu0  ;;  %v3997_v62 = vor.u32 %v4684_v58, %v3996_v57 }
  0xd3   : > { %v5294_v5 = vadd.f32 %v1257_v3, %v903_v54  ;;  %v674_v54 = vsel %vm566_vm0, %v669_v41, %v673_v42 }
  0xd4   : > { %1485 = vmatpush.bf16.msrb.mxu0 %v3997_v62 }
  0xd5   : > { %v905_v8 = vpop.f32.mrf.mxu1 }
  0xd9   : > { %v1170_v14 = vpop.f32.mrf.mxu2 }
  0xda   : > { %v5298_v15 = vadd.f32 %v1170_v14, %v816_v7  ;;  %v1259_v19 = vpop.f32.mrf.mxu3  ;;  %v819_v21 = vpop.f32.mrf.mxu0  ;;  %v675_v7 = vshrl.u32 %v5305_v25, 16 }
  0xdb   : > { %v5301_v20 = vadd.f32 %v1259_v19, %v905_v8  ;;  %v679_v8 = vshll.u32 %v5324_v55, 16  ;;  %v5351_v19 = vld [vmem:[%s5116_s16 + $0x78] sm:$0xff] }
  0xdc   : > { %v677_v9 = vor.u32 %v675_v7, %v673_v42  ;;  %v691_v57 = vshrl.u32 %v5351_v19, 16 }
  0xdd   : > { %v908_v22 = vpop.f32.mrf.mxu1  ;;  %858 = vmatmul.bf16.gmra.mxu0 %v666_v23  ;;  %v681_v10 = vrot.slane %v679_v8, 1 }
  0xde   : > { %1212 = vmatmul.bf16.gmra.mxu2 %v4631_v18 }
  0xdf   : > { %1301 = vmatmul.bf16.gmra.mxu3 %v4631_v18  ;;  %v682_v18 = vsel %vm566_vm0, %v677_v9, %v681_v10  ;;  %v4815_v9 = vld [vmem:[%s5116_s16] sm:$0xf0] }
  0xe0   : > { %947 = vmatmul.bf16.gmra.mxu1 %v666_v23  ;;  %v683_v23 = vshrl.u32 %v5324_v55, 16 }
  0xe1   : > { %v1173_v27 = vpop.f32.mrf.mxu2 }
  0xe2   : > { %v5307_v28 = vadd.f32 %v1173_v27, %v819_v21  ;;  %v1262_v30 = vpop.f32.mrf.mxu3  ;;  %v821_v32 = vpop.f32.mrf.mxu0  ;;  %v687_v27 = vshll.u32 %v5351_v19, 16 }
  0xe3   : > { %v5309_v31 = vadd.f32 %v1262_v30, %v908_v22  ;;  %v685_v30 = vor.u32 %v683_v23, %v681_v10  ;;  %v4816_v10 = vld [vmem:[%s5116_s16] sm:$0xe] }
  0xe4   : > { %v4817_v23 = vor.u32 %v4816_v10, %v4815_v9  ;;  %v1352_v9 = vrot.slane %v5132_v48, 1  ;;  %v4728_v48 = vld [vmem:[%s6349_s3 + $0xe4] sm:$0xf0] }
  0xe5   : > { %v910_v34 = vpop.f32.mrf.mxu1 }
  0xe9   : > { %v1175_v43 = vpop.f32.mrf.mxu2 }
  0xea   : > { %v5313_v44 = vadd.f32 %v1175_v43, %v821_v32  ;;  %v1264_v47 = vpop.f32.mrf.mxu3  ;;  %v5318_v51 = vpop.f32.mrf.mxu0  ;;  %v689_v32 = vrot.slane %v687_v27, 1  ;;  %v4132_v27 = vld [vmem:[%s6349_s3 + $0xf0] sm:$0xf] }
  0xeb   : > { %v5316_v50 = vadd.f32 %v1264_v47, %v910_v34  ;;  %v465_v34 = vld [vmem:[%s5116_s16 + $0x80] sm:$0x1] }
  0xec   : > { %v690_v42 = vsel %vm566_vm0, %v685_v30, %v689_v32  ;;  %v548_v43 = vunpack.c.l.b16 %v465_v34  ;;  %v693_v60 = vor.u32 %v691_v57, %v689_v32  ;;  %v4730_v30 = vld [vmem:[%s6349_s3 + $0xf4] sm:$0xf0]  ;;  %v4729_v32 = vld [vmem:[%s6349_s3 + $0xf4] sm:$0xf]  ;;  %v1350_v57 = vrot.slane %v5126_v36, 1 }
  0xed   : > { %v5320_v53 = vpop.f32.mrf.mxu1  ;;  %863 = vmatmul.bf16.gmra.mxu0 %v674_v54  ;;  %v4133_v34 = vor.u32 %v4730_v30, %v4132_v27 }
  0xee   : > { %1217 = vmatmul.bf16.gmra.mxu2 %v4632_v46  ;;  %v1353_v36 = vsel %vm1348_vm1, %v1350_v57, %v1352_v9 }
  0xef   : > { %1306 = vmatmul.bf16.gmra.mxu3 %v4632_v46  ;;  %v5366_v46 = vpack.c.b16 %v548_v43, %v548_v43  ;;  %2207 = vmatpush.bf16.msrb.mxu2 %v4133_v34  ;;  %v1349_v43 = vrot.slane %v4817_v23, 1  ;;  %v4727_v34 = vld [vmem:[%s6349_s3 + $0xe4] sm:$0xf] }
  0xf0   : > { %952 = vmatmul.bf16.gmra.mxu1 %v674_v54 }
  0xf1   : > { %v695_v58 = vshll.u32 %v5366_v46, 16 }
  0xf2   : > { %v5338_v2 = vpop.f32.mrf.mxu0 }
  0xf3   : > { %v697_v62 = vrot.slane %v695_v58, 1 }
  0xf5   : > { %v5340_v3 = vpop.f32.mrf.mxu1  ;;  %v698_v8 = vsel %vm566_vm0, %v693_v60, %v697_v62  ;;  %v1351_v62 = vsel %vm1348_vm1, %v1349_v43, %v1350_v57  ;;  %v1354_v57 = vrot.slane %v5151_v61, 1 }
  0xfa   : > { %v5345_v12 = vpop.f32.mrf.mxu0 }
  0xfd   : > { %v5347_v14 = vpop.f32.mrf.mxu1  ;;  %868 = vmatmul.bf16.gmra.mxu0 %v682_v18 }
  0xfe   : > { %1222 = vmatmul.bf16.gmra.mxu2 %v4633_v11 }
  0xff   : > { %1311 = vmatmul.bf16.gmra.mxu3 %v4633_v11 }
 0x100   : > { %957 = vmatmul.bf16.gmra.mxu1 %v682_v18 }
 0x102   : > { %v5353_v21 = vpop.f32.mrf.mxu0 }
 0x105   : > { %v5355_v22 = vpop.f32.mrf.mxu1 }
 0x10a   : > { %v5361_v40 = vpop.f32.mrf.mxu0 }
 0x10d   : > { %v5363_v41 = vpop.f32.mrf.mxu1  ;;  %873 = vmatmul.bf16.gmra.mxu0 %v690_v42 }
 0x10e   : > { %1227 = vmatmul.bf16.gmra.mxu2 %v4634_v37 }
 0x10f   : > { %1316 = vmatmul.bf16.gmra.mxu3 %v4634_v37  ;;  %v4134_v37 = vld [vmem:[%s6349_s3 + $0xf8] sm:$0xf0] }
 0x110   : > { %962 = vmatmul.bf16.gmra.mxu1 %v690_v42  ;;  %v4137_v42 = vor.u32 %v4729_v32, %v4134_v37  ;;  %v4124_v32 = vld [vmem:[%s6349_s3 + $0xe0] sm:$0xf] }
 0x111   : > { %v4125_v37 = vor.u32 %v4728_v48, %v4124_v32  ;;  %v1356_v48 = vrot.slane %v5158_v4, 1  ;;  %v4726_v4 = vld [vmem:[%s6349_s3 + $0xd4] sm:$0xf0] }
 0x112   : > { %v5368_v47 = vpop.f32.mrf.mxu0  ;;  %2256 = vmatpush.bf16.msrb.mxu3 %v4137_v42  ;;  %v4126_v42 = vld [vmem:[%s6349_s3 + $0xe8] sm:$0xf0] }
 0x113   : > { %v4129_v43 = vor.u32 %v4727_v34, %v4126_v42  ;;  %2208 = vmatpush.bf16.msrb.mxu2 %v4125_v37  ;;  %v1357_v61 = vsel %vm1348_vm1, %v1354_v57, %v1356_v48 }
 0x115   : > { %v5370_v54 = vpop.f32.mrf.mxu1 }
 0x116   : > { %2257 = vmatpush.bf16.msrb.mxu3 %v4129_v43 }
 0x11a   : > { %v5375_v0 = vpop.f32.mrf.mxu0 }
 0x11d   : > { %v5377_v7 = vpop.f32.mrf.mxu1  ;;  %878 = vmatmul.bf16.gmra.mxu0 %v698_v8 }
 0x11e   : > { %1232 = vmatmul.bf16.gmra.mxu2 %v4635_v63 }
 0x11f   : > { %1321 = vmatmul.bf16.gmra.mxu3 %v4635_v63 }
 0x120   : > { %967 = vmatmul.bf16.gmra.mxu1 %v698_v8 }
 0x122   : > { %v5382_v11 = vpop.f32.mrf.mxu0 }
 0x125   : > { %v5384_v18 = vpop.f32.mrf.mxu1 }
 0x12a   : > { %v5399_v58 = vpop.f32.mrf.mxu0 }
 0x12d   : > { %v5401_v60 = vpop.f32.mrf.mxu1  ;;  %1486 = vmatmul.bf16.vlgmr.msrb.gmra.mxu0 %v1351_v62 }
 0x130   : > { %1575 = vmatmul.bf16.vlgmr.msrb.gmra.mxu1 %v1351_v62 }
 0x132   : > { %v5404_v63 = vpop.f32.mrf.mxu0 }
 0x135   : > { %v5406_v8 = vpop.f32.mrf.mxu1 }
 0x13a   : > { %v5409_v10 = vpop.f32.mrf.mxu0 }
 0x13d   : > { %v5411_v23 = vpop.f32.mrf.mxu1  ;;  %1491 = vmatmul.bf16.gmra.mxu0 %v1353_v36 }
 0x13e   : > { %6358 = vst [vmem:[#allocation4_spill] sm:$0xff] %v5411_v23 }
 0x140   : > { %1580 = vmatmul.bf16.gmra.mxu1 %v1353_v36 }
 0x142   : > { %v5414_v27 = vpop.f32.mrf.mxu0 }
 0x143   : > { %6359 = vst [vmem:[#allocation5_spill] sm:$0xff] %v5414_v27 }
 0x145   : > { %v5416_v30 = vpop.f32.mrf.mxu1 }
 0x146   : > { %6360 = vst [vmem:[#allocation6_spill] sm:$0xff] %v5416_v30  ;;  %v1355_v30 = vsel %vm1348_vm1, %v1352_v9, %v1354_v57  ;;  %v4116_v9 = vld [vmem:[%s6349_s3 + $0xd0] sm:$0xf]  ;;  %v4118_v57 = vld [vmem:[%s6349_s3 + $0xd8] sm:$0xf0] }
 0x147   : > { %v4117_v43 = vor.u32 %v4726_v4, %v4116_v9  ;;  %v1360_v4 = vrot.slane %v5184_v24, 1  ;;  %v4724_v24 = vld [vmem:[%s6349_s3 + $0xc4] sm:$0xf0] }
 0x149   : > { %2209 = vmatpush.bf16.msrb.mxu2 %v4117_v43 }
 0x14a   : > { %v5431_v62 = vpop.f32.mrf.mxu0 }
 0x14d   : > { %v5433_v36 = vpop.f32.mrf.mxu1  ;;  %1496 = vmatmul.bf16.gmra.mxu0 %v1355_v30 }
 0x150   : > { %1585 = vmatmul.bf16.gmra.mxu1 %v1355_v30  ;;  %v4725_v30 = vld [vmem:[%s6349_s3 + $0xd4] sm:$0xf] }
 0x152   : > { %v5436_v27 = vpop.f32.mrf.mxu0 }
 0x153   : > { %6361 = vst [vmem:[#allocation7_spill] sm:$0xff] %v5436_v27 }
 0x155   : > { %v5438_v32 = vpop.f32.mrf.mxu1 }
 0x156   : > { %6362 = vst [vmem:[#allocation8_spill] sm:$0xff] %v5438_v32 }
 0x15a   : > { %v5441_v23 = vpop.f32.mrf.mxu0 }
 0x15b   : > { %6363 = vst [vmem:[#allocation9_spill] sm:$0xff] %v5441_v23 }
 0x15d   : > { %v5443_v34 = vpop.f32.mrf.mxu1  ;;  %1501 = vmatmul.bf16.gmra.mxu0 %v1357_v61 }
 0x15e   : > { %6364 = vst [vmem:[#allocation10_spill] sm:$0xff] %v5443_v34 }
 0x160   : > { %1590 = vmatmul.bf16.gmra.mxu1 %v1357_v61  ;;  %v4121_v61 = vor.u32 %v4725_v30, %v4118_v57 }
 0x162   : > { %v5446_v37 = vpop.f32.mrf.mxu0  ;;  %2258 = vmatpush.bf16.msrb.mxu3 %v4121_v61 }
 0x163   : > { %6365 = vst [vmem:[#allocation11_spill] sm:$0xff] %v5446_v37 }
 0x165   : > { %v5448_v42 = vpop.f32.mrf.mxu1 }
 0x166   : > { %6366 = vst [vmem:[#allocation12_spill] sm:$0xff] %v5448_v42  ;;  %v1358_v42 = vrot.slane %v5177_v17, 1 }
 0x168   : > { %v1359_v23 = vsel %vm1348_vm1, %v1356_v48, %v1358_v42  ;;  %v1361_v17 = vsel %vm1348_vm1, %v1358_v42, %v1360_v4  ;;  %v4723_v48 = vld [vmem:[%s6349_s3 + $0xc4] sm:$0xf]  ;;  %v4110_v42 = vld [vmem:[%s6349_s3 + $0xc8] sm:$0xf0] }
 0x16a   : > { %v5463_v37 = vpop.f32.mrf.mxu0 }
 0x16b   : > { %6367 = vst [vmem:[#allocation13_spill] sm:$0xff] %v5463_v37 }
 0x16d   : > { %v5465_v34 = vpop.f32.mrf.mxu1  ;;  %1506 = vmatmul.bf16.gmra.mxu0 %v1359_v23 }
 0x16e   : > { %6368 = vst [vmem:[#allocation14_spill] sm:$0xff] %v5465_v34 }
 0x170   : > { %1595 = vmatmul.bf16.gmra.mxu1 %v1359_v23  ;;  %v4108_v23 = vld [vmem:[%s6349_s3 + $0xc0] sm:$0xf] }
 0x171   : > { %v4109_v61 = vor.u32 %v4724_v24, %v4108_v23  ;;  %v1364_v24 = vrot.slane %v5210_v45, 1 }
 0x172   : > { %v5468_v32 = vpop.f32.mrf.mxu0 }
 0x173   : > { %6369 = vst [vmem:[#allocation15_spill] sm:$0xff] %v5468_v32  ;;  %2210 = vmatpush.bf16.msrb.mxu2 %v4109_v61 }
 0x175   : > { %v5470_v9 = vpop.f32.mrf.mxu1 }
 0x176   : > { %6370 = vst [vmem:[#allocation16_spill] sm:$0xff] %v5470_v9 }
 0x17a   : > { %v5473_v27 = vpop.f32.mrf.mxu0 }
 0x17b   : > { %6371 = vst [vmem:[#allocation17_spill] sm:$0xff] %v5473_v27 }
 0x17d   : > { %v5475_v30 = vpop.f32.mrf.mxu1  ;;  %1511 = vmatmul.bf16.gmra.mxu0 %v1361_v17 }
 0x17e   : > { %6372 = vst [vmem:[#allocation18_spill] sm:$0xff] %v5475_v30 }
 0x180   : > { %1600 = vmatmul.bf16.gmra.mxu1 %v1361_v17  ;;  %v4113_v17 = vor.u32 %v4723_v48, %v4110_v42 }
 0x182   : > { %v5478_v43 = vpop.f32.mrf.mxu0  ;;  %2259 = vmatpush.bf16.msrb.mxu3 %v4113_v17 }
 0x183   : > { %6373 = vst [vmem:[#allocation19_spill] sm:$0xff] %v5478_v43 }
 0x185   : > { %v5480_v57 = vpop.f32.mrf.mxu1 }
 0x186   : > { %6374 = vst [vmem:[#allocation20_spill] sm:$0xff] %v5480_v57  ;;  %v1362_v57 = vrot.slane %v5203_v38, 1 }
 0x188   : > { %v1363_v27 = vsel %vm1348_vm1, %v1360_v4, %v1362_v57  ;;  %v1365_v38 = vsel %vm1348_vm1, %v1362_v57, %v1364_v24  ;;  %v1366_v4 = vrot.slane %v5229_v59, 1  ;;  %v4722_v59 = vld [vmem:[%s6349_s3 + $0xb4] sm:$0xf0] }
 0x18a   : > { %v5495_v43 = vpop.f32.mrf.mxu0  ;;  %v1367_v57 = vsel %vm1348_vm1, %v1364_v24, %v1366_v4  ;;  %v4102_v24 = vld [vmem:[%s6349_s3 + $0xb8] sm:$0xf0] }
 0x18b   : > { %6375 = vst [vmem:[#allocation21_spill] sm:$0xff] %v5495_v43 }
 0x18d   : > { %v5497_v30 = vpop.f32.mrf.mxu1  ;;  %1516 = vmatmul.bf16.gmra.mxu0 %v1363_v27 }
 0x18e   : > { %6376 = vst [vmem:[#allocation22_spill] sm:$0xff] %v5497_v30 }
 0x190   : > { %1605 = vmatmul.bf16.gmra.mxu1 %v1363_v27  ;;  %v1720_v27 = vld [vmem:[%s6348_s2] sm:$0x3] }
 0x191   : > { %v5518_v17 = vperm.slane %v1720_v27, 0  ;;  %v5520_v45 = vperm.slane %v1720_v27, 1  ;;  %v4721_v27 = vld [vmem:[%s6349_s3 + $0xb4] sm:$0xf] }
 0x192   : > { %v5500_v9 = vpop.f32.mrf.mxu0 }
 0x193   : > { %6377 = vst [vmem:[#allocation23_spill] sm:$0xff] %v5500_v9 }
 0x195   : > { %v5502_v23 = vpop.f32.mrf.mxu1 }
 0x196   : > { %6378 = vst [vmem:[#allocation24_spill] sm:$0xff] %v5502_v23 }
 0x19a   : > { %v5505_v32 = vpop.f32.mrf.mxu0 }
 0x19b   : > { %6379 = vst [vmem:[#allocation25_spill] sm:$0xff] %v5505_v32 }
 0x19d   : > { %v5507_v48 = vpop.f32.mrf.mxu1  ;;  %1521 = vmatmul.bf16.gmra.mxu0 %v1365_v38 }
 0x19e   : > { %6380 = vst [vmem:[#allocation26_spill] sm:$0xff] %v5507_v48 }
 0x1a0   : > { %1610 = vmatmul.bf16.gmra.mxu1 %v1365_v38 }
 0x1a2   : > { %v5510_v61 = vpop.f32.mrf.mxu0 }
 0x1a3   : > { %6381 = vst [vmem:[#allocation27_spill] sm:$0xff] %v5510_v61 }
 0x1a5   : > { %v5512_v42 = vpop.f32.mrf.mxu1 }
 0x1a6   : > { %6382 = vst [vmem:[#allocation28_spill] sm:$0xff] %v5512_v42  ;;  %v4100_v42 = vld [vmem:[%s6349_s3 + $0xb0] sm:$0xf] }
 0x1a7   : > { %v4101_v23 = vor.u32 %v4722_v59, %v4100_v42  ;;  %v4092_v42 = vld [vmem:[%s6349_s3 + $0xa0] sm:$0xf]  ;;  %v4276_v59 = vld [vmem:[%s6349_s3 + $0x170] sm:$0xf] }
 0x1a9   : > { %2211 = vmatpush.bf16.msrb.mxu2 %v4101_v23 }
 0x1aa   : > { %v1487_v32 = vpop.f32.mrf.mxu0 }
 0x1ab   : > { %v1656_v38 = vadd.f32 %v1487_v32, %v5250_v13  ;;  %v4105_v32 = vor.u32 %v4721_v27, %v4102_v24  ;;  %v4746_v27 = vld [vmem:[%s6349_s3 + $0x174] sm:$0xf0] }
 0x1ad   : > { %v1576_v48 = vpop.f32.mrf.mxu1  ;;  %v1726_v13 = vadd.f32 %v5518_v17, %v1656_v38  ;;  %1526 = vmatmul.bf16.gmra.mxu0 %v1367_v57  ;;  %2260 = vmatpush.bf16.msrb.mxu3 %v4105_v32  ;;  %v4720_v38 = vld [vmem:[%s6349_s3 + $0xa4] sm:$0xf0] }
 0x1ae   : > { %v1657_v61 = vadd.f32 %v1576_v48, %v5252_v16  ;;  %v4093_v24 = vor.u32 %v4720_v38, %v4092_v42  ;;  %v4718_v42 = vld [vmem:[%s6349_s3 + $0x94] sm:$0xf0]  ;;  %v4717_v38 = vld [vmem:[%s6349_s3 + $0x94] sm:$0xf] }
 0x1af   : > { %v1790_v48 = vmax.f32 %v1726_v13, 0.0  ;;  %v4277_v13 = vor.u32 %v4746_v27, %v4276_v59  ;;  %v5577_v59 = vpop.f32.mrf.mxu2 }
 0x1b0   : > { %v1727_v16 = vadd.f32 %v5520_v45, %v1657_v61  ;;  %1615 = vmatmul.bf16.gmra.mxu1 %v1367_v57  ;;  %v4719_v61 = vld [vmem:[%s6349_s3 + $0xa4] sm:$0xf]  ;;  %2212 = vmatpush.bf16.msrb.mxu2 %v4093_v24  ;;  %v4086_v24 = vld [vmem:[%s6349_s3 + $0x98] sm:$0xf0] }
 0x1b1   : > { %2668 = vmatpush.bf16.msra.mxu0 %v4277_v13  ;;  %v4089_v13 = vor.u32 %v4717_v38, %v4086_v24 }
 0x1b2   : > { %v1791_v9 = vmax.f32 %v1727_v16, 0.0  ;;  %v1489_v43 = vpop.f32.mrf.mxu0 }
 0x1b3   : > { %v1658_v23 = vadd.f32 %v1489_v43, %v5256_v26  ;;  %v4278_v26 = vld [vmem:[%s6349_s3 + $0x178] sm:$0xf0] }
 0x1b4   : > { %v1854_v30 = vmax.f32 %v1790_v48, %v1791_v9  ;;  %v1368_v9 = vrot.slane %v5236_v6, 1  ;;  %v4084_v48 = vld [vmem:[%s6349_s3 + $0x90] sm:$0xf] }
 0x1b5   : > { %v1578_v34 = vpop.f32.mrf.mxu1 }
 0x1b6   : > { %1886 = vst [vmem:[#allocation2] sm:$0xff] %v1854_v30  ;;  %v1659_v57 = vadd.f32 %v1578_v34, %v5259_v29  ;;  %v4745_v30 = vld [vmem:[%s6349_s3 + $0x174] sm:$0xf]  ;;  %v4094_v29 = vld [vmem:[%s6349_s3 + $0xa8] sm:$0xf0]  ;;  %v1728_v34 = vadd.f32 %v5518_v17, %v1658_v23  ;;  %v5579_v23 = vpop.f32.mrf.mxu3  ;;  %v1369_v37 = vsel %vm1348_vm1, %v1366_v4, %v1368_v9 }
 0x1b7   : > { %v4281_v16 = vor.u32 %v4745_v30, %v4278_v26  ;;  %v4097_v32 = vor.u32 %v4719_v61, %v4094_v29  ;;  %v4085_v61 = vor.u32 %v4718_v42, %v4084_v48  ;;  %v4078_v4 = vld [vmem:[%s6349_s3 + $0x88] sm:$0xf0] }
 0x1b8   : > { %v1729_v43 = vadd.f32 %v5520_v45, %v1659_v57  ;;  %v1792_v57 = vmax.f32 %v1728_v34, 0.0  ;;  %v4076_v34 = vld [vmem:[%s6349_s3 + $0x80] sm:$0xf] }
 0x1b9   : > { %2717 = vmatpush.bf16.msra.mxu1 %v4281_v16  ;;  %2261 = vmatpush.bf16.msrb.mxu3 %v4097_v32  ;;  %v4715_v16 = vld [vmem:[%s6349_s3 + $0x84] sm:$0xf] }
 0x1ba   : > { %v1793_v27 = vmax.f32 %v1729_v43, 0.0  ;;  %2213 = vmatpush.bf16.msrb.mxu2 %v4085_v61  ;;  %v1492_v26 = vpop.f32.mrf.mxu0  ;;  %v4716_v43 = vld [vmem:[%s6349_s3 + $0x84] sm:$0xf0]  ;;  %v4081_v38 = vor.u32 %v4715_v16, %v4078_v4  ;;  %v1370_v16 = vrot.slane %v5263_v33, 1 }
 0x1bb   : > { %v1660_v32 = vadd.f32 %v1492_v26, %v5265_v35  ;;  %v4077_v42 = vor.u32 %v4716_v43, %v4076_v34  ;;  %v5603_v35 = vpop.f32.mrf.mxu2 }
 0x1bc   : > { %v1855_v30 = vmax.f32 %v1792_v57, %v1793_v27 }
 0x1bd   : > { %v1581_v29 = vpop.f32.mrf.mxu1  ;;  %2262 = vmatpush.bf16.msrb.mxu3 %v4089_v13  ;;  %v1730_v57 = vadd.f32 %v5518_v17, %v1660_v32  ;;  %1531 = vmatmul.bf16.gmra.mxu0 %v1369_v37 }
 0x1be   : > { %1887 = vst [vmem:[#allocation2 + $0x8] sm:$0xff] %v1855_v30  ;;  %v1661_v48 = vadd.f32 %v1581_v29, %v5267_v39  ;;  %2214 = vmatpush.bf16.msrb.mxu2 %v4077_v42  ;;  %v5605_v39 = vpop.f32.mrf.mxu3 }
 0x1bf   : > { %v1794_v61 = vmax.f32 %v1730_v57, 0.0  ;;  %v1371_v57 = vsel %vm1348_vm1, %v1368_v9, %v1370_v16 }
 0x1c0   : > { %v1731_v27 = vadd.f32 %v5520_v45, %v1661_v48  ;;  %1620 = vmatmul.bf16.gmra.mxu1 %v1369_v37 }
 0x1c1   : > { %2263 = vmatpush.bf16.msrb.mxu3 %v4081_v38 }
 0x1c2   : > { %v1795_v24 = vmax.f32 %v1731_v27, 0.0  ;;  %v1494_v30 = vpop.f32.mrf.mxu0 }
 0x1c3   : > { %v1662_v29 = vadd.f32 %v1494_v30, %v5271_v49  ;;  %v5615_v27 = vpop.f32.mrf.mxu2 }
 0x1c4   : > { %v1856_v13 = vmax.f32 %v1794_v61, %v1795_v24 }
 0x1c5   : > { %v1583_v26 = vpop.f32.mrf.mxu1  ;;  %v1732_v43 = vadd.f32 %v5518_v17, %v1662_v29 }
 0x1c6   : > { %1888 = vst [vmem:[#allocation2 + $0x10] sm:$0xff] %v1856_v13  ;;  %v1663_v34 = vadd.f32 %v1583_v26, %v5274_v52  ;;  %v5617_v49 = vpop.f32.mrf.mxu3 }
 0x1c7   : > { %v1796_v32 = vmax.f32 %v1732_v43, 0.0 }
 0x1c8   : > { %v1733_v37 = vadd.f32 %v5520_v45, %v1663_v34 }
 0x1ca   : > { %v1797_v48 = vmax.f32 %v1733_v37, 0.0  ;;  %v1497_v4 = vpop.f32.mrf.mxu0  ;;  %v4743_v37 = vld [vmem:[%s6349_s3 + $0x164] sm:$0xf] }
 0x1cb   : > { %v1664_v52 = vadd.f32 %v1497_v4, %v5292_v1  ;;  %v4268_v1 = vld [vmem:[%s6349_s3 + $0x160] sm:$0xf] }
 0x1cc   : > { %v1857_v42 = vmax.f32 %v1796_v32, %v1797_v48  ;;  %v4270_v32 = vld [vmem:[%s6349_s3 + $0x168] sm:$0xf0] }
 0x1cd   : > { %v1586_v38 = vpop.f32.mrf.mxu1  ;;  %v1734_v33 = vadd.f32 %v5518_v17, %v1664_v52  ;;  %1536 = vmatmul.bf16.gmra.mxu0 %v1371_v57  ;;  %v4273_v4 = vor.u32 %v4743_v37, %v4270_v32 }
 0x1ce   : > { %1889 = vst [vmem:[#allocation2 + $0x18] sm:$0xff] %v1857_v42  ;;  %v1665_v61 = vadd.f32 %v1586_v38, %v5294_v5  ;;  %v4744_v5 = vld [vmem:[%s6349_s3 + $0x164] sm:$0xf0]  ;;  %v1372_v38 = vrot.slane %v5278_v56, 1 }
 0x1cf   : > { %v1798_v13 = vmax.f32 %v1734_v33, 0.0  ;;  %v4269_v43 = vor.u32 %v4744_v5, %v4268_v1  ;;  %2718 = vmatpush.bf16.msra.mxu1 %v4273_v4  ;;  %v2055_v33 = vld [vmem:[#allocation2 + $0x3] ss:$2 sm:$0xff] }
 0x1d0   : > { %v1735_v24 = vadd.f32 %v5520_v45, %v1665_v61  ;;  %1625 = vmatmul.bf16.gmra.mxu1 %v1371_v57  ;;  %v2023_v61 = vld [vmem:[#allocation2 + $0x2] ss:$2 sm:$0xff] }
 0x1d1   : > { %2669 = vmatpush.bf16.msra.mxu0 %v4269_v43  ;;  %v2086_v1 = vmax.f32 %v2023_v61, %v2055_v33 }
 0x1d2   : > { %v1799_v30 = vmax.f32 %v1735_v24, 0.0  ;;  %v1499_v26 = vpop.f32.mrf.mxu0 }
 0x1d3   : > { %v1666_v29 = vadd.f32 %v1499_v26, %v5298_v15  ;;  %v5637_v15 = vpop.f32.mrf.mxu2 }
 0x1d4   : > { %v1858_v6 = vmax.f32 %v1798_v13, %v1799_v30 }
 0x1d5   : > { %v1588_v9 = vpop.f32.mrf.mxu1  ;;  %v1736_v48 = vadd.f32 %v5518_v17, %v1666_v29 }
 0x1d6   : > { %1890 = vst [vmem:[#allocation2 + $0x20] sm:$0xff] %v1858_v6  ;;  %v1667_v34 = vadd.f32 %v1588_v9, %v5301_v20  ;;  %v5639_v20 = vpop.f32.mrf.mxu3  ;;  %v1373_v6 = vsel %vm1348_vm1, %v1370_v16, %v1372_v38 }
 0x1d7   : > { %v1800_v57 = vmax.f32 %v1736_v48, 0.0 }
 0x1d8   : > { %v1737_v42 = vadd.f32 %v5520_v45, %v1667_v34 }
 0x1da   : > { %v1801_v52 = vmax.f32 %v1737_v42, 0.0  ;;  %v1502_v13 = vpop.f32.mrf.mxu0 }
 0x1db   : > { %v1668_v29 = vadd.f32 %v1502_v13, %v5307_v28  ;;  %v5649_v32 = vpop.f32.mrf.mxu2 }
 0x1dc   : > { %v1859_v24 = vmax.f32 %v1800_v57, %v1801_v52 }
 0x1dd   : > { %v1591_v30 = vpop.f32.mrf.mxu1  ;;  %v2025_v26 = vld [vmem:[#allocation2 + $0x12] ss:$2 sm:$0xff]  ;;  %v2057_v9 = vld [vmem:[#allocation2 + $0x13] ss:$2 sm:$0xff]  ;;  %v1738_v5 = vadd.f32 %v5518_v17, %v1668_v29  ;;  %1541 = vmatmul.bf16.gmra.mxu0 %v1373_v6 }
 0x1de   : > { %1891 = vst [vmem:[#allocation2 + $0x28] sm:$0xff] %v1859_v24  ;;  %v1669_v34 = vadd.f32 %v1591_v30, %v5309_v31  ;;  %v2087_v56 = vmax.f32 %v2025_v26, %v2057_v9  ;;  %v5651_v48 = vpop.f32.mrf.mxu3  ;;  %v1374_v24 = vrot.slane %v5305_v25, 1  ;;  %v1268_v26 = vadd.f32 %v5579_v23, %v5320_v53 }
 0x1df   : > { %v1802_v16 = vmax.f32 %v1738_v5, 0.0  ;;  %v1270_v23 = vadd.f32 %v5605_v39, %v5340_v3  ;;  %v4741_v3 = vld [vmem:[%s6349_s3 + $0x154] sm:$0xf]  ;;  %v4262_v39 = vld [vmem:[%s6349_s3 + $0x158] sm:$0xf0] }
 0x1e0   : > { %v1739_v43 = vadd.f32 %v5520_v45, %v1669_v34  ;;  %1630 = vmatmul.bf16.gmra.mxu1 %v1373_v6  ;;  %v2102_v37 = vpack.c.bf16 %v2087_v56, %v2086_v1  ;;  %v1179_v6 = vadd.f32 %v5577_v59, %v5318_v51  ;;  %v1375_v1 = vsel %vm1348_vm1, %v1372_v38, %v1374_v24 }
 0x1e1   : > { %v1181_v59 = vadd.f32 %v5603_v35, %v5338_v2  ;;  %v4742_v2 = vld [vmem:[%s6349_s3 + $0x154] sm:$0xf0] }
 0x1e2   : > { %v1803_v42 = vmax.f32 %v1739_v43, 0.0  ;;  %2215 = vmatmul.bf16.vlgmr.msrb.gmra.mxu2 %v2102_v37  ;;  %2264 = vmatmul.bf16.vlgmr.msrb.gmra.mxu3 %v2102_v37  ;;  %v1504_v4 = vpop.f32.mrf.mxu0 }
 0x1e3   : > { %v1670_v57 = vadd.f32 %v1504_v4, %v5313_v44  ;;  %v5662_v9 = vpop.f32.mrf.mxu2 }
 0x1e4   : > { %v1860_v28 = vmax.f32 %v1802_v16, %v1803_v42 }
 0x1e5   : > { %v1593_v31 = vpop.f32.mrf.mxu1  ;;  %v1740_v61 = vadd.f32 %v5518_v17, %v1670_v57  ;;  %v4260_v57 = vld [vmem:[%s6349_s3 + $0x150] sm:$0xf] }
 0x1e6   : > { %1892 = vst [vmem:[#allocation2 + $0x30] sm:$0xff] %v1860_v28  ;;  %v1671_v52 = vadd.f32 %v1593_v31, %v5316_v50  ;;  %v5664_v29 = vpop.f32.mrf.mxu3  ;;  %v4261_v35 = vor.u32 %v4742_v2, %v4260_v57 }
 0x1e7   : > { %v1804_v13 = vmax.f32 %v1740_v61, 0.0 }
 0x1e8   : > { %v1741_v33 = vadd.f32 %v5520_v45, %v1671_v52  ;;  %2670 = vmatpush.bf16.msra.mxu0 %v4261_v35 }
 0x1ea   : > { %v1805_v30 = vmax.f32 %v1741_v33, 0.0  ;;  %v1507_v50 = vpop.f32.mrf.mxu0  ;;  %v4265_v33 = vor.u32 %v4741_v3, %v4262_v39 }
 0x1eb   : > { %v1672_v56 = vadd.f32 %v1507_v50, %v1179_v6  ;;  %v5673_v42 = vpop.f32.mrf.mxu2  ;;  %v4252_v50 = vld [vmem:[%s6349_s3 + $0x140] sm:$0xf] }
 0x1ec   : > { %v1861_v44 = vmax.f32 %v1804_v13, %v1805_v30  ;;  %v1376_v13 = vrot.slane %v5324_v55, 1  ;;  %2719 = vmatpush.bf16.msra.mxu1 %v4265_v33  ;;  %v1280_v55 = vadd.f32 %v5664_v29, %v5370_v54  ;;  %v1194_v29 = vadd.f32 %v5673_v42, %v5375_v0 }
 0x1ed   : > { %v1596_v34 = vpop.f32.mrf.mxu1  ;;  %v1742_v5 = vadd.f32 %v5518_v17, %v1672_v56  ;;  %1546 = vmatmul.bf16.gmra.mxu0 %v1375_v1  ;;  %v1184_v56 = vadd.f32 %v5615_v27, %v5345_v12 }
 0x1ee   : > { %1893 = vst [vmem:[#allocation2 + $0x38] sm:$0xff] %v1861_v44  ;;  %v1673_v25 = vadd.f32 %v1596_v34, %v1268_v26  ;;  %v5675_v28 = vpop.f32.mrf.mxu3  ;;  %v2027_v26 = vld [vmem:[#allocation2 + $0x22] ss:$2 sm:$0xff]  ;;  %v2059_v44 = vld [vmem:[#allocation2 + $0x23] ss:$2 sm:$0xff] }
 0x1ef   : > { %v1806_v51 = vmax.f32 %v1742_v5, 0.0  ;;  %v4740_v34 = vld [vmem:[%s6349_s3 + $0x144] sm:$0xf0] }
 0x1f0   : > { %v1743_v43 = vadd.f32 %v5520_v45, %v1673_v25  ;;  %1635 = vmatmul.bf16.gmra.mxu1 %v1375_v1  ;;  %v4739_v1 = vld [vmem:[%s6349_s3 + $0x144] sm:$0xf]  ;;  %v1273_v25 = vadd.f32 %v5617_v49, %v5347_v14  ;;  %v4244_v49 = vld [vmem:[%s6349_s3 + $0x130] sm:$0xf] }
 0x1f2   : > { %v1807_v53 = vmax.f32 %v1743_v43, 0.0  ;;  %v1509_v16 = vpop.f32.mrf.mxu0  ;;  %v4253_v43 = vor.u32 %v4740_v34, %v4252_v50  ;;  %v4735_v50 = vld [vmem:[%s6349_s3 + $0x124] sm:$0xf]  ;;  %v1186_v34 = vadd.f32 %v5637_v15, %v5353_v21  ;;  %v4228_v21 = vld [vmem:[%s6349_s3 + $0x110] sm:$0xf] }
 0x1f3   : > { %v1674_v4 = vadd.f32 %v1509_v16, %v1181_v59  ;;  %v5720_v57 = vpop.f32.mrf.mxu2  ;;  %v4733_v15 = vld [vmem:[%s6349_s3 + $0x114] sm:$0xf] }
 0x1f4   : > { %v1862_v37 = vmax.f32 %v1806_v51, %v1807_v53  ;;  %v4254_v51 = vld [vmem:[%s6349_s3 + $0x148] sm:$0xf0]  ;;  %2671 = vmatpush.bf16.msra.mxu0 %v4253_v43 }
 0x1f5   : > { %v1598_v38 = vpop.f32.mrf.mxu1  ;;  %v1744_v52 = vadd.f32 %v5518_v17, %v1674_v4  ;;  %v4257_v4 = vor.u32 %v4739_v1, %v4254_v51  ;;  %v1275_v1 = vadd.f32 %v5639_v20, %v5355_v22  ;;  %v4734_v22 = vld [vmem:[%s6349_s3 + $0x114] sm:$0xf0] }
 0x1f6   : > { %1894 = vst [vmem:[#allocation2 + $0x40] sm:$0xff] %v1862_v37  ;;  %v1675_v31 = vadd.f32 %v1598_v38, %v1270_v23  ;;  %v1377_v23 = vsel %vm1348_vm1, %v1374_v24, %v1376_v13  ;;  %v2088_v38 = vmax.f32 %v2027_v26, %v2059_v44  ;;  %v4737_v24 = vld [vmem:[%s6349_s3 + $0x134] sm:$0xf]  ;;  %v5722_v2 = vpop.f32.mrf.mxu3  ;;  %v4236_v26 = vld [vmem:[%s6349_s3 + $0x120] sm:$0xf] }
 0x1f7   : > { %v1808_v30 = vmax.f32 %v1744_v52, 0.0  ;;  %2720 = vmatpush.bf16.msra.mxu1 %v4257_v4  ;;  %v4246_v52 = vld [vmem:[%s6349_s3 + $0x138] sm:$0xf0]  ;;  %v4736_v44 = vld [vmem:[%s6349_s3 + $0x124] sm:$0xf0]  ;;  %v1378_v4 = vrot.slane %v5351_v19, 1 }
 0x1f8   : > { %v1745_v61 = vadd.f32 %v5520_v45, %v1675_v31  ;;  %v4738_v31 = vld [vmem:[%s6349_s3 + $0x134] sm:$0xf0]  ;;  %v4249_v33 = vor.u32 %v4737_v24, %v4246_v52  ;;  %v4220_v24 = vld [vmem:[%s6349_s3 + $0x100] sm:$0xf]  ;;  %v4731_v19 = vld [vmem:[%s6349_s3 + $0x104] sm:$0xf] }
 0x1fa   : > { %v1809_v6 = vmax.f32 %v1745_v61, 0.0  ;;  %v1512_v53 = vpop.f32.mrf.mxu0  ;;  %v4245_v61 = vor.u32 %v4738_v31, %v4244_v49 }
 0x1fb   : > { %v1676_v12 = vadd.f32 %v1512_v53, %v1184_v56  ;;  %2721 = vmatpush.bf16.msra.mxu1 %v4249_v33  ;;  %v4222_v33 = vld [vmem:[%s6349_s3 + $0x108] sm:$0xf0] }
 0x1fc   : > { %v1863_v5 = vmax.f32 %v1808_v30, %v1809_v6  ;;  %2672 = vmatpush.bf16.msra.mxu0 %v4245_v61 }
 0x1fd   : > { %v1601_v59 = vpop.f32.mrf.mxu1  ;;  %v2029_v37 = vld [vmem:[#allocation2 + $0x32] ss:$2 sm:$0xff]  ;;  %v2061_v16 = vld [vmem:[#allocation2 + $0x33] ss:$2 sm:$0xff]  ;;  %v1746_v35 = vadd.f32 %v5518_v17, %v1676_v12  ;;  %1551 = vmatmul.bf16.gmra.mxu0 %v1377_v23 }
 0x1fe   : > { %1895 = vst [vmem:[#allocation2 + $0x48] sm:$0xff] %v1863_v5  ;;  %v1677_v27 = vadd.f32 %v1601_v59, %v1273_v25  ;;  %v2089_v14 = vmax.f32 %v2029_v37, %v2061_v16  ;;  %v4237_v25 = vor.u32 %v4736_v44, %v4236_v26  ;;  %v4238_v5 = vld [vmem:[%s6349_s3 + $0x128] sm:$0xf0]  ;;  %v4229_v16 = vor.u32 %v4734_v22, %v4228_v21 }
 0x1ff   : > { %v1810_v30 = vmax.f32 %v1746_v35, 0.0  ;;  %v4241_v53 = vor.u32 %v4735_v50, %v4238_v5  ;;  %v4732_v35 = vld [vmem:[%s6349_s3 + $0x104] sm:$0xf0]  ;;  %v1379_v26 = vsel %vm1348_vm1, %v1376_v13, %v1378_v4  ;;  %v4225_v44 = vor.u32 %v4731_v19, %v4222_v33 }
 0x200   : > { %v1747_v3 = vadd.f32 %v5520_v45, %v1677_v27  ;;  %1640 = vmatmul.bf16.gmra.mxu1 %v1377_v23  ;;  %v2103_v39 = vpack.c.bf16 %v2089_v14, %v2088_v38  ;;  %2673 = vmatpush.bf16.msra.mxu0 %v4237_v25  ;;  %v4230_v38 = vld [vmem:[%s6349_s3 + $0x118] sm:$0xf0]  ;;  %v5760_v27 = vpop.f32.mrf.mxu2  ;;  %v5762_v14 = vpop.f32.mrf.mxu3  ;;  %v4221_v61 = vor.u32 %v4732_v35, %v4220_v24  ;;  %v1380_v21 = vrot.slane %v5366_v46, 1 }
 0x201   : > { %2722 = vmatpush.bf16.msra.mxu1 %v4241_v53  ;;  %v4233_v12 = vor.u32 %v4733_v15, %v4230_v38  ;;  %v1283_v15 = vadd.f32 %v5675_v28, %v5377_v7 }
 0x202   : > { %v1811_v6 = vmax.f32 %v1747_v3, 0.0  ;;  %2220 = vmatmul.bf16.gmra.mxu2 %v2103_v39  ;;  %2269 = vmatmul.bf16.gmra.mxu3 %v2103_v39  ;;  %v1514_v43 = vpop.f32.mrf.mxu0  ;;  %v1189_v3 = vadd.f32 %v5649_v32, %v5361_v40  ;;  %v1278_v39 = vadd.f32 %v5651_v48, %v5363_v41  ;;  %v1381_v38 = vsel %vm1348_vm1, %v1378_v4, %v1380_v21  ;;  %v4196_v21 = vld [vmem:[%s6349_s3 + $0x70] sm:$0xf] }
 0x203   : > { %v1678_v59 = vadd.f32 %v1514_v43, %v1186_v34 }
 0x204   : > { %v1864_v56 = vmax.f32 %v1810_v30, %v1811_v6  ;;  %2674 = vmatpush.bf16.msra.mxu0 %v4229_v16 }
 0x205   : > { %v1603_v51 = vpop.f32.mrf.mxu1  ;;  %v1748_v20 = vadd.f32 %v5518_v17, %v1678_v59  ;;  %2723 = vmatpush.bf16.msra.mxu1 %v4233_v12 }
 0x206   : > { %1896 = vst [vmem:[#allocation2 + $0x50] sm:$0xff] %v1864_v56  ;;  %v1679_v23 = vadd.f32 %v1603_v51, %v1275_v1  ;;  %v1191_v1 = vadd.f32 %v5662_v9, %v5368_v47 }
 0x207   : > { %v1812_v49 = vmax.f32 %v1748_v20, 0.0 }
 0x208   : > { %v1749_v37 = vadd.f32 %v5520_v45, %v1679_v23  ;;  %2675 = vmatpush.bf16.msra.mxu0 %v4221_v61  ;;  %v5789_v13 = vpop.f32.mrf.mxu2  ;;  %v5791_v56 = vpop.f32.mrf.mxu3 }
 0x209   : > { %2724 = vmatpush.bf16.msra.mxu1 %v4225_v44  ;;  %v2486_v44 = vld [vmem:[#allocation2 + $0x14] ss:$2 sm:$0xff] }
 0x20a   : > { %v1813_v31 = vmax.f32 %v1749_v37, 0.0  ;;  %v1517_v30 = vpop.f32.mrf.mxu0 }
 0x20b   : > { %v1680_v50 = vadd.f32 %v1517_v30, %v1189_v3 }
 0x20c   : > { %v1865_v52 = vmax.f32 %v1812_v49, %v1813_v31 }
 0x20d   : > { %v1606_v6 = vpop.f32.mrf.mxu1  ;;  %v1750_v40 = vadd.f32 %v5518_v17, %v1680_v50  ;;  %1556 = vmatmul.bf16.gmra.mxu0 %v1379_v26  ;;  %v2031_v22 = vld [vmem:[#allocation2 + $0x42] ss:$2 sm:$0xff]  ;;  %v2063_v54 = vld [vmem:[#allocation2 + $0x43] ss:$2 sm:$0xff] }
 0x20e   : > { %1897 = vst [vmem:[#allocation2 + $0x58] sm:$0xff] %v1865_v52  ;;  %v1681_v34 = vadd.f32 %v1606_v6, %v1278_v39  ;;  %v2090_v19 = vmax.f32 %v2031_v22, %v2063_v54  ;;  %v1196_v39 = vadd.f32 %v5720_v57, %v5382_v11  ;;  %v1285_v52 = vadd.f32 %v5722_v2, %v5384_v18  ;;  %v2518_v50 = vld [vmem:[#allocation2 + $0x15] ss:$2 sm:$0xff]  ;;  %v2484_v11 = vld [vmem:[#allocation2 + $0x4] ss:$2 sm:$0xff] }
 0x20f   : > { %v1814_v32 = vmax.f32 %v1750_v40, 0.0  ;;  %v2516_v57 = vld [vmem:[#allocation2 + $0x5] ss:$2 sm:$0xff]  ;;  %v2548_v2 = vmax.f32 %v2486_v44, %v2518_v50 }
 0x210   : > { %v1751_v41 = vadd.f32 %v5520_v45, %v1681_v34  ;;  %1645 = vmatmul.bf16.gmra.mxu1 %v1379_v26  ;;  %v5801_v31 = vpop.f32.mrf.mxu2  ;;  %v5803_v46 = vpop.f32.mrf.mxu3 }
 0x212   : > { %v1815_v48 = vmax.f32 %v1751_v41, 0.0  ;;  %v1519_v5 = vpop.f32.mrf.mxu0 }
 0x213   : > { %v1682_v51 = vadd.f32 %v1519_v5, %v1191_v1  ;;  %v1199_v1 = vadd.f32 %v5760_v27, %v5399_v58  ;;  %v2547_v5 = vmax.f32 %v2484_v11, %v2516_v57  ;;  %v4198_v27 = vld [vmem:[%s6349_s3 + $0x78] sm:$0xf0] }
 0x214   : > { %v1866_v25 = vmax.f32 %v1814_v32, %v1815_v48 }
 0x215   : > { %v1608_v43 = vpop.f32.mrf.mxu1  ;;  %v1752_v59 = vadd.f32 %v5518_v17, %v1682_v51 }
 0x216   : > { %1898 = vst [vmem:[#allocation2 + $0x60] sm:$0xff] %v1866_v25  ;;  %v1683_v53 = vadd.f32 %v1608_v43, %v1280_v55  ;;  %v1288_v55 = vadd.f32 %v5762_v14, %v5401_v60  ;;  %v4713_v60 = vld [vmem:[%s6349_s3 + $0x74] sm:$0xf] }
 0x217   : > { %v1816_v47 = vmax.f32 %v1752_v59, 0.0  ;;  %v4201_v22 = vor.u32 %v4713_v60, %v4198_v27 }
 0x218   : > { %v1753_v23 = vadd.f32 %v5520_v45, %v1683_v53  ;;  %v5811_v34 = vpop.f32.mrf.mxu2  ;;  %v5813_v40 = vpop.f32.mrf.mxu3 }
 0x219   : > { %2434 = vmatpush.bf16.msra.mxu3 %v4201_v22 }
 0x21a   : > { %v1817_v9 = vmax.f32 %v1753_v23, 0.0  ;;  %v1522_v37 = vpop.f32.mrf.mxu0  ;;  %v2563_v23 = vpack.c.bf16 %v2548_v2, %v2547_v5 }
 0x21b   : > { %v1684_v24 = vadd.f32 %v1522_v37, %v1194_v29  ;;  %v1201_v37 = vadd.f32 %v5789_v13, %v5404_v63 }
 0x21c   : > { %v1867_v20 = vmax.f32 %v1816_v47, %v1817_v9  ;;  %v4714_v47 = vld [vmem:[%s6349_s3 + $0x74] sm:$0xf0] }
 0x21d   : > { %v1611_v16 = vpop.f32.mrf.mxu1  ;;  %v2033_v12 = vld [vmem:[#allocation2 + $0x52] ss:$2 sm:$0xff]  ;;  %v2065_v49 = vld [vmem:[#allocation2 + $0x53] ss:$2 sm:$0xff]  ;;  %v1754_v0 = vadd.f32 %v5518_v17, %v1684_v24  ;;  %1561 = vmatmul.bf16.gmra.mxu0 %v1381_v38  ;;  %v4197_v58 = vor.u32 %v4714_v47, %v4196_v21 }
 0x21e   : > { %1899 = vst [vmem:[#allocation2 + $0x68] sm:$0xff] %v1867_v20  ;;  %v1685_v35 = vadd.f32 %v1611_v16, %v1283_v15  ;;  %v2091_v3 = vmax.f32 %v2033_v12, %v2065_v49  ;;  %v1290_v16 = vadd.f32 %v5791_v56, %v5406_v8  ;;  %v1204_v56 = vadd.f32 %v5801_v31, %v5409_v10  ;;  %v4188_v10 = vld [vmem:[%s6349_s3 + $0x60] sm:$0xf]  ;;  %v4712_v31 = vld [vmem:[%s6349_s3 + $0x64] sm:$0xf0]  ;;  %v6385_v47 = vld [vmem:[#allocation6_spill] sm:$0xff] }
 0x21f   : > { %v1818_v28 = vmax.f32 %v1754_v0, 0.0  ;;  %2385 = vmatpush.bf16.msra.mxu2 %v4197_v58  ;;  %v1295_v58 = vadd.f32 %v5813_v40, %v6385_v47  ;;  %v6388_v47 = vld [vmem:[#allocation9_spill] sm:$0xff] }
 0x220   : > { %v1755_v7 = vadd.f32 %v5520_v45, %v1685_v35  ;;  %1650 = vmatmul.bf16.gmra.mxu1 %v1381_v38  ;;  %v2104_v42 = vpack.c.bf16 %v2091_v3, %v2090_v19  ;;  %v5835_v54 = vpop.f32.mrf.mxu2  ;;  %v5837_v29 = vpop.f32.mrf.mxu3  ;;  %v2490_v19 = vld [vmem:[#allocation2 + $0x34] ss:$2 sm:$0xff]  ;;  %v2522_v3 = vld [vmem:[#allocation2 + $0x35] ss:$2 sm:$0xff] }
 0x221   : > { %v1209_v40 = vadd.f32 %v5835_v54, %v5431_v62  ;;  %v4182_v54 = vld [vmem:[%s6349_s3 + $0x58] sm:$0xf0] }
 0x222   : > { %v1819_v4 = vmax.f32 %v1755_v7, 0.0  ;;  %2225 = vmatmul.bf16.gmra.mxu2 %v2104_v42  ;;  %2274 = vmatmul.bf16.gmra.mxu3 %v2104_v42  ;;  %v1524_v33 = vpop.f32.mrf.mxu0  ;;  %v2488_v42 = vld [vmem:[#allocation2 + $0x24] ss:$2 sm:$0xff] }
 0x223   : > { %v1686_v6 = vadd.f32 %v1524_v33, %v1196_v39 }
 0x224   : > { %v1868_v61 = vmax.f32 %v1818_v28, %v1819_v4  ;;  %v2520_v28 = vld [vmem:[#allocation2 + $0x25] ss:$2 sm:$0xff]  ;;  %v2550_v4 = vmax.f32 %v2490_v19, %v2522_v3  ;;  %v1298_v3 = vadd.f32 %v5837_v29, %v5433_v36  ;;  %v4709_v36 = vld [vmem:[%s6349_s3 + $0x54] sm:$0xf] }
 0x225   : > { %v1613_v30 = vpop.f32.mrf.mxu1  ;;  %v1756_v41 = vadd.f32 %v5518_v17, %v1686_v6  ;;  %v2549_v13 = vmax.f32 %v2488_v42, %v2520_v28 }
 0x226   : > { %1900 = vst [vmem:[#allocation2 + $0x70] sm:$0xff] %v1868_v61  ;;  %v1687_v26 = vadd.f32 %v1613_v30, %v1285_v52  ;;  %v6383_v61 = vld [vmem:[#allocation4_spill] sm:$0xff] }
 0x227   : > { %v1820_v48 = vmax.f32 %v1756_v41, 0.0  ;;  %v1293_v33 = vadd.f32 %v5803_v46, %v6383_v61  ;;  %v2564_v41 = vpack.c.bf16 %v2550_v4, %v2549_v13  ;;  %v4189_v46 = vor.u32 %v4712_v31, %v4188_v10  ;;  %v4180_v13 = vld [vmem:[%s6349_s3 + $0x50] sm:$0xf] }
 0x228   : > { %v1757_v32 = vadd.f32 %v5520_v45, %v1687_v26  ;;  %v5849_v30 = vpop.f32.mrf.mxu2  ;;  %v5851_v6 = vpop.f32.mrf.mxu3 }
 0x229   : > { %2386 = vmatpush.bf16.msra.mxu2 %v4189_v46 }
 0x22a   : > { %v1821_v18 = vmax.f32 %v1757_v32, 0.0  ;;  %v1527_v43 = vpop.f32.mrf.mxu0 }
 0x22b   : > { %v1688_v53 = vadd.f32 %v1527_v43, %v1199_v1  ;;  %v4711_v1 = vld [vmem:[%s6349_s3 + $0x64] sm:$0xf] }
 0x22c   : > { %v1869_v25 = vmax.f32 %v1820_v48, %v1821_v18 }
 0x22d   : > { %v1616_v51 = vpop.f32.mrf.mxu1  ;;  %v1758_v14 = vadd.f32 %v5518_v17, %v1688_v53  ;;  %2676 = vmatmul.bf16.vlgmr.msra.gmra.mxu0 %v2563_v23  ;;  %v2035_v52 = vld [vmem:[#allocation2 + $0x62] ss:$2 sm:$0xff]  ;;  %v2067_v8 = vld [vmem:[#allocation2 + $0x63] ss:$2 sm:$0xff] }
 0x22e   : > { %1901 = vst [vmem:[#allocation2 + $0x78] sm:$0xff] %v1869_v25  ;;  %v1689_v59 = vadd.f32 %v1616_v51, %v1288_v55  ;;  %v2092_v18 = vmax.f32 %v2035_v52, %v2067_v8  ;;  %v4190_v55 = vld [vmem:[%s6349_s3 + $0x68] sm:$0xf0]  ;;  %v4710_v52 = vld [vmem:[%s6349_s3 + $0x54] sm:$0xf0] }
 0x22f   : > { %v1822_v15 = vmax.f32 %v1758_v14, 0.0  ;;  %v4193_v51 = vor.u32 %v4711_v1, %v4190_v55  ;;  %v4181_v62 = vor.u32 %v4710_v52, %v4180_v13  ;;  %v6391_v13 = vld [vmem:[#allocation12_spill] sm:$0xff] }
 0x230   : > { %v1759_v9 = vadd.f32 %v5520_v45, %v1689_v59  ;;  %2725 = vmatmul.bf16.vlgmr.msra.gmra.mxu1 %v2563_v23  ;;  %v6384_v23 = vld [vmem:[#allocation5_spill] sm:$0xff]  ;;  %v1302_v22 = vpop.f32.mrf.mxu3 }
 0x231   : > { %2435 = vmatpush.bf16.msra.mxu3 %v4193_v51  ;;  %v1206_v21 = vadd.f32 %v5811_v34, %v6384_v23  ;;  %2387 = vmatpush.bf16.msra.mxu2 %v4181_v62 }
 0x232   : > { %v1823_v20 = vmax.f32 %v1759_v9, 0.0  ;;  %v1529_v12 = vpop.f32.mrf.mxu0  ;;  %v1213_v9 = vpop.f32.mrf.mxu2 }
 0x233   : > { %v1690_v24 = vadd.f32 %v1529_v12, %v1201_v37  ;;  %v2494_v37 = vld [vmem:[#allocation2 + $0x54] ss:$2 sm:$0xff] }
 0x234   : > { %v1870_v38 = vmax.f32 %v1822_v15, %v1823_v20 }
 0x235   : > { %v1618_v49 = vpop.f32.mrf.mxu1  ;;  %v1760_v0 = vadd.f32 %v5518_v17, %v1690_v24  ;;  %v2524_v24 = vld [vmem:[#allocation2 + $0x45] ss:$2 sm:$0xff] }
 0x236   : > { %1902 = vst [vmem:[#allocation2 + $0x80] sm:$0xff] %v1870_v38  ;;  %v1691_v35 = vadd.f32 %v1618_v49, %v1290_v16  ;;  %v2526_v16 = vld [vmem:[#allocation2 + $0x55] ss:$2 sm:$0xff]  ;;  %v2492_v49 = vld [vmem:[#allocation2 + $0x44] ss:$2 sm:$0xff] }
 0x237   : > { %v1824_v39 = vmax.f32 %v1760_v0, 0.0  ;;  %v2552_v19 = vmax.f32 %v2494_v37, %v2526_v16 }
 0x238   : > { %v1761_v7 = vadd.f32 %v5520_v45, %v1691_v35  ;;  %v5891_v8 = vpop.f32.mrf.mxu3 }
 0x239   : > { %v1305_v52 = vadd.f32 %v5891_v8, %v6391_v13  ;;  %v6392_v8 = vld [vmem:[#allocation13_spill] sm:$0xff] }
 0x23a   : > { %v1825_v63 = vmax.f32 %v1761_v7, 0.0  ;;  %v1532_v44 = vpop.f32.mrf.mxu0  ;;  %v2551_v7 = vmax.f32 %v2492_v49, %v2524_v24  ;;  %v5889_v29 = vpop.f32.mrf.mxu2 }
 0x23b   : > { %v1692_v57 = vadd.f32 %v1532_v44, %v1204_v56 }
 0x23c   : > { %v1871_v26 = vmax.f32 %v1824_v39, %v1825_v63  ;;  %v2565_v63 = vpack.c.bf16 %v2552_v19, %v2551_v7  ;;  %v4174_v19 = vld [vmem:[%s6349_s3 + $0x48] sm:$0xf0] }
 0x23d   : > { %v1621_v50 = vpop.f32.mrf.mxu1  ;;  %v2037_v32 = vld [vmem:[#allocation2 + $0x72] ss:$2 sm:$0xff]  ;;  %v2069_v11 = vld [vmem:[#allocation2 + $0x73] ss:$2 sm:$0xff]  ;;  %v1762_v25 = vadd.f32 %v5518_v17, %v1692_v57  ;;  %2681 = vmatmul.bf16.gmra.mxu0 %v2564_v41 }
 0x23e   : > { %1903 = vst [vmem:[#allocation2 + $0x88] sm:$0xff] %v1871_v26  ;;  %v1693_v48 = vadd.f32 %v1621_v50, %v1293_v33  ;;  %v2093_v2 = vmax.f32 %v2037_v32, %v2069_v11  ;;  %v4185_v33 = vor.u32 %v4709_v36, %v4182_v54  ;;  %v6386_v50 = vld [vmem:[#allocation7_spill] sm:$0xff]  ;;  %v6387_v32 = vld [vmem:[#allocation8_spill] sm:$0xff] }
 0x23f   : > { %v1826_v53 = vmax.f32 %v1762_v25, 0.0  ;;  %v1300_v11 = vadd.f32 %v5851_v6, %v6387_v32  ;;  %v2498_v31 = vld [vmem:[#allocation2 + $0x74] ss:$2 sm:$0xff]  ;;  %v2530_v46 = vld [vmem:[#allocation2 + $0x75] ss:$2 sm:$0xff] }
 0x240   : > { %v1763_v5 = vadd.f32 %v5520_v45, %v1693_v48  ;;  %2730 = vmatmul.bf16.gmra.mxu1 %v2564_v41  ;;  %v2105_v43 = vpack.c.bf16 %v2093_v2, %v2092_v18  ;;  %2436 = vmatpush.bf16.msra.mxu3 %v4185_v33  ;;  %v1211_v41 = vadd.f32 %v5849_v30, %v6386_v50  ;;  %v2496_v25 = vld [vmem:[#allocation2 + $0x64] ss:$2 sm:$0xff]  ;;  %v1307_v30 = vpop.f32.mrf.mxu3 }
 0x242   : > { %v1827_v59 = vmax.f32 %v1763_v5, 0.0  ;;  %2230 = vmatmul.bf16.gmra.mxu2 %v2105_v43  ;;  %2279 = vmatmul.bf16.gmra.mxu3 %v2105_v43  ;;  %v1534_v27 = vpop.f32.mrf.mxu0  ;;  %v2528_v5 = vld [vmem:[#allocation2 + $0x65] ss:$2 sm:$0xff]  ;;  %v2554_v43 = vmax.f32 %v2498_v31, %v2530_v46  ;;  %v1218_v51 = vpop.f32.mrf.mxu2 }
 0x243   : > { %v1694_v15 = vadd.f32 %v1534_v27, %v1206_v21  ;;  %v2553_v6 = vmax.f32 %v2496_v25, %v2528_v5 }
 0x244   : > { %v1872_v60 = vmax.f32 %v1826_v53, %v1827_v59 }
 0x245   : > { %v1623_v14 = vpop.f32.mrf.mxu1  ;;  %v1764_v38 = vadd.f32 %v5518_v17, %v1694_v15  ;;  %v2566_v37 = vpack.c.bf16 %v2554_v43, %v2553_v6 }
 0x246   : > { %1904 = vst [vmem:[#allocation2 + $0x90] sm:$0xff] %v1872_v60  ;;  %v1695_v20 = vadd.f32 %v1623_v14, %v1295_v58  ;;  %v1214_v58 = vadd.f32 %v1213_v9, %v6388_v47  ;;  %v6389_v60 = vld [vmem:[#allocation10_spill] sm:$0xff]  ;;  %v4708_v9 = vld [vmem:[%s6349_s3 + $0x44] sm:$0xf0] }
 0x247   : > { %v1828_v34 = vmax.f32 %v1764_v38, 0.0  ;;  %v1303_v27 = vadd.f32 %v1302_v22, %v6389_v60  ;;  %v4707_v22 = vld [vmem:[%s6349_s3 + $0x44] sm:$0xf] }
 0x248   : > { %v1765_v12 = vadd.f32 %v5520_v45, %v1695_v20  ;;  %v1309_v36 = vpop.f32.mrf.mxu3 }
 0x24a   : > { %v1829_v35 = vmax.f32 %v1765_v12, 0.0  ;;  %v1537_v42 = vpop.f32.mrf.mxu0  ;;  %v1220_v62 = vpop.f32.mrf.mxu2 }
 0x24b   : > { %v1696_v4 = vadd.f32 %v1537_v42, %v1209_v40  ;;  %v4177_v42 = vor.u32 %v4707_v22, %v4174_v19 }
 0x24c   : > { %v1873_v0 = vmax.f32 %v1828_v34, %v1829_v35  ;;  %v4172_v35 = vld [vmem:[%s6349_s3 + $0x40] sm:$0xf] }
 0x24d   : > { %v1626_v28 = vpop.f32.mrf.mxu1  ;;  %v1766_v56 = vadd.f32 %v5518_v17, %v1696_v4  ;;  %2686 = vmatmul.bf16.gmra.mxu0 %v2565_v63  ;;  %v2039_v23 = vld [vmem:[#allocation2 + $0x82] ss:$2 sm:$0xff]  ;;  %v2071_v21 = vld [vmem:[#allocation2 + $0x83] ss:$2 sm:$0xff]  ;;  %v4173_v7 = vor.u32 %v4708_v9, %v4172_v35  ;;  %2437 = vmatpush.bf16.msra.mxu3 %v4177_v42 }
 0x24e   : > { %1905 = vst [vmem:[#allocation2 + $0x98] sm:$0xff] %v1873_v0  ;;  %v1697_v39 = vadd.f32 %v1626_v28, %v1298_v3  ;;  %v2094_v24 = vmax.f32 %v2039_v23, %v2071_v21  ;;  %v4164_v23 = vld [vmem:[%s6349_s3 + $0x30] sm:$0xf]  ;;  %v4166_v21 = vld [vmem:[%s6349_s3 + $0x38] sm:$0xf0] }
 0x24f   : > { %v1830_v26 = vmax.f32 %v1766_v56, 0.0  ;;  %2388 = vmatpush.bf16.msra.mxu2 %v4173_v7 }
 0x250   : > { %v1767_v61 = vadd.f32 %v5520_v45, %v1697_v39  ;;  %2735 = vmatmul.bf16.gmra.mxu1 %v2565_v63  ;;  %v6390_v39 = vld [vmem:[#allocation11_spill] sm:$0xff]  ;;  %v1312_v43 = vpop.f32.mrf.mxu3 }
 0x251   : > { %v1216_v63 = vadd.f32 %v5889_v29, %v6390_v39  ;;  %v6397_v39 = vld [vmem:[#allocation18_spill] sm:$0xff] }
 0x252   : > { %v1831_v44 = vmax.f32 %v1767_v61, 0.0  ;;  %v1539_v48 = vpop.f32.mrf.mxu0  ;;  %v1223_v5 = vpop.f32.mrf.mxu2 }
 0x253   : > { %v1698_v2 = vadd.f32 %v1539_v48, %v1211_v41 }
 0x254   : > { %v1874_v57 = vmax.f32 %v1830_v26, %v1831_v44 }
 0x255   : > { %v1628_v18 = vpop.f32.mrf.mxu1  ;;  %v1768_v1 = vadd.f32 %v5518_v17, %v1698_v2  ;;  %v1219_v2 = vadd.f32 %v1218_v51, %v6392_v8  ;;  %v4706_v51 = vld [vmem:[%s6349_s3 + $0x34] sm:$0xf0]  ;;  %v4158_v8 = vld [vmem:[%s6349_s3 + $0x28] sm:$0xf0] }
 0x256   : > { %1906 = vst [vmem:[#allocation2 + $0xa0] sm:$0xff] %v1874_v57  ;;  %v1699_v10 = vadd.f32 %v1628_v18, %v1300_v11  ;;  %v2500_v11 = vld [vmem:[#allocation2 + $0x84] ss:$2 sm:$0xff]  ;;  %v2532_v57 = vld [vmem:[#allocation2 + $0x85] ss:$2 sm:$0xff]  ;;  %v4165_v60 = vor.u32 %v4706_v51, %v4164_v23 }
 0x257   : > { %v1832_v53 = vmax.f32 %v1768_v1, 0.0  ;;  %v2555_v1 = vmax.f32 %v2500_v11, %v2532_v57  ;;  %v4156_v11 = vld [vmem:[%s6349_s3 + $0x20] sm:$0xf]  ;;  %v6399_v23 = vld [vmem:[#allocation20_spill] sm:$0xff] }
 0x258   : > { %v1769_v55 = vadd.f32 %v5520_v45, %v1699_v10  ;;  %v6393_v10 = vld [vmem:[#allocation14_spill] sm:$0xff]  ;;  %2389 = vmatpush.bf16.msra.mxu2 %v4165_v60  ;;  %v1314_v22 = vpop.f32.mrf.mxu3 }
 0x259   : > { %v1308_v31 = vadd.f32 %v1307_v30, %v6393_v10  ;;  %v4705_v30 = vld [vmem:[%s6349_s3 + $0x34] sm:$0xf]  ;;  %v1315_v51 = vadd.f32 %v1314_v22, %v6399_v23 }
 0x25a   : > { %v1833_v59 = vmax.f32 %v1769_v55, 0.0  ;;  %v1542_v15 = vpop.f32.mrf.mxu0  ;;  %v1225_v9 = vpop.f32.mrf.mxu2 }
 0x25b   : > { %v1700_v12 = vadd.f32 %v1542_v15, %v1214_v58 }
 0x25c   : > { %v1875_v14 = vmax.f32 %v1832_v53, %v1833_v59 }
 0x25d   : > { %v1631_v20 = vpop.f32.mrf.mxu1  ;;  %v2041_v16 = vld [vmem:[#allocation2 + $0x92] ss:$2 sm:$0xff]  ;;  %v2073_v38 = vld [vmem:[#allocation2 + $0x93] ss:$2 sm:$0xff]  ;;  %v1770_v40 = vadd.f32 %v5518_v17, %v1700_v12  ;;  %2691 = vmatmul.bf16.gmra.mxu0 %v2566_v37 }
 0x25e   : > { %1907 = vst [vmem:[#allocation2 + $0xa8] sm:$0xff] %v1875_v14  ;;  %v1701_v49 = vadd.f32 %v1631_v20, %v1303_v27  ;;  %v2095_v34 = vmax.f32 %v2041_v16, %v2073_v38  ;;  %v2502_v44 = vld [vmem:[#allocation2 + $0x94] ss:$2 sm:$0xff]  ;;  %v2534_v50 = vld [vmem:[#allocation2 + $0x95] ss:$2 sm:$0xff]  ;;  %v4169_v27 = vor.u32 %v4705_v30, %v4166_v21  ;;  %v6395_v16 = vld [vmem:[#allocation16_spill] sm:$0xff] }
 0x25f   : > { %v1834_v28 = vmax.f32 %v1770_v40, 0.0  ;;  %v2556_v18 = vmax.f32 %v2502_v44, %v2534_v50  ;;  %v6394_v20 = vld [vmem:[#allocation15_spill] sm:$0xff]  ;;  %v1310_v38 = vadd.f32 %v1309_v36, %v6395_v16 }
 0x260   : > { %v1771_v3 = vadd.f32 %v5520_v45, %v1701_v49  ;;  %2740 = vmatmul.bf16.gmra.mxu1 %v2566_v37  ;;  %v2106_v0 = vpack.c.bf16 %v2095_v34, %v2094_v24  ;;  %2438 = vmatpush.bf16.msra.mxu3 %v4169_v27  ;;  %v1221_v37 = vadd.f32 %v1220_v62, %v6394_v20 }
 0x261   : > { %v2567_v6 = vpack.c.bf16 %v2556_v18, %v2555_v1  ;;  %v4703_v18 = vld [vmem:[%s6349_s3 + $0x24] sm:$0xf] }
 0x262   : > { %v1835_v4 = vmax.f32 %v1771_v3, 0.0  ;;  %2235 = vmatmul.bf16.gmra.mxu2 %v2106_v0  ;;  %2284 = vmatmul.bf16.gmra.mxu3 %v2106_v0  ;;  %v1544_v56 = vpop.f32.mrf.mxu0 }
 0x263   : > { %v1702_v33 = vadd.f32 %v1544_v56, %v1216_v63  ;;  %v1313_v63 = vadd.f32 %v1312_v43, %v6397_v39 }
 0x264   : > { %v1876_v54 = vmax.f32 %v1834_v28, %v1835_v4  ;;  %v6396_v28 = vld [vmem:[#allocation17_spill] sm:$0xff] }
 0x265   : > { %v1633_v61 = vpop.f32.mrf.mxu1  ;;  %v1772_v41 = vadd.f32 %v5518_v17, %v1702_v33  ;;  %v1224_v4 = vadd.f32 %v1223_v5, %v6396_v28  ;;  %v1317_v5 = vpop.f32.mrf.mxu3 }
 0x266   : > { %1908 = vst [vmem:[#allocation2 + $0xb0] sm:$0xff] %v1876_v54  ;;  %v1703_v26 = vadd.f32 %v1633_v61, %v1305_v52 }
 0x267   : > { %v1836_v29 = vmax.f32 %v1772_v41, 0.0 }
 0x268   : > { %v1773_v32 = vadd.f32 %v5520_v45, %v1703_v26 }
 0x26a   : > { %v1837_v48 = vmax.f32 %v1773_v32, 0.0  ;;  %v1547_v55 = vpop.f32.mrf.mxu0 }
 0x26b   : > { %v1704_v53 = vadd.f32 %v1547_v55, %v1219_v2  ;;  %v4161_v55 = vor.u32 %v4703_v18, %v4158_v8 }
 0x26c   : > { %v1877_v46 = vmax.f32 %v1836_v29, %v1837_v48  ;;  %v4704_v48 = vld [vmem:[%s6349_s3 + $0x24] sm:$0xf0] }
 0x26d   : > { %v1636_v25 = vpop.f32.mrf.mxu1  ;;  %v1774_v47 = vadd.f32 %v5518_v17, %v1704_v53  ;;  %2696 = vmatmul.bf16.gmra.mxu0 %v2567_v6  ;;  %v2043_v7 = vld [vmem:[#allocation2 + $0xa2] ss:$2 sm:$0xff]  ;;  %v2075_v42 = vld [vmem:[#allocation2 + $0xa3] ss:$2 sm:$0xff]  ;;  %2439 = vmatpush.bf16.msra.mxu3 %v4161_v55 }
 0x26e   : > { %1909 = vst [vmem:[#allocation2 + $0xb8] sm:$0xff] %v1877_v46  ;;  %v1705_v59 = vadd.f32 %v1636_v25, %v1308_v31  ;;  %v2504_v52 = vld [vmem:[#allocation2 + $0xa4] ss:$2 sm:$0xff]  ;;  %v2536_v62 = vld [vmem:[#allocation2 + $0xa5] ss:$2 sm:$0xff]  ;;  %v2096_v50 = vmax.f32 %v2043_v7, %v2075_v42  ;;  %v4157_v46 = vor.u32 %v4704_v48, %v4156_v11  ;;  %v1228_v25 = vpop.f32.mrf.mxu2 }
 0x26f   : > { %v1838_v14 = vmax.f32 %v1774_v47, 0.0  ;;  %v2557_v57 = vmax.f32 %v2504_v52, %v2536_v62  ;;  %v4150_v7 = vld [vmem:[%s6349_s3 + $0x18] sm:$0xf0]  ;;  %v4839_v52 = vmov 0.0   ;;  %v6402_v62 = vld [vmem:[#allocation23_spill] sm:$0xff]  ;;  %v6404_v55 = vld [vmem:[#allocation25_spill] sm:$0xff] }
 0x270   : > { %v1775_v58 = vadd.f32 %v5520_v45, %v1705_v59  ;;  %2745 = vmatmul.bf16.gmra.mxu1 %v2567_v6  ;;  %v6398_v59 = vld [vmem:[#allocation19_spill] sm:$0xff]  ;;  %2390 = vmatpush.bf16.msra.mxu2 %v4157_v46  ;;  %1918 = vst [vmem:[#allocation2 + $0x100] sm:$0xff] %v4839_v52 }
 0x271   : > { %v1226_v6 = vadd.f32 %v1225_v9, %v6398_v59  ;;  %v4699_v46 = vld [vmem:[%s6349_s3 + $0x4] sm:$0xf] }
 0x272   : > { %v1839_v15 = vmax.f32 %v1775_v58, 0.0  ;;  %v1549_v49 = vpop.f32.mrf.mxu0 }
 0x273   : > { %v1706_v34 = vadd.f32 %v1549_v49, %v1221_v37  ;;  %v6400_v37 = vld [vmem:[#allocation21_spill] sm:$0xff] }
 0x274   : > { %v1878_v12 = vmax.f32 %v1838_v14, %v1839_v15  ;;  %v1229_v16 = vadd.f32 %v1228_v25, %v6400_v37 }
 0x275   : > { %v1638_v24 = vpop.f32.mrf.mxu1  ;;  %v1776_v19 = vadd.f32 %v5518_v17, %v1706_v34 }
 0x276   : > { %1910 = vst [vmem:[#allocation2 + $0xc0] sm:$0xff] %v1878_v12  ;;  %v1707_v35 = vadd.f32 %v1638_v24, %v1310_v38  ;;  %v6401_v38 = vld [vmem:[#allocation22_spill] sm:$0xff]  ;;  %v1230_v49 = vpop.f32.mrf.mxu2  ;;  %v1319_v24 = vpop.f32.mrf.mxu3 }
 0x277   : > { %v1840_v3 = vmax.f32 %v1776_v19, 0.0  ;;  %v1318_v12 = vadd.f32 %v1317_v5, %v6401_v38  ;;  %v6405_v5 = vld [vmem:[#allocation26_spill] sm:$0xff] }
 0x278   : > { %v1777_v40 = vadd.f32 %v5520_v45, %v1707_v35 }
 0x27a   : > { %v1841_v0 = vmax.f32 %v1777_v40, 0.0  ;;  %v1552_v36 = vpop.f32.mrf.mxu0  ;;  %v4148_v40 = vld [vmem:[%s6349_s3 + $0x10] sm:$0xf] }
 0x27b   : > { %v1708_v26 = vadd.f32 %v1552_v36, %v1224_v4  ;;  %v1231_v36 = vadd.f32 %v1230_v49, %v6402_v62 }
 0x27c   : > { %v1879_v13 = vmax.f32 %v1840_v3, %v1841_v0  ;;  %v4702_v3 = vld [vmem:[%s6349_s3 + $0x14] sm:$0xf0]  ;;  %v4701_v0 = vld [vmem:[%s6349_s3 + $0x14] sm:$0xf] }
 0x27d   : > { %v1641_v54 = vpop.f32.mrf.mxu1  ;;  %v2045_v56 = vld [vmem:[#allocation2 + $0xb2] ss:$2 sm:$0xff]  ;;  %v2077_v61 = vld [vmem:[#allocation2 + $0xb3] ss:$2 sm:$0xff]  ;;  %v1778_v2 = vadd.f32 %v5518_v17, %v1708_v26  ;;  %v4149_v4 = vor.u32 %v4702_v3, %v4148_v40  ;;  %v4153_v39 = vor.u32 %v4701_v0, %v4150_v7  ;;  %v6407_v3 = vld [vmem:[#allocation28_spill] sm:$0xff] }
 0x27e   : > { %v2506_v33 = vld [vmem:[#allocation2 + $0xb4] ss:$2 sm:$0xff]  ;;  %1911 = vst [vmem:[#allocation2 + $0xc8] sm:$0xff] %v1879_v13  ;;  %v1709_v44 = vadd.f32 %v1641_v54, %v1313_v63  ;;  %v2097_v41 = vmax.f32 %v2045_v56, %v2077_v61  ;;  %v2538_v32 = vld [vmem:[#allocation2 + $0xb5] ss:$2 sm:$0xff]  ;;  %v6403_v54 = vld [vmem:[#allocation24_spill] sm:$0xff] }
 0x27f   : > { %v2558_v29 = vmax.f32 %v2506_v33, %v2538_v32  ;;  %v1842_v43 = vmax.f32 %v1778_v2, 0.0  ;;  %2391 = vmatpush.bf16.msra.mxu2 %v4149_v4  ;;  %2440 = vmatpush.bf16.msra.mxu3 %v4153_v39  ;;  %v1320_v56 = vadd.f32 %v1319_v24, %v6403_v54  ;;  %v1322_v32 = vpop.f32.mrf.mxu3  ;;  %v4140_v2 = vld [vmem:[%s6349_s3] sm:$0xf] }
 0x280   : > { %v1779_v10 = vadd.f32 %v5520_v45, %v1709_v44  ;;  %v2107_v31 = vpack.c.bf16 %v2097_v41, %v2096_v50  ;;  %v1233_v41 = vpop.f32.mrf.mxu2 }
 0x281   : > { %v2568_v1 = vpack.c.bf16 %v2558_v29, %v2557_v57  ;;  %v1234_v25 = vadd.f32 %v1233_v41, %v6404_v55 }
 0x282   : > { %v1843_v53 = vmax.f32 %v1779_v10, 0.0  ;;  %2240 = vmatmul.bf16.gmra.mxu2 %v2107_v31  ;;  %2289 = vmatmul.bf16.gmra.mxu3 %v2107_v31  ;;  %v1554_v21 = vpop.f32.mrf.mxu0  ;;  %v4700_v10 = vld [vmem:[%s6349_s3 + $0x4] sm:$0xf0] }
 0x283   : > { %2701 = vmatmul.bf16.gmra.mxu0 %v2568_v1  ;;  %2750 = vmatmul.bf16.gmra.mxu1 %v2568_v1  ;;  %v1710_v58 = vadd.f32 %v1554_v21, %v1226_v6  ;;  %v4141_v31 = vor.u32 %v4700_v10, %v4140_v2  ;;  %v4142_v1 = vld [vmem:[%s6349_s3 + $0x8] sm:$0xf0]  ;;  %v1953_v2 = vld [vmem:[#allocation2 + $0x11] ss:$2 sm:$0xff] }
 0x284   : > { %v1880_v30 = vmax.f32 %v1842_v43, %v1843_v53  ;;  %v1323_v43 = vadd.f32 %v1322_v32, %v6405_v5  ;;  %v4145_v23 = vor.u32 %v4699_v46, %v4142_v1  ;;  %v1919_v10 = vld [vmem:[#allocation2] ss:$2 sm:$0xff] }
 0x285   : > { %v1643_v47 = vpop.f32.mrf.mxu1  ;;  %v1780_v27 = vadd.f32 %v5518_v17, %v1710_v58  ;;  %2392 = vmatpush.bf16.msra.mxu2 %v4141_v31  ;;  %v1951_v31 = vld [vmem:[#allocation2 + $0x1] ss:$2 sm:$0xff] }
 0x286   : > { %1912 = vst [vmem:[#allocation2 + $0xd0] sm:$0xff] %v1880_v30  ;;  %v1711_v60 = vadd.f32 %v1643_v47, %v1315_v51  ;;  %2441 = vmatpush.bf16.msra.mxu3 %v4145_v23  ;;  %v1982_v1 = vmax.f32 %v1919_v10, %v1951_v31  ;;  %v1923_v23 = vld [vmem:[#allocation2 + $0x20] ss:$2 sm:$0xff] }
 0x287   : > { %v1844_v15 = vmax.f32 %v1780_v27, 0.0 }
 0x288   : > { %v1781_v14 = vadd.f32 %v5520_v45, %v1711_v60  ;;  %v1235_v24 = vpop.f32.mrf.mxu2 }
 0x28a   : > { %v1845_v20 = vmax.f32 %v1781_v14, 0.0  ;;  %v1557_v35 = vpop.f32.mrf.mxu0 }
 0x28b   : > { %v1712_v22 = vadd.f32 %v1557_v35, %v1229_v16 }
 0x28c   : > { %v1881_v34 = vmax.f32 %v1844_v15, %v1845_v20 }
 0x28d   : > { %v1646_v9 = vpop.f32.mrf.mxu1  ;;  %v1782_v42 = vadd.f32 %v5518_v17, %v1712_v22  ;;  %v2047_v29 = vld [vmem:[#allocation2 + $0xc2] ss:$2 sm:$0xff]  ;;  %v2079_v48 = vld [vmem:[#allocation2 + $0xc3] ss:$2 sm:$0xff] }
 0x28e   : > { %1913 = vst [vmem:[#allocation2 + $0xd8] sm:$0xff] %v1881_v34  ;;  %v1713_v19 = vadd.f32 %v1646_v9, %v1318_v12  ;;  %v2508_v59 = vld [vmem:[#allocation2 + $0xc4] ss:$2 sm:$0xff]  ;;  %v2540_v6 = vld [vmem:[#allocation2 + $0xc5] ss:$2 sm:$0xff]  ;;  %v2098_v58 = vmax.f32 %v2047_v29, %v2079_v48  ;;  %v1324_v34 = vpop.f32.mrf.mxu3 }
 0x28f   : > { %v1846_v63 = vmax.f32 %v1782_v42, 0.0  ;;  %v2559_v37 = vmax.f32 %v2508_v59, %v2540_v6  ;;  %v1325_v0 = vadd.f32 %v1324_v34, %v6407_v3  ;;  %v1925_v59 = vld [vmem:[#allocation2 + $0x30] ss:$2 sm:$0xff]  ;;  %v1957_v6 = vld [vmem:[#allocation2 + $0x31] ss:$2 sm:$0xff] }
 0x290   : > { %v1783_v28 = vadd.f32 %v5520_v45, %v1713_v19  ;;  %v6406_v19 = vld [vmem:[#allocation27_spill] sm:$0xff] }
 0x291   : > { %v1236_v40 = vadd.f32 %v1235_v24, %v6406_v19  ;;  %v1963_v19 = vld [vmem:[#allocation2 + $0x61] ss:$2 sm:$0xff] }
 0x292   : > { %v1847_v13 = vmax.f32 %v1783_v28, 0.0  ;;  %v1559_v33 = vpop.f32.mrf.mxu0 }
 0x293   : > { %v1714_v44 = vadd.f32 %v1559_v33, %v1231_v36 }
 0x294   : > { %v1882_v61 = vmax.f32 %v1846_v63, %v1847_v13 }
 0x295   : > { %v1648_v26 = vpop.f32.mrf.mxu1  ;;  %v1784_v11 = vadd.f32 %v5518_v17, %v1714_v44 }
 0x296   : > { %1914 = vst [vmem:[#allocation2 + $0xe0] sm:$0xff] %v1882_v61  ;;  %v1715_v50 = vadd.f32 %v1648_v26, %v1320_v56 }
 0x297   : > { %v1848_v18 = vmax.f32 %v1784_v11, 0.0 }
 0x298   : > { %v1785_v57 = vadd.f32 %v5520_v45, %v1715_v50 }
 0x29a   : > { %v1849_v8 = vmax.f32 %v1785_v57, 0.0  ;;  %v1562_v51 = vpop.f32.mrf.mxu0 }
 0x29b   : > { %v1716_v27 = vadd.f32 %v1562_v51, %v1234_v25  ;;  %v1955_v51 = vld [vmem:[#allocation2 + $0x21] ss:$2 sm:$0xff] }
 0x29c   : > { %v1883_v53 = vmax.f32 %v1848_v18, %v1849_v8  ;;  %v6005_v18 = vpop.f32.mrf.mxu3  ;;  %v1921_v8 = vld [vmem:[#allocation2 + $0x10] ss:$2 sm:$0xff] }
 0x29d   : > { %v1651_v30 = vpop.f32.mrf.mxu1  ;;  %v2049_v21 = vld [vmem:[#allocation2 + $0xd2] ss:$2 sm:$0xff]  ;;  %v2081_v47 = vld [vmem:[#allocation2 + $0xd3] ss:$2 sm:$0xff]  ;;  %v1786_v38 = vadd.f32 %v5518_v17, %v1716_v27  ;;  %v1983_v46 = vmax.f32 %v1921_v8, %v1953_v2 }
 0x29e   : > { %v2510_v60 = vld [vmem:[#allocation2 + $0xd4] ss:$2 sm:$0xff]  ;;  %1915 = vst [vmem:[#allocation2 + $0xe8] sm:$0xff] %v1883_v53  ;;  %v1717_v14 = vadd.f32 %v1651_v30, %v1323_v43  ;;  %v2099_v15 = vmax.f32 %v2049_v21, %v2081_v47  ;;  %v2542_v20 = vld [vmem:[#allocation2 + $0xd5] ss:$2 sm:$0xff]  ;;  %v1985_v30 = vmax.f32 %v1925_v59, %v1957_v6  ;;  %v1984_v21 = vmax.f32 %v1923_v23, %v1955_v51 }
 0x29f   : > { %v2560_v16 = vmax.f32 %v2510_v60, %v2542_v20  ;;  %v1850_v9 = vmax.f32 %v1786_v38, 0.0  ;;  %v1998_v55 = vpack.c.bf16 %v1983_v46, %v1982_v1  ;;  %v1929_v27 = vld [vmem:[#allocation2 + $0x50] ss:$2 sm:$0xff]  ;;  %v1977_v2 = vld [vmem:[#allocation2 + $0xd1] ss:$2 sm:$0xff] }
 0x2a0   : > { %v1787_v12 = vadd.f32 %v5520_v45, %v1717_v14  ;;  %v2108_v49 = vpack.c.bf16 %v2099_v15, %v2098_v58  ;;  %v1999_v47 = vpack.c.bf16 %v1985_v30, %v1984_v21  ;;  %v1961_v14 = vld [vmem:[#allocation2 + $0x51] ss:$2 sm:$0xff]  ;;  %v1945_v8 = vld [vmem:[#allocation2 + $0xd0] ss:$2 sm:$0xff]  ;;  %v1943_v46 = vld [vmem:[#allocation2 + $0xc0] ss:$2 sm:$0xff] }
 0x2a1   : > { %v2569_v35 = vpack.c.bf16 %v2560_v16, %v2559_v37  ;;  %v1927_v37 = vld [vmem:[#allocation2 + $0x40] ss:$2 sm:$0xff]  ;;  %v1959_v16 = vld [vmem:[#allocation2 + $0x41] ss:$2 sm:$0xff]  ;;  %v1987_v38 = vmax.f32 %v1929_v27, %v1961_v14 }
 0x2a2   : > { %v1851_v22 = vmax.f32 %v1787_v12, 0.0  ;;  %2245 = vmatmul.bf16.gmra.mxu2 %v2108_v49  ;;  %2294 = vmatmul.bf16.gmra.mxu3 %v2108_v49  ;;  %v1564_v42 = vpop.f32.mrf.mxu0  ;;  %v1986_v12 = vmax.f32 %v1927_v37, %v1959_v16  ;;  %v1975_v1 = vld [vmem:[#allocation2 + $0xc1] ss:$2 sm:$0xff] }
 0x2a3   : > { %2706 = vmatmul.bf16.gmra.mxu0 %v2569_v35  ;;  %2755 = vmatmul.bf16.gmra.mxu1 %v2569_v35  ;;  %v1718_v4 = vadd.f32 %v1564_v42, %v1236_v40  ;;  %v1933_v35 = vld [vmem:[#allocation2 + $0x70] ss:$2 sm:$0xff]  ;;  %v1994_v59 = vmax.f32 %v1943_v46, %v1975_v1 }
 0x2a4   : > { %v1884_v7 = vmax.f32 %v1850_v9, %v1851_v22  ;;  %v6009_v5 = vpop.f32.mrf.mxu3  ;;  %v2000_v49 = vpack.c.bf16 %v1987_v38, %v1986_v12  ;;  %v1965_v9 = vld [vmem:[#allocation2 + $0x71] ss:$2 sm:$0xff]  ;;  %v1931_v22 = vld [vmem:[#allocation2 + $0x60] ss:$2 sm:$0xff] }
 0x2a5   : > { %v1653_v28 = vpop.f32.mrf.mxu1  ;;  %v1788_v63 = vadd.f32 %v5518_v17, %v1718_v4  ;;  %v1989_v40 = vmax.f32 %v1933_v35, %v1965_v9  ;;  %v1979_v27 = vld [vmem:[#allocation2 + $0xe1] ss:$2 sm:$0xff] }
 0x2a6   : > { %1916 = vst [vmem:[#allocation2 + $0xf0] sm:$0xff] %v1884_v7  ;;  %v1719_v39 = vadd.f32 %v1653_v28, %v1325_v0  ;;  %v1988_v7 = vmax.f32 %v1931_v22, %v1963_v19 }
 0x2a7   : > { %v1852_v52 = vmax.f32 %v1788_v63, 0.0  ;;  %v1969_v63 = vld [vmem:[#allocation2 + $0x91] ss:$2 sm:$0xff] }
 0x2a8   : > { %v1789_v13 = vadd.f32 %v5520_v45, %v1719_v39  ;;  %v6003_v45 = vpop.f32.mrf.mxu2  ;;  %v2001_v42 = vpack.c.bf16 %v1989_v40, %v1988_v7  ;;  %v1937_v39 = vld [vmem:[#allocation2 + $0x90] ss:$2 sm:$0xff] }
 0x2a9   : > { %v4762_v7 = vld [vmem:[%s6351_s5 + $0x78] sm:$0xff] }
 0x2aa   : > { %v1853_v62 = vmax.f32 %v1789_v13, 0.0  ;;  %v1935_v13 = vld [vmem:[#allocation2 + $0x80] ss:$2 sm:$0xff]  ;;  %v2677_v38 = vpop.f32.mrf.mxu0  ;;  %3016 = vmatpush.bf16.msrb.mxu2 %v4762_v7 }
 0x2ac   : > { %v1885_v36 = vmax.f32 %v1852_v52, %v1853_v62  ;;  %v6013_v53 = vpop.f32.mrf.mxu3  ;;  %v1967_v52 = vld [vmem:[#allocation2 + $0x81] ss:$2 sm:$0xff]  ;;  %v1991_v62 = vmax.f32 %v1937_v39, %v1969_v63 }
 0x2ad   : > { %v2051_v54 = vld [vmem:[#allocation2 + $0xe2] ss:$2 sm:$0xff]  ;;  %v2083_v56 = vld [vmem:[#allocation2 + $0xe3] ss:$2 sm:$0xff]  ;;  %v2726_v12 = vpop.f32.mrf.mxu1 }
 0x2ae   : > { %1917 = vst [vmem:[#allocation2 + $0xf8] sm:$0xff] %v1885_v36  ;;  %v2512_v61 = vld [vmem:[#allocation2 + $0xe4] ss:$2 sm:$0xff]  ;;  %v2544_v33 = vld [vmem:[#allocation2 + $0xe5] ss:$2 sm:$0xff]  ;;  %v2100_v41 = vmax.f32 %v2051_v54, %v2083_v56  ;;  %v1990_v36 = vmax.f32 %v1935_v13, %v1967_v52 }
 0x2af   : > { %v2561_v57 = vmax.f32 %v2512_v61, %v2544_v33 }
 0x2b0   : > { %v6007_v25 = vpop.f32.mrf.mxu2  ;;  %v2002_v61 = vpack.c.bf16 %v1991_v62, %v1990_v36  ;;  %v2798_v62 = vld [vmem:[%s6350_s4] sm:$0x3] }
 0x2b2   : > { %v2679_v19 = vpop.f32.mrf.mxu0 }
 0x2b4   : > { %v6017_v60 = vpop.f32.mrf.mxu3 }
 0x2b5   : > { %v2053_v26 = vld [vmem:[#allocation2 + $0xf2] ss:$2 sm:$0xff]  ;;  %v2085_v44 = vld [vmem:[#allocation2 + $0xf3] ss:$2 sm:$0xff]  ;;  %v2728_v40 = vpop.f32.mrf.mxu1 }
 0x2b6   : > { %v2514_v50 = vld [vmem:[#allocation2 + $0xf4] ss:$2 sm:$0xff]  ;;  %v2101_v32 = vmax.f32 %v2053_v26, %v2085_v44  ;;  %v2546_v11 = vld [vmem:[#allocation2 + $0xf5] ss:$2 sm:$0xff] }
 0x2b7   : > { %v2562_v29 = vmax.f32 %v2514_v50, %v2546_v11  ;;  %v1941_v44 = vld [vmem:[#allocation2 + $0xb0] ss:$2 sm:$0xff]  ;;  %v1973_v50 = vld [vmem:[#allocation2 + $0xb1] ss:$2 sm:$0xff] }
 0x2b8   : > { %v2109_v48 = vpack.c.bf16 %v2101_v32, %v2100_v41  ;;  %v6011_v43 = vpop.f32.mrf.mxu2  ;;  %v1939_v41 = vld [vmem:[#allocation2 + $0xa0] ss:$2 sm:$0xff]  ;;  %v1971_v32 = vld [vmem:[#allocation2 + $0xa1] ss:$2 sm:$0xff]  ;;  %v1993_v11 = vmax.f32 %v1941_v44, %v1973_v50  ;;  %v1949_v30 = vld [vmem:[#allocation2 + $0xf0] ss:$2 sm:$0xff] }
 0x2b9   : > { %v2570_v17 = vpack.c.bf16 %v2562_v29, %v2561_v57  ;;  %v1992_v57 = vmax.f32 %v1939_v41, %v1971_v32  ;;  %v1981_v21 = vld [vmem:[#allocation2 + $0xf1] ss:$2 sm:$0xff]  ;;  %v6077_v50 = vperm.slane %v2798_v62, 0  ;;  %v6080_v32 = vperm.slane %v2798_v62, 1 }
 0x2ba   : > { %2250 = vmatmul.bf16.gmra.mxu2 %v2109_v48  ;;  %2299 = vmatmul.bf16.gmra.mxu3 %v2109_v48  ;;  %v1997_v14 = vmax.f32 %v1949_v30, %v1981_v21  ;;  %v2682_v13 = vpop.f32.mrf.mxu0 }
 0x2bb   : > { %2711 = vmatmul.bf16.gmra.mxu0 %v2570_v17  ;;  %2760 = vmatmul.bf16.gmra.mxu1 %v2570_v17  ;;  %v2003_v29 = vpack.c.bf16 %v1993_v11, %v1992_v57 }
 0x2bc   : > { %v6021_v20 = vpop.f32.mrf.mxu3 }
 0x2bd   : > { %v2731_v52 = vpop.f32.mrf.mxu1 }
 0x2c0   : > { %v6015_v58 = vpop.f32.mrf.mxu2 }
 0x2c2   : > { %v2684_v46 = vpop.f32.mrf.mxu0 }
 0x2c4   : > { %v6025_v34 = vpop.f32.mrf.mxu3 }
 0x2c8   : > { %v6019_v15 = vpop.f32.mrf.mxu2 }
 0x2ca   : > { %2393 = vmatmul.bf16.vlgmr.msra.gmra.mxu2 %v1998_v55  ;;  %2442 = vmatmul.bf16.vlgmr.msra.gmra.mxu3 %v1998_v55  ;;  %v1995_v55 = vmax.f32 %v1945_v8, %v1977_v2  ;;  %v4753_v8 = vld [vmem:[%s6351_s5 + $0x30] sm:$0xff]  ;;  %v2687_v62 = vpop.f32.mrf.mxu0 }
 0x2cc   : > { %v6029_v0 = vpop.f32.mrf.mxu3  ;;  %v2004_v6 = vpack.c.bf16 %v1995_v55, %v1994_v59 }
 0x2d0   : > { %v6023_v24 = vpop.f32.mrf.mxu2 }
 0x2d4   : > { %v6033_v4 = vpop.f32.mrf.mxu3 }
 0x2d8   : > { %v6027_v3 = vpop.f32.mrf.mxu2 }
 0x2da   : > { %2398 = vmatmul.bf16.gmra.mxu2 %v1999_v47  ;;  %2447 = vmatmul.bf16.gmra.mxu3 %v1999_v47  ;;  %v1947_v47 = vld [vmem:[#allocation2 + $0xe0] ss:$2 sm:$0xff] }
 0x2e0   : > { %v6031_v28 = vpop.f32.mrf.mxu2 }
 0x2e5   : > { %v6037_v56 = vpop.f32.mrf.mxu3 }
 0x2e8   : > { %v6035_v54 = vpop.f32.mrf.mxu2 }
 0x2ea   : > { %2403 = vmatmul.bf16.gmra.mxu2 %v2000_v49  ;;  %2452 = vmatmul.bf16.gmra.mxu3 %v2000_v49  ;;  %v1996_v49 = vmax.f32 %v1947_v47, %v1979_v27 }
 0x2ec   : > { %v2005_v35 = vpack.c.bf16 %v1997_v14, %v1996_v49 }
 0x2ed   : > { %v6041_v26 = vpop.f32.mrf.mxu3 }
 0x2f0   : > { %v6039_v33 = vpop.f32.mrf.mxu2 }
 0x2fa   : > { %2408 = vmatmul.bf16.gmra.mxu2 %v2001_v42  ;;  %2457 = vmatmul.bf16.gmra.mxu3 %v2001_v42  ;;  %v4754_v42 = vld [vmem:[%s6351_s5 + $0x38] sm:$0xff] }
 0x2fb   : > { %3077 = vmatpush.bf16.msrb.mxu3 %v4754_v42 }
 0x2ff   : > { %3078 = vmatpush.bf16.msrb.mxu3 %v4753_v8 }
 0x305   : > { %v6043_v48 = vpop.f32.mrf.mxu2  ;;  %v6045_v17 = vpop.f32.mrf.mxu3 }
 0x30a   : > { %2413 = vmatmul.bf16.gmra.mxu2 %v2002_v61  ;;  %2462 = vmatmul.bf16.gmra.mxu3 %v2002_v61 }
 0x30d   : > { %v6047_v10 = vpop.f32.mrf.mxu2  ;;  %v6049_v31 = vpop.f32.mrf.mxu3 }
 0x31a   : > { %2418 = vmatmul.bf16.gmra.mxu2 %v2003_v29  ;;  %2467 = vmatmul.bf16.gmra.mxu3 %v2003_v29  ;;  %v4761_v29 = vld [vmem:[%s6351_s5 + $0x70] sm:$0xff] }
 0x31b   : > { %3017 = vmatpush.bf16.msrb.mxu2 %v4761_v29 }
 0x325   : > { %v6051_v23 = vpop.f32.mrf.mxu2  ;;  %v6053_v51 = vpop.f32.mrf.mxu3 }
 0x32a   : > { %2423 = vmatmul.bf16.gmra.mxu2 %v2004_v6  ;;  %2472 = vmatmul.bf16.gmra.mxu3 %v2004_v6 }
 0x32d   : > { %v6055_v37 = vpop.f32.mrf.mxu2  ;;  %v6057_v16 = vpop.f32.mrf.mxu3 }
 0x33a   : > { %2428 = vmatmul.bf16.gmra.mxu2 %v2005_v35  ;;  %2477 = vmatmul.bf16.gmra.mxu3 %v2005_v35 }
 0x33d   : > { %v6059_v9 = vpop.f32.mrf.mxu2  ;;  %v6061_v22 = vpop.f32.mrf.mxu3 }
 0x345   : > { %v6069_v39 = vpop.f32.mrf.mxu2  ;;  %v6071_v63 = vpop.f32.mrf.mxu3 }
 0x34d   : > { %v2394_v36 = vpop.f32.mrf.mxu2  ;;  %v2443_v61 = vpop.f32.mrf.mxu3 }
 0x34e   : > { %v2395_v44 = vadd.f32 %v2394_v36, %v6003_v45  ;;  %v2444_v41 = vadd.f32 %v2443_v61, %v6005_v18  ;;  %v2733_v18 = vpop.f32.mrf.mxu1 }
 0x350   : > { %v2766_v11 = vadd.f32 %v2677_v38, %v2395_v44  ;;  %v2767_v57 = vadd.f32 %v2726_v12, %v2444_v41 }
 0x352   : > { %v2804_v2 = vadd.f32 %v6077_v50, %v2766_v11  ;;  %v2805_v45 = vadd.f32 %v6080_v32, %v2767_v57 }
 0x354   : > { %v2836_v1 = vmax.f32 %v2804_v2, 0.0  ;;  %v2837_v55 = vmax.f32 %v2805_v45, 0.0  ;;  %v2689_v45 = vpop.f32.mrf.mxu0 }
 0x355   : > { %v2396_v59 = vpop.f32.mrf.mxu2  ;;  %v2445_v6 = vpop.f32.mrf.mxu3 }
 0x356   : > { %v2868_v30 = vmax.f32 %v2836_v1, %v2837_v55  ;;  %v2397_v21 = vadd.f32 %v2396_v59, %v6007_v25  ;;  %v2446_v47 = vadd.f32 %v2445_v6, %v6009_v5  ;;  %v2736_v36 = vpop.f32.mrf.mxu1 }
 0x358   : > { %2884 = vst [vmem:[#allocation3] sm:$0xff] %v2868_v30  ;;  %v2768_v27 = vadd.f32 %v2679_v19, %v2397_v21  ;;  %v2769_v14 = vadd.f32 %v2728_v40, %v2446_v47  ;;  %v4760_v19 = vld [vmem:[%s6351_s5 + $0x68] sm:$0xff] }
 0x359   : > { %v4752_v40 = vld [vmem:[%s6351_s5 + $0x28] sm:$0xff]  ;;  %3018 = vmatpush.bf16.msrb.mxu2 %v4760_v19 }
 0x35a   : > { %v2806_v38 = vadd.f32 %v6077_v50, %v2768_v27  ;;  %v2807_v12 = vadd.f32 %v6080_v32, %v2769_v14  ;;  %3079 = vmatpush.bf16.msrb.mxu3 %v4752_v40 }
 0x35c   : > { %v2838_v49 = vmax.f32 %v2806_v38, 0.0  ;;  %v2839_v35 = vmax.f32 %v2807_v12, 0.0 }
 0x35d   : > { %v2399_v7 = vpop.f32.mrf.mxu2  ;;  %v2448_v42 = vpop.f32.mrf.mxu3 }
 0x35e   : > { %v2869_v61 = vmax.f32 %v2838_v49, %v2839_v35  ;;  %v2400_v44 = vadd.f32 %v2399_v7, %v6011_v43  ;;  %v2449_v25 = vadd.f32 %v2448_v42, %v6013_v53  ;;  %v2738_v1 = vpop.f32.mrf.mxu1  ;;  %v2692_v35 = vpop.f32.mrf.mxu0 }
 0x360   : > { %2885 = vst [vmem:[#allocation3 + $0x8] sm:$0xff] %v2869_v61  ;;  %v2770_v5 = vadd.f32 %v2682_v13, %v2400_v44  ;;  %v2771_v41 = vadd.f32 %v2731_v52, %v2449_v25 }
 0x362   : > { %v2808_v11 = vadd.f32 %v6077_v50, %v2770_v5  ;;  %v2809_v57 = vadd.f32 %v6080_v32, %v2771_v41 }
 0x364   : > { %v2840_v43 = vmax.f32 %v2808_v11, 0.0  ;;  %v2841_v29 = vmax.f32 %v2809_v57, 0.0 }
 0x365   : > { %v2401_v53 = vpop.f32.mrf.mxu2  ;;  %v2450_v8 = vpop.f32.mrf.mxu3 }
 0x366   : > { %v2870_v13 = vmax.f32 %v2840_v43, %v2841_v29  ;;  %v2402_v52 = vadd.f32 %v2401_v53, %v6015_v58  ;;  %v2451_v2 = vadd.f32 %v2450_v8, %v6017_v60  ;;  %v2741_v7 = vpop.f32.mrf.mxu1  ;;  %v2694_v57 = vpop.f32.mrf.mxu0 }
 0x368   : > { %2886 = vst [vmem:[#allocation3 + $0x10] sm:$0xff] %v2870_v13  ;;  %v2772_v55 = vadd.f32 %v2684_v46, %v2402_v52  ;;  %v2773_v59 = vadd.f32 %v2733_v18, %v2451_v2  ;;  %v4759_v46 = vld [vmem:[%s6351_s5 + $0x60] sm:$0xff] }
 0x369   : > { %v4751_v18 = vld [vmem:[%s6351_s5 + $0x20] sm:$0xff]  ;;  %3019 = vmatpush.bf16.msrb.mxu2 %v4759_v46 }
 0x36a   : > { %v2810_v6 = vadd.f32 %v6077_v50, %v2772_v55  ;;  %v2811_v30 = vadd.f32 %v6080_v32, %v2773_v59  ;;  %3080 = vmatpush.bf16.msrb.mxu3 %v4751_v18 }
 0x36c   : > { %v2842_v21 = vmax.f32 %v2810_v6, 0.0  ;;  %v2843_v47 = vmax.f32 %v2811_v30, 0.0 }
 0x36d   : > { %v2404_v27 = vpop.f32.mrf.mxu2  ;;  %v2453_v14 = vpop.f32.mrf.mxu3 }
 0x36e   : > { %v2871_v38 = vmax.f32 %v2842_v21, %v2843_v47  ;;  %v2405_v12 = vadd.f32 %v2404_v27, %v6019_v15  ;;  %v2454_v58 = vadd.f32 %v2453_v14, %v6021_v20  ;;  %v2743_v43 = vpop.f32.mrf.mxu1  ;;  %v2697_v47 = vpop.f32.mrf.mxu0 }
 0x370   : > { %2887 = vst [vmem:[#allocation3 + $0x18] sm:$0xff] %v2871_v38  ;;  %v2774_v60 = vadd.f32 %v2687_v62, %v2405_v12  ;;  %v2775_v49 = vadd.f32 %v2736_v36, %v2454_v58 }
 0x372   : > { %v2812_v42 = vadd.f32 %v6077_v50, %v2774_v60  ;;  %v2813_v61 = vadd.f32 %v6080_v32, %v2775_v49 }
 0x374   : > { %v2844_v15 = vmax.f32 %v2812_v42, 0.0  ;;  %v2845_v20 = vmax.f32 %v2813_v61, 0.0 }
 0x375   : > { %v2406_v62 = vpop.f32.mrf.mxu2  ;;  %v2455_v36 = vpop.f32.mrf.mxu3 }
 0x376   : > { %v2872_v44 = vmax.f32 %v2844_v15, %v2845_v20  ;;  %v2407_v25 = vadd.f32 %v2406_v62, %v6023_v24  ;;  %v2456_v5 = vadd.f32 %v2455_v36, %v6025_v34  ;;  %v2746_v27 = vpop.f32.mrf.mxu1  ;;  %v2699_v62 = vpop.f32.mrf.mxu0 }
 0x378   : > { %2888 = vst [vmem:[#allocation3 + $0x20] sm:$0xff] %v2872_v44  ;;  %v2776_v41 = vadd.f32 %v2689_v45, %v2407_v25  ;;  %v2777_v19 = vadd.f32 %v2738_v1, %v2456_v5  ;;  %v4758_v45 = vld [vmem:[%s6351_s5 + $0x58] sm:$0xff]  ;;  %v4757_v44 = vld [vmem:[%s6351_s5 + $0x50] sm:$0xff] }
 0x379   : > { %v4750_v1 = vld [vmem:[%s6351_s5 + $0x18] sm:$0xff]  ;;  %3020 = vmatpush.bf16.msrb.mxu2 %v4758_v45  ;;  %v4749_v25 = vld [vmem:[%s6351_s5 + $0x10] sm:$0xff] }
 0x37a   : > { %v2814_v40 = vadd.f32 %v6077_v50, %v2776_v41  ;;  %v2815_v11 = vadd.f32 %v6080_v32, %v2777_v19  ;;  %3081 = vmatpush.bf16.msrb.mxu3 %v4750_v1  ;;  %v4778_v45 = vld [vmem:[%s6351_s5 + $0xf8] sm:$0xff] }
 0x37c   : > { %v2846_v29 = vmax.f32 %v2814_v40, 0.0  ;;  %v2847_v53 = vmax.f32 %v2815_v11, 0.0 }
 0x37d   : > { %v2409_v8 = vpop.f32.mrf.mxu2  ;;  %v2458_v13 = vpop.f32.mrf.mxu3  ;;  %3021 = vmatpush.bf16.msrb.mxu2 %v4757_v44 }
 0x37e   : > { %v2873_v52 = vmax.f32 %v2846_v29, %v2847_v53  ;;  %v2410_v2 = vadd.f32 %v2409_v8, %v6027_v3  ;;  %v2459_v24 = vadd.f32 %v2458_v13, %v6029_v0  ;;  %3082 = vmatpush.bf16.msrb.mxu3 %v4749_v25  ;;  %v4756_v29 = vld [vmem:[%s6351_s5 + $0x48] sm:$0xff]  ;;  %v2702_v8 = vpop.f32.mrf.mxu0 }
 0x37f   : > { %v4748_v53 = vld [vmem:[%s6351_s5 + $0x8] sm:$0xff] }
 0x380   : > { %2889 = vst [vmem:[#allocation3 + $0x28] sm:$0xff] %v2873_v52  ;;  %v2778_v34 = vadd.f32 %v2692_v35, %v2410_v2  ;;  %v2779_v55 = vadd.f32 %v2741_v7, %v2459_v24 }
 0x381   : > { %3022 = vmatpush.bf16.msrb.mxu2 %v4756_v29  ;;  %v4773_v29 = vld [vmem:[%s6351_s5 + $0xd0] sm:$0xff] }
 0x382   : > { %v2816_v59 = vadd.f32 %v6077_v50, %v2778_v34  ;;  %v2817_v6 = vadd.f32 %v6080_v32, %v2779_v55  ;;  %3083 = vmatpush.bf16.msrb.mxu3 %v4748_v53  ;;  %v4747_v34 = vld [vmem:[%s6351_s5] sm:$0xff]  ;;  %v4770_v55 = vld [vmem:[%s6351_s5 + $0xb8] sm:$0xff] }
 0x384   : > { %v2848_v3 = vmax.f32 %v2816_v59, 0.0  ;;  %v2849_v30 = vmax.f32 %v2817_v6, 0.0 }
 0x385   : > { %v2411_v0 = vpop.f32.mrf.mxu2  ;;  %v2460_v21 = vpop.f32.mrf.mxu3 }
 0x386   : > { %v2874_v14 = vmax.f32 %v2848_v3, %v2849_v30  ;;  %v2412_v38 = vadd.f32 %v2411_v0, %v6031_v28  ;;  %v2461_v12 = vadd.f32 %v2460_v21, %v6033_v4  ;;  %v2748_v28 = vpop.f32.mrf.mxu1  ;;  %3084 = vmatpush.bf16.msrb.mxu3 %v4747_v34 }
 0x388   : > { %2890 = vst [vmem:[#allocation3 + $0x30] sm:$0xff] %v2874_v14  ;;  %v2780_v58 = vadd.f32 %v2694_v57, %v2412_v38  ;;  %v2781_v60 = vadd.f32 %v2743_v43, %v2461_v12  ;;  %v2704_v12 = vpop.f32.mrf.mxu0 }
 0x38a   : > { %v2818_v49 = vadd.f32 %v6077_v50, %v2780_v58  ;;  %v2819_v46 = vadd.f32 %v6080_v32, %v2781_v60  ;;  %3270 = vmatpush.bf16.msra.mxu3 %v4778_v45 }
 0x38c   : > { %v2850_v18 = vmax.f32 %v2818_v49, 0.0  ;;  %v2851_v35 = vmax.f32 %v2819_v46, 0.0  ;;  %v4776_v49 = vld [vmem:[%s6351_s5 + $0xe8] sm:$0xff] }
 0x38d   : > { %v2414_v7 = vpop.f32.mrf.mxu2  ;;  %v2463_v42 = vpop.f32.mrf.mxu3 }
 0x38e   : > { %v2875_v61 = vmax.f32 %v2850_v18, %v2851_v35  ;;  %v2415_v15 = vadd.f32 %v2414_v7, %v6035_v54  ;;  %v2464_v20 = vadd.f32 %v2463_v42, %v6037_v56  ;;  %v2751_v13 = vpop.f32.mrf.mxu1 }
 0x390   : > { %2891 = vst [vmem:[#allocation3 + $0x38] sm:$0xff] %v2875_v61  ;;  %v2782_v4 = vadd.f32 %v2697_v47, %v2415_v15  ;;  %v2783_v36 = vadd.f32 %v2746_v27, %v2464_v20  ;;  %v4769_v47 = vld [vmem:[%s6351_s5 + $0xb0] sm:$0xff]  ;;  %v4767_v20 = vld [vmem:[%s6351_s5 + $0xa0] sm:$0xff] }
 0x391   : > { %v4777_v27 = vld [vmem:[%s6351_s5 + $0xf0] sm:$0xff] }
 0x392   : > { %v2820_v5 = vadd.f32 %v6077_v50, %v2782_v4  ;;  %v2821_v41 = vadd.f32 %v6080_v32, %v2783_v36  ;;  %3271 = vmatpush.bf16.msra.mxu3 %v4777_v27  ;;  %v2707_v36 = vpop.f32.mrf.mxu0 }
 0x394   : > { %v2852_v54 = vmax.f32 %v2820_v5, 0.0  ;;  %v2853_v56 = vmax.f32 %v2821_v41, 0.0  ;;  %v4774_v5 = vld [vmem:[%s6351_s5 + $0xd8] sm:$0xff] }
 0x395   : > { %v2416_v19 = vpop.f32.mrf.mxu2  ;;  %v2465_v40 = vpop.f32.mrf.mxu3 }
 0x396   : > { %v2876_v11 = vmax.f32 %v2852_v54, %v2853_v56  ;;  %v2417_v57 = vadd.f32 %v2416_v19, %v6039_v33  ;;  %v2466_v43 = vadd.f32 %v2465_v40, %v6041_v26  ;;  %v4755_v26 = vld [vmem:[%s6351_s5 + $0x40] sm:$0xff]  ;;  %v2753_v58 = vpop.f32.mrf.mxu1  ;;  %3272 = vmatpush.bf16.msra.mxu3 %v4776_v49 }
 0x397   : > { %3023 = vmatpush.bf16.msrb.mxu2 %v4755_v26 }
 0x398   : > { %2892 = vst [vmem:[#allocation3 + $0x40] sm:$0xff] %v2876_v11  ;;  %v2784_v52 = vadd.f32 %v2699_v62, %v2417_v57  ;;  %v2785_v2 = vadd.f32 %v2748_v28, %v2466_v43  ;;  %v4775_v62 = vld [vmem:[%s6351_s5 + $0xe0] sm:$0xff]  ;;  %v4765_v43 = vld [vmem:[%s6351_s5 + $0x90] sm:$0xff] }
 0x39a   : > { %v2822_v24 = vadd.f32 %v6077_v50, %v2784_v52  ;;  %v2823_v33 = vadd.f32 %v6080_v32, %v2785_v2  ;;  %3273 = vmatpush.bf16.msra.mxu3 %v4775_v62  ;;  %v2709_v2 = vpop.f32.mrf.mxu0 }
 0x39b   : > { %3173 = vmatpush.bf16.msra.mxu2 %v4770_v55 }
 0x39c   : > { %v2854_v1 = vmax.f32 %v2822_v24, 0.0  ;;  %v2855_v59 = vmax.f32 %v2823_v33, 0.0 }
 0x39d   : > { %v2419_v6 = vpop.f32.mrf.mxu2  ;;  %v2468_v3 = vpop.f32.mrf.mxu3 }
 0x39e   : > { %v2877_v30 = vmax.f32 %v2854_v1, %v2855_v59  ;;  %v2420_v0 = vadd.f32 %v2419_v6, %v6043_v48  ;;  %v2469_v21 = vadd.f32 %v2468_v3, %v6045_v17  ;;  %v4768_v17 = vld [vmem:[%s6351_s5 + $0xa8] sm:$0xff]  ;;  %v2756_v44 = vpop.f32.mrf.mxu1  ;;  %3274 = vmatpush.bf16.msra.mxu3 %v4774_v5  ;;  %v4763_v6 = vld [vmem:[%s6351_s5 + $0x80] sm:$0xff] }
 0x39f   : > { %3174 = vmatpush.bf16.msra.mxu2 %v4769_v47  ;;  %v4771_v3 = vld [vmem:[%s6351_s5 + $0xc0] sm:$0xff] }
 0x3a0   : > { %2893 = vst [vmem:[#allocation3 + $0x48] sm:$0xff] %v2877_v30  ;;  %v2786_v14 = vadd.f32 %v2702_v8, %v2420_v0  ;;  %v2787_v38 = vadd.f32 %v2751_v13, %v2469_v21  ;;  %v4764_v13 = vld [vmem:[%s6351_s5 + $0x88] sm:$0xff] }
 0x3a2   : > { %v2824_v60 = vadd.f32 %v6077_v50, %v2786_v14  ;;  %v2825_v48 = vadd.f32 %v6080_v32, %v2787_v38  ;;  %3275 = vmatpush.bf16.msra.mxu3 %v4773_v29 }
 0x3a3   : > { %3175 = vmatpush.bf16.msra.mxu2 %v4768_v17 }
 0x3a4   : > { %v2856_v46 = vmax.f32 %v2824_v60, 0.0  ;;  %v2857_v18 = vmax.f32 %v2825_v48, 0.0 }
 0x3a5   : > { %v2421_v35 = vpop.f32.mrf.mxu2  ;;  %v2470_v7 = vpop.f32.mrf.mxu3 }
 0x3a6   : > { %v2878_v42 = vmax.f32 %v2856_v46, %v2857_v18  ;;  %v2422_v61 = vadd.f32 %v2421_v35, %v6047_v10  ;;  %v2471_v15 = vadd.f32 %v2470_v7, %v6049_v31  ;;  %v4766_v31 = vld [vmem:[%s6351_s5 + $0x98] sm:$0xff]  ;;  %v2758_v24 = vpop.f32.mrf.mxu1 }
 0x3a7   : > { %3176 = vmatpush.bf16.msra.mxu2 %v4767_v20 }
 0x3a8   : > { %2894 = vst [vmem:[#allocation3 + $0x50] sm:$0xff] %v2878_v42  ;;  %v2788_v28 = vadd.f32 %v2704_v12, %v2422_v61  ;;  %v2789_v4 = vadd.f32 %v2753_v58, %v2471_v15 }
 0x3aa   : > { %v2826_v25 = vadd.f32 %v6077_v50, %v2788_v28  ;;  %v2827_v10 = vadd.f32 %v6080_v32, %v2789_v4 }
 0x3ab   : > { %3177 = vmatpush.bf16.msra.mxu2 %v4766_v31 }
 0x3ac   : > { %v2858_v41 = vmax.f32 %v2826_v25, 0.0  ;;  %v2859_v54 = vmax.f32 %v2827_v10, 0.0  ;;  %v2942_v25 = vld [vmem:[#allocation3 + $0x3] ss:$16 sm:$0x3] }
 0x3ad   : > { %v2424_v56 = vpop.f32.mrf.mxu2  ;;  %v2473_v19 = vpop.f32.mrf.mxu3  ;;  %v2943_v10 = vld [vmem:[#allocation3 + $0x3] ss:$16 sm:$0xc] }
 0x3ae   : > { %v2879_v40 = vmax.f32 %v2858_v41, %v2859_v54  ;;  %v2425_v11 = vadd.f32 %v2424_v56, %v6051_v23  ;;  %v2474_v57 = vadd.f32 %v2473_v19, %v6053_v51  ;;  %v4772_v23 = vld [vmem:[%s6351_s5 + $0xc8] sm:$0xff]  ;;  %v2761_v27 = vpop.f32.mrf.mxu1 }
 0x3af   : > { %3178 = vmatpush.bf16.msra.mxu2 %v4765_v43  ;;  %3276 = vmatpush.bf16.msra.mxu3 %v4772_v23  ;;  %v2900_v41 = vld [vmem:[#allocation3] ss:$16 sm:$0x3]  ;;  %v2909_v56 = vld [vmem:[#allocation3 + $0x1] ss:$16 sm:$0xc] }
 0x3b0   : > { %2895 = vst [vmem:[#allocation3 + $0x58] sm:$0xff] %v2879_v40  ;;  %v2790_v53 = vadd.f32 %v2707_v36, %v2425_v11  ;;  %v2791_v8 = vadd.f32 %v2756_v44, %v2474_v57  ;;  %v2934_v36 = vld [vmem:[#allocation3 + $0x2] ss:$16 sm:$0x3]  ;;  %v2944_v57 = vor.u32 %v2943_v10, %v2942_v25 }
 0x3b1   : > { %v2935_v44 = vld [vmem:[#allocation3 + $0x2] ss:$16 sm:$0xc]  ;;  %v2901_v54 = vld [vmem:[#allocation3] ss:$16 sm:$0xc] }
 0x3b2   : > { %v2828_v51 = vadd.f32 %v6077_v50, %v2790_v53  ;;  %v2829_v52 = vadd.f32 %v6080_v32, %v2791_v8  ;;  %v2937_v19 = vld [vmem:[#allocation3 + $0x2] ss:$16 sm:$0x30]  ;;  %v2936_v11 = vor.u32 %v2935_v44, %v2934_v36  ;;  %v2903_v43 = vld [vmem:[#allocation3] ss:$16 sm:$0x30]  ;;  %v2902_v29 = vor.u32 %v2901_v54, %v2900_v41 }
 0x3b3   : > { %3179 = vmatpush.bf16.msra.mxu2 %v4764_v13  ;;  %3277 = vmatpush.bf16.msra.mxu3 %v4771_v3  ;;  %v2908_v53 = vld [vmem:[#allocation3 + $0x1] ss:$16 sm:$0x3]  ;;  %v4783_v54 = vld [vmem:[%s6351_s5 + $0x120] sm:$0xff] }
 0x3b4   : > { %v2860_v33 = vmax.f32 %v2828_v51, 0.0  ;;  %v2861_v26 = vmax.f32 %v2829_v52, 0.0  ;;  %v2911_v8 = vld [vmem:[#allocation3 + $0x1] ss:$16 sm:$0x30]  ;;  %v2938_v23 = vor.u32 %v2937_v19, %v2936_v11  ;;  %v2910_v52 = vor.u32 %v2909_v56, %v2908_v53  ;;  %v4791_v19 = vld [vmem:[%s6351_s5 + $0x160] sm:$0xff] }
 0x3b5   : > { %v2426_v34 = vpop.f32.mrf.mxu2  ;;  %v2475_v55 = vpop.f32.mrf.mxu3  ;;  %v3286_v11 = vld [vmem:[#allocation3 + $0x8] ss:$16 sm:$0xc]  ;;  %v3293_v53 = vld [vmem:[#allocation3 + $0x9] ss:$16 sm:$0x3] }
 0x3b6   : > { %v2880_v45 = vmax.f32 %v2860_v33, %v2861_v26  ;;  %v2427_v1 = vadd.f32 %v2426_v34, %v6055_v37  ;;  %v2476_v59 = vadd.f32 %v2475_v55, %v6057_v16  ;;  %v2712_v37 = vpop.f32.mrf.mxu0  ;;  %v2912_v34 = vor.u32 %v2911_v8, %v2910_v52  ;;  %v3383_v8 = vld [vmem:[#allocation3 + $0xa] ss:$16 sm:$0xc] }
 0x3b7   : > { %3180 = vmatpush.bf16.msra.mxu2 %v4763_v6  ;;  %v4786_v6 = vld [vmem:[%s6351_s5 + $0x138] sm:$0xff]  ;;  %v3296_v52 = vld [vmem:[#allocation3 + $0x9] ss:$16 sm:$0x30] }
 0x3b8   : > { %2896 = vst [vmem:[#allocation3 + $0x60] sm:$0xff] %v2880_v45  ;;  %v2792_v30 = vadd.f32 %v2709_v2, %v2427_v1  ;;  %v2793_v0 = vadd.f32 %v2758_v24, %v2476_v59 }
 0x3ba   : > { %v2830_v21 = vadd.f32 %v6077_v50, %v2792_v30  ;;  %v2831_v47 = vadd.f32 %v6080_v32, %v2793_v0  ;;  %v3092_v0 = vld [vmem:[#allocation3 + $0x4] ss:$16 sm:$0xc] }
 0x3bc   : > { %v2862_v16 = vmax.f32 %v2830_v21, 0.0  ;;  %v2863_v14 = vmax.f32 %v2831_v47, 0.0  ;;  %v3100_v21 = vld [vmem:[#allocation3 + $0x5] ss:$16 sm:$0xc] }
 0x3bd   : > { %v2429_v38 = vpop.f32.mrf.mxu2  ;;  %v2478_v12 = vpop.f32.mrf.mxu3  ;;  %v4794_v47 = vld [vmem:[%s6351_s5 + $0x178] sm:$0xff] }
 0x3be   : > { %v2881_v58 = vmax.f32 %v2862_v16, %v2863_v14  ;;  %v2430_v60 = vadd.f32 %v2429_v38, %v6059_v9  ;;  %v2479_v48 = vadd.f32 %v2478_v12, %v6061_v22  ;;  %v2714_v28 = vpop.f32.mrf.mxu0  ;;  %v2763_v9 = vpop.f32.mrf.mxu1  ;;  %v3189_v16 = vld [vmem:[#allocation3 + $0x6] ss:$16 sm:$0xc]  ;;  %v3197_v14 = vld [vmem:[#allocation3 + $0x7] ss:$16 sm:$0xc] }
 0x3bf   : > { %v3094_v12 = vld [vmem:[#allocation3 + $0x4] ss:$16 sm:$0x30] }
 0x3c0   : > { %2897 = vst [vmem:[#allocation3 + $0x68] sm:$0xff] %v2881_v58  ;;  %v2794_v17 = vadd.f32 %v2712_v37, %v2430_v60  ;;  %v2795_v49 = vadd.f32 %v2761_v27, %v2479_v48  ;;  %v3091_v37 = vld [vmem:[#allocation3 + $0x4] ss:$16 sm:$0x3]  ;;  %v4785_v60 = vld [vmem:[%s6351_s5 + $0x130] sm:$0xff] }
 0x3c1   : > { %v3099_v27 = vld [vmem:[#allocation3 + $0x5] ss:$16 sm:$0x3]  ;;  %v3188_v48 = vld [vmem:[#allocation3 + $0x6] ss:$16 sm:$0x3] }
 0x3c2   : > { %v2832_v46 = vadd.f32 %v6077_v50, %v2794_v17  ;;  %v2833_v18 = vadd.f32 %v6080_v32, %v2795_v49  ;;  %v3102_v58 = vld [vmem:[#allocation3 + $0x5] ss:$16 sm:$0x30]  ;;  %v3191_v17 = vld [vmem:[#allocation3 + $0x6] ss:$16 sm:$0x30] }
 0x3c3   : > { %v3196_v49 = vld [vmem:[#allocation3 + $0x7] ss:$16 sm:$0x3] }
 0x3c4   : > { %v2864_v35 = vmax.f32 %v2832_v46, 0.0  ;;  %v2865_v7 = vmax.f32 %v2833_v18, 0.0  ;;  %v4793_v46 = vld [vmem:[%s6351_s5 + $0x170] sm:$0xff]  ;;  %v3093_v18 = vor.u32 %v3092_v0, %v3091_v37 }
 0x3c5   : > { %v2431_v42 = vpop.f32.mrf.mxu2  ;;  %v2480_v61 = vpop.f32.mrf.mxu3 }
 0x3c6   : > { %v2882_v15 = vmax.f32 %v2864_v35, %v2865_v7  ;;  %v2432_v20 = vadd.f32 %v2431_v42, %v6069_v39  ;;  %v2481_v62 = vadd.f32 %v2480_v61, %v6071_v63  ;;  %v2945_v39 = vld [vmem:[#allocation3 + $0x3] ss:$16 sm:$0x30]  ;;  %v3101_v35 = vor.u32 %v3100_v21, %v3099_v27  ;;  %v3199_v7 = vld [vmem:[#allocation3 + $0x7] ss:$16 sm:$0x30] }
 0x3c7   : > { %v2946_v51 = vor.u32 %v2945_v39, %v2944_v57  ;;  %v3294_v57 = vld [vmem:[#allocation3 + $0x9] ss:$16 sm:$0xc] }
 0x3c8   : > { %2898 = vst [vmem:[#allocation3 + $0x70] sm:$0xff] %v2882_v15  ;;  %v2796_v22 = vadd.f32 %v2714_v28, %v2432_v20  ;;  %v2797_v4 = vadd.f32 %v2763_v9, %v2481_v62  ;;  %v4784_v15 = vld [vmem:[%s6351_s5 + $0x128] sm:$0xff]  ;;  %v3095_v20 = vor.u32 %v3094_v12, %v3093_v18  ;;  %v3103_v62 = vor.u32 %v3102_v58, %v3101_v35  ;;  %v4802_v35 = vld [vmem:[%s6353_s7 + $0x38] sm:$0xff] }
 0x3c9   : > { %v3190_v28 = vor.u32 %v3189_v16, %v3188_v48  ;;  %v3198_v9 = vor.u32 %v3197_v14, %v3196_v49 }
 0x3ca   : > { %v2834_v31 = vadd.f32 %v6077_v50, %v2796_v22  ;;  %v2835_v5 = vadd.f32 %v6080_v32, %v2797_v4  ;;  %v2904_v32 = vor.u32 %v2903_v43, %v2902_v29  ;;  %v4790_v43 = vld [vmem:[%s6351_s5 + $0x158] sm:$0xff]  ;;  %v3285_v29 = vld [vmem:[#allocation3 + $0x8] ss:$16 sm:$0x3] }
 0x3cb   : > { %v3192_v25 = vor.u32 %v3191_v17, %v3190_v28  ;;  %v3200_v10 = vor.u32 %v3199_v7, %v3198_v9  ;;  %v4787_v17 = vld [vmem:[%s6351_s5 + $0x140] sm:$0xff]  ;;  %v4801_v7 = vld [vmem:[%s6353_s7 + $0x30] sm:$0xff]  ;;  %v4796_v9 = vld [vmem:[%s6353_s7 + $0x8] sm:$0xff] }
 0x3cc   : > { %v2866_v40 = vmax.f32 %v2834_v31, 0.0  ;;  %v2867_v63 = vmax.f32 %v2835_v5, 0.0  ;;  %v4792_v31 = vld [vmem:[%s6351_s5 + $0x168] sm:$0xff]  ;;  %v4797_v28 = vld [vmem:[%s6353_s7 + $0x10] sm:$0xff] }
 0x3ce   : > { %v2883_v13 = vmax.f32 %v2866_v40, %v2867_v63  ;;  %v4782_v40 = vld [vmem:[%s6351_s5 + $0x118] sm:$0xff] }
 0x3cf   : > { %v2939_v50 = vld [vmem:[#allocation3 + $0x2] ss:$16 sm:$0xc0]  ;;  %v2947_v2 = vld [vmem:[#allocation3 + $0x3] ss:$16 sm:$0xc0] }
 0x3d0   : > { %2899 = vst [vmem:[#allocation3 + $0x78] sm:$0xff] %v2883_v13  ;;  %v2940_v24 = vor.u32 %v2939_v50, %v2938_v23  ;;  %v2948_v33 = vor.u32 %v2947_v2, %v2946_v51  ;;  %v2905_v26 = vld [vmem:[#allocation3] ss:$16 sm:$0xc0]  ;;  %v4781_v50 = vld [vmem:[%s6351_s5 + $0x110] sm:$0xff] }
 0x3d1   : > { %v2906_v55 = vor.u32 %v2905_v26, %v2904_v32  ;;  %v2913_v45 = vld [vmem:[#allocation3 + $0x1] ss:$16 sm:$0xc0]  ;;  %v3096_v42 = vld [vmem:[#allocation3 + $0x4] ss:$16 sm:$0xc0]  ;;  %v3287_v26 = vor.u32 %v3286_v11, %v3285_v29 }
 0x3d2   : > { %v2949_v1 = vmax.f32 %v2940_v24, %v2948_v33  ;;  %v2914_v59 = vor.u32 %v2913_v45, %v2912_v34  ;;  %v3104_v61 = vld [vmem:[#allocation3 + $0x5] ss:$16 sm:$0xc0]  ;;  %v3193_v22 = vld [vmem:[#allocation3 + $0x6] ss:$16 sm:$0xc0]  ;;  %v3097_v36 = vor.u32 %v3096_v42, %v3095_v20  ;;  %v3295_v34 = vor.u32 %v3294_v57, %v3293_v53 }
 0x3d3   : > { %v3201_v4 = vld [vmem:[#allocation3 + $0x7] ss:$16 sm:$0xc0]  ;;  %v3105_v44 = vor.u32 %v3104_v61, %v3103_v62  ;;  %v3194_v5 = vor.u32 %v3193_v22, %v3192_v25  ;;  %v3391_v13 = vld [vmem:[#allocation3 + $0xb] ss:$16 sm:$0xc] }
 0x3d4   : > { %v2950_v3 = vpack.c.bf16 %v2949_v1, %v2949_v1  ;;  %v2915_v30 = vmax.f32 %v2906_v55, %v2914_v59  ;;  %v3202_v41 = vor.u32 %v3201_v4, %v3200_v10  ;;  %v3288_v51 = vld [vmem:[#allocation3 + $0x8] ss:$16 sm:$0x30]  ;;  %v3382_v2 = vld [vmem:[#allocation3 + $0xa] ss:$16 sm:$0x3] }
 0x3d5   : > { %v3106_v56 = vmax.f32 %v3097_v36, %v3105_v44  ;;  %v3385_v32 = vld [vmem:[#allocation3 + $0xa] ss:$16 sm:$0x30]  ;;  %v3390_v24 = vld [vmem:[#allocation3 + $0xb] ss:$16 sm:$0x3] }
 0x3d6   : > { %3024 = vmatmul.bf16.vlgmr.msrb.gmra.mxu2 %v2950_v3  ;;  %v2916_v38 = vpack.c.bf16 %v2915_v30, %v2915_v30  ;;  %v3203_v39 = vmax.f32 %v3194_v5, %v3202_v41  ;;  %v4789_v33 = vld [vmem:[%s6351_s5 + $0x150] sm:$0xff]  ;;  %v4780_v59 = vld [vmem:[%s6351_s5 + $0x108] sm:$0xff]  ;;  %v3297_v3 = vor.u32 %v3296_v52, %v3295_v34  ;;  %v3384_v30 = vor.u32 %v3383_v8, %v3382_v2  ;;  %v4799_v61 = vld [vmem:[%s6353_s7 + $0x20] sm:$0xff] }
 0x3d7   : > { %3367 = vmatpush.bf16.msrb.mxu2 %v4786_v6  ;;  %v3107_v63 = vpack.c.bf16 %v3106_v56, %v3106_v56  ;;  %v3393_v55 = vld [vmem:[#allocation3 + $0xb] ss:$16 sm:$0x30]  ;;  %v3290_v45 = vld [vmem:[#allocation3 + $0x8] ss:$16 sm:$0xc0]  ;;  %v3289_v6 = vor.u32 %v3288_v51, %v3287_v26  ;;  %v3392_v0 = vor.u32 %v3391_v13, %v3390_v24 }
 0x3d8   : > { %3085 = vmatmul.bf16.vlgmr.msrb.gmra.mxu3 %v2916_v38  ;;  %v3204_v23 = vpack.c.bf16 %v3203_v39, %v3203_v39  ;;  %v3298_v1 = vld [vmem:[#allocation3 + $0x9] ss:$16 sm:$0xc0]  ;;  %v3387_v21 = vld [vmem:[#allocation3 + $0xa] ss:$16 sm:$0xc0]  ;;  %v3386_v16 = vor.u32 %v3385_v32, %v3384_v30 }
 0x3d9   : > { %3464 = vmatpush.bf16.msrb.mxu3 %v4794_v47  ;;  %v3395_v47 = vld [vmem:[#allocation3 + $0xb] ss:$16 sm:$0xc0]  ;;  %v3291_v37 = vor.u32 %v3290_v45, %v3289_v6  ;;  %v3299_v27 = vor.u32 %v3298_v1, %v3297_v3  ;;  %v3394_v14 = vor.u32 %v3393_v55, %v3392_v0  ;;  %v4788_v38 = vld [vmem:[%s6351_s5 + $0x148] sm:$0xff]  ;;  %v4810_v44 = vld [vmem:[%s6355_s9 + $0x38] sm:$0xff] }
 0x3da   : > { %v3388_v12 = vor.u32 %v3387_v21, %v3386_v16  ;;  %v4800_v42 = vld [vmem:[%s6353_s7 + $0x28] sm:$0xff]  ;;  %v4795_v36 = vld [vmem:[%s6353_s7] sm:$0xff]  ;;  %v4809_v25 = vld [vmem:[%s6355_s9 + $0x30] sm:$0xff] }
 0x3db   : > { %3368 = vmatpush.bf16.msrb.mxu2 %v4785_v60  ;;  %v3396_v58 = vor.u32 %v3395_v47, %v3394_v14  ;;  %v4779_v60 = vld [vmem:[%s6351_s5 + $0x100] sm:$0xff]  ;;  %v3300_v48 = vmax.f32 %v3291_v37, %v3299_v27  ;;  %v4804_v2 = vld [vmem:[%s6355_s9 + $0x8] sm:$0xff] }
 0x3dc   : > { %v4807_v41 = vld [vmem:[%s6355_s9 + $0x20] sm:$0xff] }
 0x3dd   : > { %3465 = vmatpush.bf16.msrb.mxu3 %v4793_v46  ;;  %v3397_v49 = vmax.f32 %v3388_v12, %v3396_v58  ;;  %v3301_v46 = vpack.c.bf16 %v3300_v48, %v3300_v48  ;;  %v4828_v29 = vld [vmem:[%s6352_s6] ss:$0 sm:$0xff] }
 0x3de   : > { %v4803_v32 = vld [vmem:[%s6355_s9] sm:$0xff] }
 0x3df   : > { %3369 = vmatpush.bf16.msrb.mxu2 %v4784_v15  ;;  %v3398_v18 = vpack.c.bf16 %v3397_v49, %v3397_v49  ;;  %v4798_v15 = vld [vmem:[%s6353_s7 + $0x18] sm:$0xff]  ;;  %v4829_v24 = vld [vmem:[%s6354_s8] ss:$0 sm:$0xff] }
 0x3e0   : > { %v4830_v1 = vld [vmem:[%s6356_s10] ss:$0 sm:$0xff] }
 0x3e1   : > { %3466 = vmatpush.bf16.msrb.mxu3 %v4792_v31  ;;  %v4808_v31 = vld [vmem:[%s6355_s9 + $0x28] sm:$0xff] }
 0x3e3   : > { %3370 = vmatpush.bf16.msrb.mxu2 %v4783_v54 }
 0x3e5   : > { %3467 = vmatpush.bf16.msrb.mxu3 %v4791_v19  ;;  %v4806_v19 = vld [vmem:[%s6355_s9 + $0x18] sm:$0xff] }
 0x3e6   : > { %3181 = vmatmul.bf16.vlgmr.msra.gmra.mxu2 %v3107_v63  ;;  %v4805_v63 = vld [vmem:[%s6355_s9 + $0x10] sm:$0xff] }
 0x3e7   : > { %3371 = vmatpush.bf16.msrb.mxu2 %v4782_v40 }
 0x3e8   : > { %3278 = vmatmul.bf16.vlgmr.msra.gmra.mxu3 %v3204_v23 }
 0x3e9   : > { %3468 = vmatpush.bf16.msrb.mxu3 %v4790_v43 }
 0x3eb   : > { %3372 = vmatpush.bf16.msrb.mxu2 %v4781_v50 }
 0x3ed   : > { %3469 = vmatpush.bf16.msrb.mxu3 %v4789_v33 }
 0x3ef   : > { %3373 = vmatpush.bf16.msrb.mxu2 %v4780_v59 }
 0x3f1   : > { %3470 = vmatpush.bf16.msrb.mxu3 %v4788_v38 }
 0x3f3   : > { %3374 = vmatpush.bf16.msrb.mxu2 %v4779_v60 }
 0x3f5   : > { %3471 = vmatpush.bf16.msrb.mxu3 %v4787_v17 }
 0x3f6   : > { %3375 = vmatmul.bf16.vlgmr.msrb.gmra.mxu2 %v3301_v46 }
 0x3f7   : > { %3553 = vmatpush.bf16.msra.mxu2 %v4802_v35 }
 0x3f8   : > { %3472 = vmatmul.bf16.vlgmr.msrb.gmra.mxu3 %v3398_v18 }
 0x3f9   : > { %3636 = vmatpush.bf16.msra.mxu3 %v4810_v44 }
 0x3fb   : > { %3554 = vmatpush.bf16.msra.mxu2 %v4801_v7 }
 0x3fd   : > { %3637 = vmatpush.bf16.msra.mxu3 %v4809_v25 }
 0x3ff   : > { %3555 = vmatpush.bf16.msra.mxu2 %v4800_v42 }
 0x401   : > { %3638 = vmatpush.bf16.msra.mxu3 %v4808_v31 }
 0x403   : > { %3556 = vmatpush.bf16.msra.mxu2 %v4799_v61 }
 0x405   : > { %3639 = vmatpush.bf16.msra.mxu3 %v4807_v41 }
 0x407   : > { %3557 = vmatpush.bf16.msra.mxu2 %v4798_v15 }
 0x409   : > { %3640 = vmatpush.bf16.msra.mxu3 %v4806_v19 }
 0x40b   : > { %3558 = vmatpush.bf16.msra.mxu2 %v4797_v28 }
 0x40d   : > { %3641 = vmatpush.bf16.msra.mxu3 %v4805_v63 }
 0x40f   : > { %3559 = vmatpush.bf16.msra.mxu2 %v4796_v9 }
 0x411   : > { %3642 = vmatpush.bf16.msra.mxu3 %v4804_v2 }
 0x413   : > { %3560 = vmatpush.bf16.msra.mxu2 %v4795_v36 }
 0x415   : > { %3643 = vmatpush.bf16.msra.mxu3 %v4803_v32 }
 0x459   : > { %v3025_v20 = vpop.f32.mrf.mxu2 }
 0x45b   : > { %v3086_v62 = vpop.f32.mrf.mxu3 }
 0x45c   : > { %v3087_v56 = vadd.f32 %v3086_v62, %v3025_v20 }
 0x461   : > { %v3027_v22 = vpop.f32.mrf.mxu2 }
 0x463   : > { %v3088_v4 = vpop.f32.mrf.mxu3 }
 0x469   : > { %v3182_v10 = vpop.f32.mrf.mxu2 }
 0x46a   : > { %v3186_v40 = vadd.f32 %v3182_v10, %v3087_v56 }
 0x46b   : > { %v3279_v5 = vpop.f32.mrf.mxu3 }
 0x46c   : > { %v3283_v11 = vadd.f32 %v3279_v5, %v3186_v40 }
 0x471   : > { %v3184_v54 = vpop.f32.mrf.mxu2 }
 0x473   : > { %v3281_v39 = vpop.f32.mrf.mxu3 }
 0x479   : > { %v3376_v57 = vpop.f32.mrf.mxu2 }
 0x47a   : > { %v3380_v43 = vadd.f32 %v3376_v57, %v3283_v11 }
 0x47b   : > { %v3473_v53 = vpop.f32.mrf.mxu3 }
 0x47c   : > { %v3477_v8 = vadd.f32 %v3473_v53, %v3380_v43 }
 0x47e   : > { %v3482_v13 = vadd.f32 %v4828_v29, %v3477_v8 }
 0x480   : > { %v3483_v23 = vmax.f32 %v3482_v13, 0.0 }
 0x481   : > { %v3378_v51 = vpop.f32.mrf.mxu2 }
 0x482   : > { %v3484_v52 = vpack.c.bf16 %v3483_v23, %v3483_v23 }
 0x483   : > { %v3475_v50 = vpop.f32.mrf.mxu3 }
 0x484   : > { %3561 = vmatmul.bf16.vlgmr.msra.gmra.mxu2 %v3484_v52 }
 0x507   : > { %v3562_v33 = vpop.f32.mrf.mxu2 }
 0x508   : > { %v3563_v26 = vadd.f32 %v4829_v24, %v3562_v33 }
 0x50a   : > { %v3566_v34 = vmax.f32 %v3563_v26, 0.0 }
 0x50c   : > { %v3567_v55 = vpack.c.bf16 %v3566_v34, %v3566_v34 }
 0x50e   : > { %3644 = vmatmul.bf16.vlgmr.msra.gmra.mxu3 %v3567_v55 }
 0x50f   : > { %v3564_v45 = vpop.f32.mrf.mxu2 }
 0x591   : > { %v3645_v59 = vpop.f32.mrf.mxu3 }
 0x592   : > { %v3646_v6 = vadd.f32 %v4830_v1, %v3645_v59 }
 0x594   : > { %3649 = vst [vmem:[%s384_s24] sm:$0xff] %v3646_v6 }
 0x599   : > { %v3647_v3 = vpop.f32.mrf.mxu3 }
 0x59a PF: > { %s21_s17 = sadd.s32 1, %s4837_s17  }
 0x59b   : > { %p18_p4 = scmp.ge.s32.totalorder %s21_s17, 4  }
 0x59d   :  { %20 = sbr.rel (!%p18_p4) target bundleno = 1 (0x1), region = 209 }

</bundles_post_ra>
